<compile_context>
chip_gen: v6e
topology: v6e:2x2x1
jax: 0.10.0
libtpu: 0.0.40
codegen_flags: <defaults>
</compile_context>

<pallas_src>
import math

import jax
import jax.numpy as jnp
from jax.experimental import pallas as pl
from jax.experimental.pallas import tpu as pltpu

NUM_HEADS = 1          # PerceiverConfig.num_cross_attend_heads
WIDENING_FACTOR = 4    # PerceiverConfig.cross_attend_widening_factor
LN_EPS = 1e-5          # torch.nn.LayerNorm default

_NEG_INF = -1e30
_LANE = 128
_SUBLANE = 8


def _round_up(x, m):
    return ((x + m - 1) // m) * m


def _layer_norm(x, gamma, beta, c_true):
    # Padded columns of x are zero, so plain sums divided by the TRUE channel
    # count give the exact mean / E[x^2]; padded gamma/beta are zero so the
    # padded output columns stay zero.
    inv_c = 1.0 / float(c_true)
    mu = jnp.sum(x, axis=-1, keepdims=True) * inv_c
    ex2 = jnp.sum(x * x, axis=-1, keepdims=True) * inv_c
    var = ex2 - mu * mu
    return (x - mu) * jax.lax.rsqrt(var + LN_EPS) * gamma + beta


def _gelu_exact(x):
    # matches torch.nn.functional.gelu(approximate='none')
    return 0.5 * x * (1.0 + jax.lax.erf(x * (1.0 / math.sqrt(2.0))))


def _tpu_defaults():
    """Generation-aware tiling / VMEM defaults (v5e/v6e: 128 MiB, v7x: 64 MiB)."""
    vmem_bytes = 64 * 1024 * 1024
    try:
        vmem_bytes = int(getattr(pltpu.get_tpu_info(), "vmem_capacity_bytes",
                                 vmem_bytes))
    except Exception:
        pass
    if vmem_bytes >= 100 * 1024 * 1024:          # v5e / v6e
        return dict(tile_kv=1024, vmem_limit=100 * 1024 * 1024, kv_buffers=3)
    # v7x: leave headroom below the 64 MiB physical VMEM for internal scratch.
    return dict(tile_kv=512, vmem_limit=56 * 1024 * 1024, kv_buffers=2)


# --------------------------------------------------------------------------
# Kernel 1: LayerNorms + QKV projections + flash cross-attention + out-proj
#           + query residual.
# --------------------------------------------------------------------------
def _make_attention_kernel(cq_true, ckv_true, tkv_true, tile_kv, dh_qk):
    scale = 1.0 / math.sqrt(dh_qk)
    bf16, f32 = jnp.bfloat16, jnp.float32
    mask_needed = (tkv_true % tile_kv) != 0   # static: skip mask when no padding

    # TODO(synk): only NUM_HEADS == 1 (num_cross_attend_heads) is supported;
    # multi-head flash accumulation would need per-head m/l/acc scratch.
    def kernel(q_ref, kv_ref,
               lnq_g_ref, lnq_b_ref, lnkv_g_ref, lnkv_b_ref,
               wq_ref, bq_ref, wk_ref, bk_ref, wv_ref, bv_ref,
               wo_ref, bo_ref,
               x_ref,
               qh_sc, m_sc, l_sc, acc_sc):
        kv_i = pl.program_id(2)

        # ---- init (first kv tile of this (b, q-tile)): LN(q), Q proj, acc ----
        @pl.when(kv_i == 0)
        def _():
            q_n = _layer_norm(q_ref[0], lnq_g_ref[...], lnq_b_ref[...], cq_true)
            qh = jnp.dot(q_n.astype(bf16), wq_ref[...],
                         preferred_element_type=f32) + bq_ref[...]
            # fold 1/sqrt(dh) into q once (small tile) instead of the scores
            qh_sc[...] = (qh * scale).astype(bf16)
            m_sc[...] = jnp.full(m_sc.shape, _NEG_INF, dtype=f32)
            l_sc[...] = jnp.zeros(l_sc.shape, dtype=f32)
            acc_sc[...] = jnp.zeros(acc_sc.shape, dtype=f32)

        # ---- every kv tile: LN (f32 stats on bf16 stream), K/V proj, update ----
        kv_n = _layer_norm(kv_ref[0].astype(f32),
                           lnkv_g_ref[...], lnkv_b_ref[...], ckv_true)
        kv_b = kv_n.astype(bf16)
        kh = jnp.dot(kv_b, wk_ref[...], preferred_element_type=f32) + bk_ref[...]
        vh = jnp.dot(kv_b, wv_ref[...], preferred_element_type=f32) + bv_ref[...]

        # scores[t, T] = sum_d qh_scaled[t, d] * kh[T, d]  (contract last dims)
        scores = jax.lax.dot_general(
            qh_sc[...], kh.astype(bf16),
            (((1,), (1,)), ((), ())),
            preferred_element_type=f32)                    # (tile_q, tile_kv)

        if mask_needed:
            # Only the last kv tile contains padded columns; the bias row is
            # all-zero for every other tile (single broadcast add / element).
            col = (jax.lax.broadcasted_iota(jnp.int32, (1, tile_kv), 1)
                   + kv_i * tile_kv)
            scores = scores + jnp.where(col < tkv_true,
                                        jnp.float32(0.0), jnp.float32(_NEG_INF))

        m_new = jnp.maximum(m_sc[...], jnp.max(scores, axis=-1, keepdims=True))
        alpha = jnp.exp(m_sc[...] - m_new)
        prob = jnp.exp(scores - m_new)
        l_sc[...] = alpha * l_sc[...] + jnp.sum(prob, axis=-1, keepdims=True)
        acc_sc[...] = alpha * acc_sc[...] + jnp.dot(
            prob.astype(bf16), vh.astype(bf16), preferred_element_type=f32)
        m_sc[...] = m_new

        # ---- finalize (last kv tile): out-proj + query residual ----
        @pl.when(kv_i == pl.num_programs(2) - 1)
        def _():
            # exact reciprocal: off the critical path (once per q-tile)
            ctx = acc_sc[...] * pl.reciprocal(l_sc[...], approx=False)
            attn_out = jnp.dot(ctx.astype(bf16), wo_ref[...],
                               preferred_element_type=f32) + bo_ref[...]
            # TODO(synk): attention-output dropout omitted (eval / p=0 path).
            x_ref[0] = (q_ref[0] + attn_out).astype(x_ref.dtype)

    return kernel


# --------------------------------------------------------------------------
# Kernel 2: post-residual LayerNorm (reusing q_norm params, as the PyTorch
#           module does) + fc1 + exact GELU + fc2 (hidden-dim tiled) + residual.
# --------------------------------------------------------------------------
def _make_mlp_kernel(cq_true):
    bf16, f32 = jnp.bfloat16, jnp.float32

    def kernel(x_ref, lnq_g_ref, lnq_b_ref, w1_ref, b1_ref, w2_ref, b2_ref,
               out_ref, xn_sc, acc_sc):
        hi = pl.program_id(2)

        @pl.when(hi == 0)
        def _():
            x_n = _layer_norm(x_ref[0], lnq_g_ref[...], lnq_b_ref[...], cq_true)
            xn_sc[...] = x_n.astype(bf16)
            acc_sc[...] = jnp.zeros(acc_sc.shape, dtype=f32)

        h1 = jnp.dot(xn_sc[...], w1_ref[...],
                     preferred_element_type=f32) + b1_ref[...]
        # exact erf GELU: matches torch F.gelu(approximate='none').
        # TODO(synk): tanh-approx GELU (EUP) would be cheaper but changes numerics.
        h1 = _gelu_exact(h1)
        acc_sc[...] += jnp.dot(h1.astype(bf16), w2_ref[...],
                               preferred_element_type=f32)

        @pl.when(hi == pl.num_programs(2) - 1)
        def _():
            # TODO(synk): MLP output dropout omitted (eval / p=0 path).
            out_ref[0] = (x_ref[0] + acc_sc[...] + b2_ref[...]).astype(out_ref.dtype)

    return kernel


# --------------------------------------------------------------------------
# Wrapper
# --------------------------------------------------------------------------
def init_params(key, cq, ckv, att_init_scale=1.0, dense_init_scale=1.0):
    """Deterministic parameter init mirroring the PyTorch module's __init__."""
    qk_ch = ckv            # shape_for_attn='kv'
    v_ch = qk_ch           # v_channels defaults to qk_channels
    out_ch = cq            # output_channels = inputs_q.shape[-1]
    hidden = WIDENING_FACTOR * cq

    def normal(k, shape, std):
        return (std * jax.random.normal(k, shape)).astype(jnp.float32)

    ks = jax.random.split(key, 6)
    std_q = math.sqrt(2.0 / (cq + qk_ch)) * att_init_scale
    std_k = math.sqrt(2.0 / (ckv + qk_ch)) * att_init_scale
    std_v = math.sqrt(2.0 / (ckv + v_ch)) * att_init_scale
    std_o = math.sqrt(2.0 / (v_ch + out_ch)) * att_init_scale
    std_1 = math.sqrt(2.0 / (cq + hidden)) * dense_init_scale
    std_2 = math.sqrt(2.0 / (hidden + cq)) * dense_init_scale

    return dict(
        lnq_g=jnp.ones((1, cq), jnp.float32), lnq_b=jnp.zeros((1, cq), jnp.float32),
        lnkv_g=jnp.ones((1, ckv), jnp.float32), lnkv_b=jnp.zeros((1, ckv), jnp.float32),
        wq=normal(ks[0], (cq, qk_ch), std_q), bq=jnp.zeros((1, qk_ch), jnp.float32),
        wk=normal(ks[1], (ckv, qk_ch), std_k), bk=jnp.zeros((1, qk_ch), jnp.float32),
        wv=normal(ks[2], (ckv, v_ch), std_v), bv=jnp.zeros((1, v_ch), jnp.float32),
        wo=normal(ks[3], (v_ch, out_ch), std_o), bo=jnp.zeros((1, out_ch), jnp.float32),
        w1=normal(ks[4], (cq, hidden), std_1), b1=jnp.zeros((1, hidden), jnp.float32),
        w2=normal(ks[5], (hidden, cq), std_2), b2=jnp.zeros((1, cq), jnp.float32),
    )


def _pad2(a, r, c, dtype=None):
    a = jnp.pad(a, ((0, r - a.shape[0]), (0, c - a.shape[1])))
    return a.astype(dtype) if dtype is not None else a


def _cross_attention_impl(inputs_q, inputs_kv, params, *, tile_q, tile_kv, tile_h,
                          vmem_limit, kv_buffers, use_buffered):
    B, Tq, Cq = inputs_q.shape
    _, Tkv, Ckv = inputs_kv.shape
    qk_ch = params["wq"].shape[1]
    v_ch = params["wv"].shape[1]
    hidden = params["w1"].shape[1]
    dh_qk = qk_ch // NUM_HEADS

    # Lane/sublane-dense padded sizes. Zero padding is exact: padded weight
    # rows/cols, biases and LN affines are zero, so padded channels stay zero
    # through every matmul / LN / residual. Padded Tq rows are sliced off.
    Cq_p = _round_up(Cq, _LANE)
    Ckv_p = _round_up(Ckv, _LANE)
    QK_p = _round_up(qk_ch, _LANE)
    V_p = _round_up(v_ch, _LANE)
    H_p = _round_up(hidden, tile_h)
    Tq_p = _round_up(Tq, tile_q)
    Tkv_p = _round_up(Tkv, tile_kv)
    n_q = Tq_p // tile_q
    n_kv = Tkv_p // tile_kv
    n_h = H_p // tile_h

    bf16 = jnp.bfloat16
    p = params

    def const_spec(shape):
        idx = lambda *_: (0,) * len(shape)
        if use_buffered:
            # grid-invariant parameter block: single-buffer it (double
            # buffering a constant block is pure VMEM waste).
            return pl.BlockSpec(shape, idx, pipeline_mode=pl.Buffered(1))
        return pl.BlockSpec(shape, idx)

    # --------------------- attention kernel ---------------------
    attn_params = [
        _pad2(p["lnq_g"], 1, Cq_p),        _pad2(p["lnq_b"], 1, Cq_p),
        _pad2(p["lnkv_g"], 1, Ckv_p),      _pad2(p["lnkv_b"], 1, Ckv_p),
        _pad2(p["wq"], Cq_p, QK_p, bf16),  _pad2(p["bq"], 1, QK_p),
        _pad2(p["wk"], Ckv_p, QK_p, bf16), _pad2(p["bk"], 1, QK_p),
        _pad2(p["wv"], Ckv_p, V_p, bf16),  _pad2(p["bv"], 1, V_p),
        _pad2(p["wo"], V_p, Cq_p, bf16),   _pad2(p["bo"], 1, Cq_p),
    ]

    q_pad = jnp.pad(inputs_q, ((0, 0), (0, Tq_p - Tq), (0, Cq_p - Cq)))
    # kv is the only HBM stream that scales with Tkv -> ship it in bf16.
    kv_pad = jnp.pad(inputs_kv.astype(bf16),
                     ((0, 0), (0, Tkv_p - Tkv), (0, Ckv_p - Ckv)))

    kv_kwargs = {}
    if use_buffered and kv_buffers > 2 and n_kv > 2:
        # v5e/v6e: spare VMEM, lowest HBM BW -> deepen the kv pipeline.
        kv_kwargs["pipeline_mode"] = pl.Buffered(kv_buffers)

    attn_in_specs = [
        pl.BlockSpec((1, tile_q, Cq_p), lambda b, qi, ki: (b, qi, 0)),
        pl.BlockSpec((1, tile_kv, Ckv_p), lambda b, qi, ki: (b, ki, 0), **kv_kwargs),
    ] + [const_spec(a.shape) for a in attn_params]

    x_pad = pl.pallas_call(
        _make_attention_kernel(Cq, Ckv, Tkv, tile_kv, dh_qk),
        out_shape=jax.ShapeDtypeStruct((B, Tq_p, Cq_p), jnp.float32),
        grid_spec=pltpu.PrefetchScalarGridSpec(
            num_scalar_prefetch=0,
            grid=(B, n_q, n_kv),
            in_specs=attn_in_specs,
            out_specs=pl.BlockSpec((1, tile_q, Cq_p), lambda b, qi, ki: (b, qi, 0)),
            scratch_shapes=[
                pltpu.VMEM((tile_q, QK_p), jnp.bfloat16),   # pre-scaled q heads
                pltpu.VMEM((tile_q, 1), jnp.float32),       # running max m
                pltpu.VMEM((tile_q, 1), jnp.float32),       # running denom l
                pltpu.VMEM((tile_q, V_p), jnp.float32),     # running context acc
            ]),
        compiler_params=pltpu.CompilerParams(
            dimension_semantics=("parallel", "parallel", "arbitrary"),
            vmem_limit_bytes=vmem_limit),
    )(q_pad, kv_pad, *attn_params)

    # --------------------- MLP kernel ---------------------
    mlp_params = [
        _pad2(p["lnq_g"], 1, Cq_p),       _pad2(p["lnq_b"], 1, Cq_p),
        _pad2(p["w1"], Cq_p, H_p, bf16),  _pad2(p["b1"], 1, H_p),
        _pad2(p["w2"], H_p, Cq_p, bf16),  _pad2(p["b2"], 1, Cq_p),
    ]

    mlp_in_specs = [
        pl.BlockSpec((1, tile_q, Cq_p), lambda b, qi, hi: (b, qi, 0)),
        const_spec((1, Cq_p)), const_spec((1, Cq_p)),
        pl.BlockSpec((Cq_p, tile_h), lambda b, qi, hi: (0, hi)),   # w1 streamed
        pl.BlockSpec((1, tile_h), lambda b, qi, hi: (0, hi)),      # b1 streamed
        pl.BlockSpec((tile_h, Cq_p), lambda b, qi, hi: (hi, 0)),   # w2 streamed
        const_spec((1, Cq_p)),
    ]

    out_pad = pl.pallas_call(
        _make_mlp_kernel(Cq),
        out_shape=jax.ShapeDtypeStruct((B, Tq_p, Cq_p), jnp.float32),
        grid_spec=pltpu.PrefetchScalarGridSpec(
            num_scalar_prefetch=0,
            grid=(B, n_q, n_h),
            in_specs=mlp_in_specs,
            out_specs=pl.BlockSpec((1, tile_q, Cq_p), lambda b, qi, hi: (b, qi, 0)),
            scratch_shapes=[
                pltpu.VMEM((tile_q, Cq_p), jnp.bfloat16),  # LN(x), reused per h-tile
                pltpu.VMEM((tile_q, Cq_p), jnp.float32),   # MLP accumulator
            ]),
        compiler_params=pltpu.CompilerParams(
            dimension_semantics=("parallel", "parallel", "arbitrary"),
            vmem_limit_bytes=vmem_limit),
    )(x_pad, *mlp_params)

    return out_pad[:, :Tq, :Cq]


def cross_attention(inputs_q, inputs_kv, params, *,
                    tile_q=None, tile_kv=None, tile_h=None):
    """Fused Perceiver CrossAttention forward (eval mode, no attention mask)."""
    _, Tq, _ = inputs_q.shape
    _, Tkv, _ = inputs_kv.shape
    hidden = params["w1"].shape[1]

    d = _tpu_defaults()
    if tile_q is None:
        # 128 keeps both v7x TensorCores busy whenever B * ceil(Tq/128) >= 2.
        tile_q = min(128, _round_up(Tq, _SUBLANE))
    if tile_kv is None:
        tile_kv = min(d["tile_kv"], _round_up(Tkv, _LANE))
    if tile_h is None:
        tile_h = min(512, _round_up(hidden, _LANE))

    kwargs = dict(tile_q=tile_q, tile_kv=tile_kv, tile_h=tile_h,
                  vmem_limit=d["vmem_limit"], kv_buffers=d["kv_buffers"])
    try:
        return _cross_attention_impl(inputs_q, inputs_kv, params,
                                     use_buffered=True, **kwargs)
    except Exception:
        # Fallback if pl.Buffered(pipeline_mode=...) is rejected by this JAX
        # version: rerun with default (double-buffered) pipelining.
        return _cross_attention_impl(inputs_q, inputs_kv, params,
                                     use_buffered=False, **kwargs)


def cross_attention_ref(inputs_q, inputs_kv, p):
    """Pure-JAX f32 reference of the PyTorch forward (eval mode, no mask)."""
    def ln(x, g, b):
        mu = jnp.mean(x, -1, keepdims=True)
        var = jnp.mean((x - mu) ** 2, -1, keepdims=True)
        return (x - mu) / jnp.sqrt(var + LN_EPS) * g + b

    q_n = ln(inputs_q, p["lnq_g"], p["lnq_b"])
    kv_n = ln(inputs_kv, p["lnkv_g"], p["lnkv_b"])
    q = q_n @ p["wq"] + p["bq"]
    k = kv_n @ p["wk"] + p["bk"]
    v = kv_n @ p["wv"] + p["bv"]
    dh = q.shape[-1] // NUM_HEADS
    scores = jnp.einsum("btd,bTd->btT", q, k) / math.sqrt(dh)
    probs = jax.nn.softmax(scores, axis=-1)
    ctx = jnp.einsum("btT,bTd->btd", probs, v)
    attn_out = ctx @ p["wo"] + p["bo"]
    x = inputs_q + attn_out
    x_n = ln(x, p["lnq_g"], p["lnq_b"])          # module reuses q_norm here
    pre = x_n @ p["w1"] + p["b1"]
    h1 = 0.5 * pre * (1.0 + jax.lax.erf(pre / math.sqrt(2.0)))
    mlp = h1 @ p["w2"] + p["b2"]
    return x + mlp


if __name__ == "__main__":
    B, Tq, Cq = 2, 8, 32      # batch, num_latents, latent channels
    Tkv, Ckv = 16, 32         # input sequence length, input channels

    key = jax.random.PRNGKey(0)
    kq, kkv, kp = jax.random.split(key, 3)
    inputs_q = jax.random.normal(kq, (B, Tq, Cq), jnp.float32)
    inputs_kv = jax.random.normal(kkv, (B, Tkv, Ckv), jnp.float32)
    params = init_params(kp, Cq, Ckv)

    out = jax.block_until_ready(cross_attention(inputs_q, inputs_kv, params))
    ref = jax.block_until_ready(cross_attention_ref(inputs_q, inputs_kv, params))

    assert out.shape == (B, Tq, Cq)
    # Tolerance loosened vs. the pure-f32 reference: MXU operands (and the
    # streamed kv input) are bf16 with f32 accumulation; LN/softmax stats f32.
    assert jnp.allclose(out, ref, atol=5e-2, rtol=5e-2), "mismatch vs reference"

    print("KERNEL_OK")
</pallas_src>

<mosaic_0001>
module attributes {stable_mosaic.version = 11 : i64} {
  func.func @kernel(%arg0: i32, %arg1: i32, %arg2: i32, %arg3: memref<1x8x128xf32, #tpu.memory_space<vmem>>, %arg4: memref<1x128x128xbf16, #tpu.memory_space<vmem>>, %arg5: memref<1x128xf32, #tpu.memory_space<vmem>>, %arg6: memref<1x128xf32, #tpu.memory_space<vmem>>, %arg7: memref<1x128xf32, #tpu.memory_space<vmem>>, %arg8: memref<1x128xf32, #tpu.memory_space<vmem>>, %arg9: memref<128x128xbf16, #tpu.memory_space<vmem>>, %arg10: memref<1x128xf32, #tpu.memory_space<vmem>>, %arg11: memref<128x128xbf16, #tpu.memory_space<vmem>>, %arg12: memref<1x128xf32, #tpu.memory_space<vmem>>, %arg13: memref<128x128xbf16, #tpu.memory_space<vmem>>, %arg14: memref<1x128xf32, #tpu.memory_space<vmem>>, %arg15: memref<128x128xbf16, #tpu.memory_space<vmem>>, %arg16: memref<1x128xf32, #tpu.memory_space<vmem>>, %arg17: memref<1x8x128xf32, #tpu.memory_space<vmem>>, %arg18: memref<8x128xbf16, #tpu.memory_space<vmem>>, %arg19: memref<8x1xf32, #tpu.memory_space<vmem>>, %arg20: memref<8x1xf32, #tpu.memory_space<vmem>>, %arg21: memref<8x128xf32, #tpu.memory_space<vmem>>) attributes {dimension_semantics = [#tpu.dimension_semantics<parallel>, #tpu.dimension_semantics<parallel>, #tpu.dimension_semantics<arbitrary>], iteration_bounds = array<i64: 2, 1, 1>, scalar_prefetch = 0 : i64, scratch_operands = 4 : i64, tpu.core_type = #tpu.core_type<tc>, window_params = [{transform_indices = @transform_0, window_bounds = array<i64: 1, 8, 128>}, {transform_indices = @transform_1, window_bounds = array<i64: 1, 128, 128>}, {pipeline_mode = #tpu.pipeline_mode<synchronous>, transform_indices = @transform_2, window_bounds = array<i64: 1, 128>}, {pipeline_mode = #tpu.pipeline_mode<synchronous>, transform_indices = @transform_3, window_bounds = array<i64: 1, 128>}, {pipeline_mode = #tpu.pipeline_mode<synchronous>, transform_indices = @transform_4, window_bounds = array<i64: 1, 128>}, {pipeline_mode = #tpu.pipeline_mode<synchronous>, transform_indices = @transform_5, window_bounds = array<i64: 1, 128>}, {pipeline_mode = #tpu.pipeline_mode<synchronous>, transform_indices = @transform_6, window_bounds = array<i64: 128, 128>}, {pipeline_mode = #tpu.pipeline_mode<synchronous>, transform_indices = @transform_7, window_bounds = array<i64: 1, 128>}, {pipeline_mode = #tpu.pipeline_mode<synchronous>, transform_indices = @transform_8, window_bounds = array<i64: 128, 128>}, {pipeline_mode = #tpu.pipeline_mode<synchronous>, transform_indices = @transform_9, window_bounds = array<i64: 1, 128>}, {pipeline_mode = #tpu.pipeline_mode<synchronous>, transform_indices = @transform_10, window_bounds = array<i64: 128, 128>}, {pipeline_mode = #tpu.pipeline_mode<synchronous>, transform_indices = @transform_11, window_bounds = array<i64: 1, 128>}, {pipeline_mode = #tpu.pipeline_mode<synchronous>, transform_indices = @transform_12, window_bounds = array<i64: 128, 128>}, {pipeline_mode = #tpu.pipeline_mode<synchronous>, transform_indices = @transform_13, window_bounds = array<i64: 1, 128>}, {transform_indices = @transform_14, window_bounds = array<i64: 1, 8, 128>}]} {
    %c0_i32 = arith.constant 0 : i32
    %0 = arith.cmpi eq, %arg2, %c0_i32 : i32
    %1 = arith.extui %0 : i1 to i32
    %c0_i32_0 = arith.constant 0 : i32
    %2 = arith.cmpi ne, %1, %c0_i32_0 : i32
    scf.if %2 {
      %c0_45 = arith.constant 0 : index
      %c0_46 = arith.constant 0 : index
      %c0_47 = arith.constant 0 : index
      %83 = vector.load %arg3[%c0_45, %c0_46, %c0_47] : memref<1x8x128xf32, #tpu.memory_space<vmem>>, vector<1x8x128xf32>
      %84 = vector.shape_cast %83 : vector<1x8x128xf32> to vector<8x128xf32>
      %c0_48 = arith.constant 0 : index
      %c0_49 = arith.constant 0 : index
      %85 = vector.load %arg5[%c0_48, %c0_49] : memref<1x128xf32, #tpu.memory_space<vmem>>, vector<1x128xf32>
      %c0_50 = arith.constant 0 : index
      %c0_51 = arith.constant 0 : index
      %86 = vector.load %arg6[%c0_50, %c0_51] : memref<1x128xf32, #tpu.memory_space<vmem>>, vector<1x128xf32>
      %cst_52 = arith.constant dense<0.000000e+00> : vector<8xf32>
      %87 = vector.multi_reduction <add>, %84, %cst_52 [1] : vector<8x128xf32> to vector<8xf32>
      %88 = vector.shape_cast %87 : vector<8xf32> to vector<8x1xf32>
      %cst_53 = arith.constant 3.125000e-02 : f32
      %89 = vector.broadcast %cst_53 : f32 to vector<8x1xf32>
      %90 = arith.mulf %88, %89 : vector<8x1xf32>
      %91 = arith.mulf %84, %84 : vector<8x128xf32>
      %cst_54 = arith.constant dense<0.000000e+00> : vector<8xf32>
      %92 = vector.multi_reduction <add>, %91, %cst_54 [1] : vector<8x128xf32> to vector<8xf32>
      %93 = vector.shape_cast %92 : vector<8xf32> to vector<8x1xf32>
      %cst_55 = arith.constant 3.125000e-02 : f32
      %94 = vector.broadcast %cst_55 : f32 to vector<8x1xf32>
      %95 = arith.mulf %93, %94 : vector<8x1xf32>
      %96 = arith.mulf %90, %90 : vector<8x1xf32>
      %97 = arith.subf %95, %96 : vector<8x1xf32>
      %98 = vector.broadcast %90 : vector<8x1xf32> to vector<8x128xf32>
      %99 = arith.subf %84, %98 : vector<8x128xf32>
      %cst_56 = arith.constant 9.99999974E-6 : f32
      %100 = vector.broadcast %cst_56 : f32 to vector<8x1xf32>
      %101 = arith.addf %97, %100 : vector<8x1xf32>
      %102 = math.rsqrt %101 : vector<8x1xf32>
      %103 = vector.broadcast %102 : vector<8x1xf32> to vector<8x128xf32>
      %104 = arith.mulf %99, %103 : vector<8x128xf32>
      %105 = vector.broadcast %85 : vector<1x128xf32> to vector<8x128xf32>
      %106 = arith.mulf %104, %105 : vector<8x128xf32>
      %107 = vector.broadcast %86 : vector<1x128xf32> to vector<8x128xf32>
      %108 = arith.addf %106, %107 : vector<8x128xf32>
      %109 = arith.truncf %108 : vector<8x128xf32> to vector<8x128xbf16>
      %c0_57 = arith.constant 0 : index
      %c0_58 = arith.constant 0 : index
      %110 = vector.load %arg9[%c0_57, %c0_58] : memref<128x128xbf16, #tpu.memory_space<vmem>>, vector<128x128xbf16>
      %cst_59 = arith.constant dense<0.000000e+00> : vector<8x128xf32>
      %111 = tpu.matmul %109, %110, %cst_59 {dimension_numbers = #tpu.dot_dimension_numbers<[1], [0], [0], [1], [0, 0, 1, 1], [], []>} : vector<8x128xbf16>, vector<128x128xbf16>, vector<8x128xf32> -> vector<8x128xf32>
      %c0_60 = arith.constant 0 : index
      %c0_61 = arith.constant 0 : index
      %112 = vector.load %arg10[%c0_60, %c0_61] : memref<1x128xf32, #tpu.memory_space<vmem>>, vector<1x128xf32>
      %113 = vector.broadcast %112 : vector<1x128xf32> to vector<8x128xf32>
      %114 = arith.addf %111, %113 : vector<8x128xf32>
      %cst_62 = arith.constant 0.176776692 : f32
      %115 = vector.broadcast %cst_62 : f32 to vector<8x128xf32>
      %116 = arith.mulf %114, %115 : vector<8x128xf32>
      %117 = arith.truncf %116 : vector<8x128xf32> to vector<8x128xbf16>
      %c0_63 = arith.constant 0 : index
      %c0_64 = arith.constant 0 : index
      %118 = vector.load %arg18[%c0_63, %c0_64] : memref<8x128xbf16, #tpu.memory_space<vmem>>, vector<8x128xbf16>
      tpu.vector_store %arg18[%c0_63, %c0_64], %117 {strides = array<i32>} : memref<8x128xbf16, #tpu.memory_space<vmem>>, vector<8x128xbf16>,
      %cst_65 = arith.constant -1.000000e+30 : f32
      %119 = vector.broadcast %cst_65 : f32 to vector<8x1xf32>
      %c0_66 = arith.constant 0 : index
      %c0_67 = arith.constant 0 : index
      %120 = vector.load %arg19[%c0_66, %c0_67] : memref<8x1xf32, #tpu.memory_space<vmem>>, vector<8x1xf32>
      tpu.vector_store %arg19[%c0_66, %c0_67], %119 {strides = array<i32>} : memref<8x1xf32, #tpu.memory_space<vmem>>, vector<8x1xf32>,
      %cst_68 = arith.constant 0.000000e+00 : f32
      %121 = vector.broadcast %cst_68 : f32 to vector<8x1xf32>
      %c0_69 = arith.constant 0 : index
      %c0_70 = arith.constant 0 : index
      %122 = vector.load %arg20[%c0_69, %c0_70] : memref<8x1xf32, #tpu.memory_space<vmem>>, vector<8x1xf32>
      tpu.vector_store %arg20[%c0_69, %c0_70], %121 {strides = array<i32>} : memref<8x1xf32, #tpu.memory_space<vmem>>, vector<8x1xf32>,
      %cst_71 = arith.constant 0.000000e+00 : f32
      %123 = vector.broadcast %cst_71 : f32 to vector<8x128xf32>
      %c0_72 = arith.constant 0 : index
      %c0_73 = arith.constant 0 : index
      %124 = vector.load %arg21[%c0_72, %c0_73] : memref<8x128xf32, #tpu.memory_space<vmem>>, vector<8x128xf32>
      tpu.vector_store %arg21[%c0_72, %c0_73], %123 {strides = array<i32>} : memref<8x128xf32, #tpu.memory_space<vmem>>, vector<8x128xf32>,
    } else {
    }
    %c0 = arith.constant 0 : index
    %c0_1 = arith.constant 0 : index
    %c0_2 = arith.constant 0 : index
    %3 = vector.load %arg4[%c0, %c0_1, %c0_2] : memref<1x128x128xbf16, #tpu.memory_space<vmem>>, vector<1x128x128xbf16>
    %4 = vector.shape_cast %3 : vector<1x128x128xbf16> to vector<128x128xbf16>
    %5 = arith.extf %4 : vector<128x128xbf16> to vector<128x128xf32>
    %c0_3 = arith.constant 0 : index
    %c0_4 = arith.constant 0 : index
    %6 = vector.load %arg7[%c0_3, %c0_4] : memref<1x128xf32, #tpu.memory_space<vmem>>, vector<1x128xf32>
    %c0_5 = arith.constant 0 : index
    %c0_6 = arith.constant 0 : index
    %7 = vector.load %arg8[%c0_5, %c0_6] : memref<1x128xf32, #tpu.memory_space<vmem>>, vector<1x128xf32>
    %cst = arith.constant dense<0.000000e+00> : vector<128xf32>
    %8 = vector.multi_reduction <add>, %5, %cst [1] : vector<128x128xf32> to vector<128xf32>
    %9 = vector.shape_cast %8 : vector<128xf32> to vector<128x1xf32>
    %cst_7 = arith.constant 3.125000e-02 : f32
    %10 = vector.broadcast %cst_7 : f32 to vector<128x1xf32>
    %11 = arith.mulf %9, %10 : vector<128x1xf32>
    %12 = arith.mulf %5, %5 : vector<128x128xf32>
    %cst_8 = arith.constant dense<0.000000e+00> : vector<128xf32>
    %13 = vector.multi_reduction <add>, %12, %cst_8 [1] : vector<128x128xf32> to vector<128xf32>
    %14 = vector.shape_cast %13 : vector<128xf32> to vector<128x1xf32>
    %cst_9 = arith.constant 3.125000e-02 : f32
    %15 = vector.broadcast %cst_9 : f32 to vector<128x1xf32>
    %16 = arith.mulf %14, %15 : vector<128x1xf32>
    %17 = arith.mulf %11, %11 : vector<128x1xf32>
    %18 = arith.subf %16, %17 : vector<128x1xf32>
    %19 = vector.broadcast %11 : vector<128x1xf32> to vector<128x128xf32>
    %20 = arith.subf %5, %19 : vector<128x128xf32>
    %cst_10 = arith.constant 9.99999974E-6 : f32
    %21 = vector.broadcast %cst_10 : f32 to vector<128x1xf32>
    %22 = arith.addf %18, %21 : vector<128x1xf32>
    %23 = math.rsqrt %22 : vector<128x1xf32>
    %24 = vector.broadcast %23 : vector<128x1xf32> to vector<128x128xf32>
    %25 = arith.mulf %20, %24 : vector<128x128xf32>
    %26 = vector.broadcast %6 : vector<1x128xf32> to vector<128x128xf32>
    %27 = arith.mulf %25, %26 : vector<128x128xf32>
    %28 = vector.broadcast %7 : vector<1x128xf32> to vector<128x128xf32>
    %29 = arith.addf %27, %28 : vector<128x128xf32>
    %30 = arith.truncf %29 : vector<128x128xf32> to vector<128x128xbf16>
    %c0_11 = arith.constant 0 : index
    %c0_12 = arith.constant 0 : index
    %31 = vector.load %arg11[%c0_11, %c0_12] : memref<128x128xbf16, #tpu.memory_space<vmem>>, vector<128x128xbf16>
    %cst_13 = arith.constant dense<0.000000e+00> : vector<128x128xf32>
    %32 = tpu.matmul %30, %31, %cst_13 {dimension_numbers = #tpu.dot_dimension_numbers<[1], [0], [0], [1], [0, 0, 1, 1], [], []>} : vector<128x128xbf16>, vector<128x128xbf16>, vector<128x128xf32> -> vector<128x128xf32>
    %c0_14 = arith.constant 0 : index
    %c0_15 = arith.constant 0 : index
    %33 = vector.load %arg12[%c0_14, %c0_15] : memref<1x128xf32, #tpu.memory_space<vmem>>, vector<1x128xf32>
    %34 = vector.broadcast %33 : vector<1x128xf32> to vector<128x128xf32>
    %35 = arith.addf %32, %34 : vector<128x128xf32>
    %c0_16 = arith.constant 0 : index
    %c0_17 = arith.constant 0 : index
    %36 = vector.load %arg13[%c0_16, %c0_17] : memref<128x128xbf16, #tpu.memory_space<vmem>>, vector<128x128xbf16>
    %cst_18 = arith.constant dense<0.000000e+00> : vector<128x128xf32>
    %37 = tpu.matmul %30, %36, %cst_18 {dimension_numbers = #tpu.dot_dimension_numbers<[1], [0], [0], [1], [0, 0, 1, 1], [], []>} : vector<128x128xbf16>, vector<128x128xbf16>, vector<128x128xf32> -> vector<128x128xf32>
    %c0_19 = arith.constant 0 : index
    %c0_20 = arith.constant 0 : index
    %38 = vector.load %arg14[%c0_19, %c0_20] : memref<1x128xf32, #tpu.memory_space<vmem>>, vector<1x128xf32>
    %39 = vector.broadcast %38 : vector<1x128xf32> to vector<128x128xf32>
    %40 = arith.addf %37, %39 : vector<128x128xf32>
    %c0_21 = arith.constant 0 : index
    %c0_22 = arith.constant 0 : index
    %41 = vector.load %arg18[%c0_21, %c0_22] : memref<8x128xbf16, #tpu.memory_space<vmem>>, vector<8x128xbf16>
    %42 = arith.truncf %35 : vector<128x128xf32> to vector<128x128xbf16>
    %cst_23 = arith.constant dense<0.000000e+00> : vector<8x128xf32>
    %43 = tpu.matmul %41, %42, %cst_23 {dimension_numbers = #tpu.dot_dimension_numbers<[1], [1], [0], [0], [0, 0, 1, 0], [], []>} : vector<8x128xbf16>, vector<128x128xbf16>, vector<8x128xf32> -> vector<8x128xf32>
    %44 = tpu.iota {dimensions = array<i32: 1>} : vector<1x128xi32>
    %c128_i32 = arith.constant 128 : i32
    %45 = arith.muli %arg2, %c128_i32 : i32
    %46 = vector.broadcast %45 : i32 to vector<1x128xi32>
    %47 = arith.addi %44, %46 : vector<1x128xi32>
    %c16_i32 = arith.constant 16 : i32
    %48 = vector.broadcast %c16_i32 : i32 to vector<1x128xi32>
    %49 = arith.cmpi slt, %47, %48 : vector<1x128xi32>
    %cst_24 = arith.constant 0.000000e+00 : f32
    %cst_25 = arith.constant -1.000000e+30 : f32
    %50 = vector.broadcast %cst_24 : f32 to vector<1x128xf32>
    %51 = vector.broadcast %cst_25 : f32 to vector<1x128xf32>
    %52 = arith.select %49, %50, %51 : vector<1x128xi1>, vector<1x128xf32>
    %53 = vector.broadcast %52 : vector<1x128xf32> to vector<8x128xf32>
    %54 = arith.addf %43, %53 : vector<8x128xf32>
    %c0_26 = arith.constant 0 : index
    %c0_27 = arith.constant 0 : index
    %55 = vector.load %arg19[%c0_26, %c0_27] : memref<8x1xf32, #tpu.memory_space<vmem>>, vector<8x1xf32>
    %cst_28 = arith.constant dense<0xFF800000> : vector<8xf32>
    %56 = vector.multi_reduction <maximumf>, %54, %cst_28 [1] : vector<8x128xf32> to vector<8xf32>
    %57 = vector.shape_cast %56 : vector<8xf32> to vector<8x1xf32>
    %58 = arith.maximumf %55, %57 : vector<8x1xf32>
    %c0_29 = arith.constant 0 : index
    %c0_30 = arith.constant 0 : index
    %59 = vector.load %arg19[%c0_29, %c0_30] : memref<8x1xf32, #tpu.memory_space<vmem>>, vector<8x1xf32>
    %60 = arith.subf %59, %58 : vector<8x1xf32>
    %61 = math.exp %60 : vector<8x1xf32>
    %62 = vector.broadcast %58 : vector<8x1xf32> to vector<8x128xf32>
    %63 = arith.subf %54, %62 : vector<8x128xf32>
    %64 = math.exp %63 : vector<8x128xf32>
    %c0_31 = arith.constant 0 : index
    %c0_32 = arith.constant 0 : index
    %65 = vector.load %arg20[%c0_31, %c0_32] : memref<8x1xf32, #tpu.memory_space<vmem>>, vector<8x1xf32>
    %66 = arith.mulf %61, %65 : vector<8x1xf32>
    %cst_33 = arith.constant dense<0.000000e+00> : vector<8xf32>
    %67 = vector.multi_reduction <add>, %64, %cst_33 [1] : vector<8x128xf32> to vector<8xf32>
    %68 = vector.shape_cast %67 : vector<8xf32> to vector<8x1xf32>
    %69 = arith.addf %66, %68 : vector<8x1xf32>
    %c0_34 = arith.constant 0 : index
    %c0_35 = arith.constant 0 : index
    %70 = vector.load %arg20[%c0_34, %c0_35] : memref<8x1xf32, #tpu.memory_space<vmem>>, vector<8x1xf32>
    tpu.vector_store %arg20[%c0_34, %c0_35], %69 {strides = array<i32>} : memref<8x1xf32, #tpu.memory_space<vmem>>, vector<8x1xf32>,
    %c0_36 = arith.constant 0 : index
    %c0_37 = arith.constant 0 : index
    %71 = vector.load %arg21[%c0_36, %c0_37] : memref<8x128xf32, #tpu.memory_space<vmem>>, vector<8x128xf32>
    %72 = vector.broadcast %61 : vector<8x1xf32> to vector<8x128xf32>
    %73 = arith.mulf %72, %71 : vector<8x128xf32>
    %74 = arith.truncf %64 : vector<8x128xf32> to vector<8x128xbf16>
    %75 = arith.truncf %40 : vector<128x128xf32> to vector<128x128xbf16>
    %cst_38 = arith.constant dense<0.000000e+00> : vector<8x128xf32>
    %76 = tpu.matmul %74, %75, %cst_38 {dimension_numbers = #tpu.dot_dimension_numbers<[1], [0], [0], [1], [0, 0, 1, 1], [], []>} : vector<8x128xbf16>, vector<128x128xbf16>, vector<8x128xf32> -> vector<8x128xf32>
    %77 = arith.addf %73, %76 : vector<8x128xf32>
    %c0_39 = arith.constant 0 : index
    %c0_40 = arith.constant 0 : index
    %78 = vector.load %arg21[%c0_39, %c0_40] : memref<8x128xf32, #tpu.memory_space<vmem>>, vector<8x128xf32>
    tpu.vector_store %arg21[%c0_39, %c0_40], %77 {strides = array<i32>} : memref<8x128xf32, #tpu.memory_space<vmem>>, vector<8x128xf32>,
    %c0_41 = arith.constant 0 : index
    %c0_42 = arith.constant 0 : index
    %79 = vector.load %arg19[%c0_41, %c0_42] : memref<8x1xf32, #tpu.memory_space<vmem>>, vector<8x1xf32>
    tpu.vector_store %arg19[%c0_41, %c0_42], %58 {strides = array<i32>} : memref<8x1xf32, #tpu.memory_space<vmem>>, vector<8x1xf32>,
    %c0_i32_43 = arith.constant 0 : i32
    %80 = arith.cmpi eq, %arg2, %c0_i32_43 : i32
    %81 = arith.extui %80 : i1 to i32
    %c0_i32_44 = arith.constant 0 : i32
    %82 = arith.cmpi ne, %81, %c0_i32_44 : i32
    scf.if %82 {
      %c0_45 = arith.constant 0 : index
      %c0_46 = arith.constant 0 : index
      %83 = vector.load %arg21[%c0_45, %c0_46] : memref<8x128xf32, #tpu.memory_space<vmem>>, vector<8x128xf32>
      %c0_47 = arith.constant 0 : index
      %c0_48 = arith.constant 0 : index
      %84 = vector.load %arg20[%c0_47, %c0_48] : memref<8x1xf32, #tpu.memory_space<vmem>>, vector<8x1xf32>
      %85 = tpu.reciprocal %84 : vector<8x1xf32> -> vector<8x1xf32>
      %86 = vector.broadcast %85 : vector<8x1xf32> to vector<8x128xf32>
      %87 = arith.mulf %83, %86 : vector<8x128xf32>
      %88 = arith.truncf %87 : vector<8x128xf32> to vector<8x128xbf16>
      %c0_49 = arith.constant 0 : index
      %c0_50 = arith.constant 0 : index
      %89 = vector.load %arg15[%c0_49, %c0_50] : memref<128x128xbf16, #tpu.memory_space<vmem>>, vector<128x128xbf16>
      %cst_51 = arith.constant dense<0.000000e+00> : vector<8x128xf32>
      %90 = tpu.matmul %88, %89, %cst_51 {dimension_numbers = #tpu.dot_dimension_numbers<[1], [0], [0], [1], [0, 0, 1, 1], [], []>} : vector<8x128xbf16>, vector<128x128xbf16>, vector<8x128xf32> -> vector<8x128xf32>
      %c0_52 = arith.constant 0 : index
      %c0_53 = arith.constant 0 : index
      %91 = vector.load %arg16[%c0_52, %c0_53] : memref<1x128xf32, #tpu.memory_space<vmem>>, vector<1x128xf32>
      %92 = vector.broadcast %91 : vector<1x128xf32> to vector<8x128xf32>
      %93 = arith.addf %90, %92 : vector<8x128xf32>
      %c0_54 = arith.constant 0 : index
      %c0_55 = arith.constant 0 : index
      %c0_56 = arith.constant 0 : index
      %94 = vector.load %arg3[%c0_54, %c0_55, %c0_56] : memref<1x8x128xf32, #tpu.memory_space<vmem>>, vector<1x8x128xf32>
      %95 = vector.shape_cast %94 : vector<1x8x128xf32> to vector<8x128xf32>
      %96 = arith.addf %95, %93 : vector<8x128xf32>
      %c0_57 = arith.constant 0 : index
      %c0_58 = arith.constant 0 : index
      %c0_59 = arith.constant 0 : index
      %97 = vector.load %arg17[%c0_57, %c0_58, %c0_59] : memref<1x8x128xf32, #tpu.memory_space<vmem>>, vector<1x8x128xf32>
      %98 = vector.shape_cast %97 : vector<1x8x128xf32> to vector<8x128xf32>
      %99 = vector.shape_cast %96 : vector<8x128xf32> to vector<1x8x128xf32>
      tpu.vector_store %arg17[%c0_57, %c0_58, %c0_59], %99 {strides = array<i32>} : memref<1x8x128xf32, #tpu.memory_space<vmem>>, vector<1x8x128xf32>,
    } else {
    }
    return
  }
  func.func @transform_0(%arg0: i32, %arg1: i32, %arg2: i32) -> (i32, i32, i32) {
    %c0_i32 = arith.constant 0 : i32
    %c0_i32_0 = arith.constant 0 : i32
    return %arg0, %arg1, %c0_i32 : i32, i32, i32
  }
  func.func @transform_1(%arg0: i32, %arg1: i32, %arg2: i32) -> (i32, i32, i32) {
    %c0_i32 = arith.constant 0 : i32
    %c0_i32_0 = arith.constant 0 : i32
    return %arg0, %arg2, %c0_i32 : i32, i32, i32
  }
  func.func @transform_2(%arg0: i32, %arg1: i32, %arg2: i32) -> (i32, i32) {
    %c0_i32 = arith.constant 0 : i32
    %c0_i32_0 = arith.constant 0 : i32
    %c0_i32_1 = arith.constant 0 : i32
    return %c0_i32, %c0_i32_0 : i32, i32
  }
  func.func @transform_3(%arg0: i32, %arg1: i32, %arg2: i32) -> (i32, i32) {
    %c0_i32 = arith.constant 0 : i32
    %c0_i32_0 = arith.constant 0 : i32
    %c0_i32_1 = arith.constant 0 : i32
    return %c0_i32, %c0_i32_0 : i32, i32
  }
  func.func @transform_4(%arg0: i32, %arg1: i32, %arg2: i32) -> (i32, i32) {
    %c0_i32 = arith.constant 0 : i32
    %c0_i32_0 = arith.constant 0 : i32
    %c0_i32_1 = arith.constant 0 : i32
    return %c0_i32, %c0_i32_0 : i32, i32
  }
  func.func @transform_5(%arg0: i32, %arg1: i32, %arg2: i32) -> (i32, i32) {
    %c0_i32 = arith.constant 0 : i32
    %c0_i32_0 = arith.constant 0 : i32
    %c0_i32_1 = arith.constant 0 : i32
    return %c0_i32, %c0_i32_0 : i32, i32
  }
  func.func @transform_6(%arg0: i32, %arg1: i32, %arg2: i32) -> (i32, i32) {
    %c0_i32 = arith.constant 0 : i32
    %c0_i32_0 = arith.constant 0 : i32
    %c0_i32_1 = arith.constant 0 : i32
    return %c0_i32, %c0_i32_0 : i32, i32
  }
  func.func @transform_7(%arg0: i32, %arg1: i32, %arg2: i32) -> (i32, i32) {
    %c0_i32 = arith.constant 0 : i32
    %c0_i32_0 = arith.constant 0 : i32
    %c0_i32_1 = arith.constant 0 : i32
    return %c0_i32, %c0_i32_0 : i32, i32
  }
  func.func @transform_8(%arg0: i32, %arg1: i32, %arg2: i32) -> (i32, i32) {
    %c0_i32 = arith.constant 0 : i32
    %c0_i32_0 = arith.constant 0 : i32
    %c0_i32_1 = arith.constant 0 : i32
    return %c0_i32, %c0_i32_0 : i32, i32
  }
  func.func @transform_9(%arg0: i32, %arg1: i32, %arg2: i32) -> (i32, i32) {
    %c0_i32 = arith.constant 0 : i32
    %c0_i32_0 = arith.constant 0 : i32
    %c0_i32_1 = arith.constant 0 : i32
    return %c0_i32, %c0_i32_0 : i32, i32
  }
  func.func @transform_10(%arg0: i32, %arg1: i32, %arg2: i32) -> (i32, i32) {
    %c0_i32 = arith.constant 0 : i32
    %c0_i32_0 = arith.constant 0 : i32
    %c0_i32_1 = arith.constant 0 : i32
    return %c0_i32, %c0_i32_0 : i32, i32
  }
  func.func @transform_11(%arg0: i32, %arg1: i32, %arg2: i32) -> (i32, i32) {
    %c0_i32 = arith.constant 0 : i32
    %c0_i32_0 = arith.constant 0 : i32
    %c0_i32_1 = arith.constant 0 : i32
    return %c0_i32, %c0_i32_0 : i32, i32
  }
  func.func @transform_12(%arg0: i32, %arg1: i32, %arg2: i32) -> (i32, i32) {
    %c0_i32 = arith.constant 0 : i32
    %c0_i32_0 = arith.constant 0 : i32
    %c0_i32_1 = arith.constant 0 : i32
    return %c0_i32, %c0_i32_0 : i32, i32
  }
  func.func @transform_13(%arg0: i32, %arg1: i32, %arg2: i32) -> (i32, i32) {
    %c0_i32 = arith.constant 0 : i32
    %c0_i32_0 = arith.constant 0 : i32
    %c0_i32_1 = arith.constant 0 : i32
    return %c0_i32, %c0_i32_0 : i32, i32
  }
  func.func @transform_14(%arg0: i32, %arg1: i32, %arg2: i32) -> (i32, i32, i32) {
    %c0_i32 = arith.constant 0 : i32
    %c0_i32_0 = arith.constant 0 : i32
    return %arg0, %arg1, %c0_i32 : i32, i32, i32
  }
}

module attributes {stable_mosaic.version = 11 : i64} {
  func.func @kernel(%arg0: i32, %arg1: i32, %arg2: i32, %arg3: memref<1x8x128xf32, #tpu.memory_space<vmem>>, %arg4: memref<1x128x128xbf16, #tpu.memory_space<vmem>>, %arg5: memref<1x128xf32, #tpu.memory_space<vmem>>, %arg6: memref<1x128xf32, #tpu.memory_space<vmem>>, %arg7: memref<1x128xf32, #tpu.memory_space<vmem>>, %arg8: memref<1x128xf32, #tpu.memory_space<vmem>>, %arg9: memref<128x128xbf16, #tpu.memory_space<vmem>>, %arg10: memref<1x128xf32, #tpu.memory_space<vmem>>, %arg11: memref<128x128xbf16, #tpu.memory_space<vmem>>, %arg12: memref<1x128xf32, #tpu.memory_space<vmem>>, %arg13: memref<128x128xbf16, #tpu.memory_space<vmem>>, %arg14: memref<1x128xf32, #tpu.memory_space<vmem>>, %arg15: memref<128x128xbf16, #tpu.memory_space<vmem>>, %arg16: memref<1x128xf32, #tpu.memory_space<vmem>>, %arg17: memref<1x8x128xf32, #tpu.memory_space<vmem>>, %arg18: memref<8x128xbf16, #tpu.memory_space<vmem>>, %arg19: memref<8x1xf32, #tpu.memory_space<vmem>>, %arg20: memref<8x1xf32, #tpu.memory_space<vmem>>, %arg21: memref<8x128xf32, #tpu.memory_space<vmem>>) attributes {dimension_semantics = [#tpu.dimension_semantics<parallel>, #tpu.dimension_semantics<parallel>, #tpu.dimension_semantics<arbitrary>], iteration_bounds = array<i64: 2, 1, 1>, scalar_prefetch = 0 : i64, scratch_operands = 4 : i64, tpu.core_type = #tpu.core_type<tc>, window_params = [{transform_indices = @transform_0, window_bounds = array<i64: 1, 8, 128>}, {transform_indices = @transform_1, window_bounds = array<i64: 1, 128, 128>}, {pipeline_mode = #tpu.pipeline_mode<synchronous>, transform_indices = @transform_2, window_bounds = array<i64: 1, 128>}, {pipeline_mode = #tpu.pipeline_mode<synchronous>, transform_indices = @transform_3, window_bounds = array<i64: 1, 128>}, {pipeline_mode = #tpu.pipeline_mode<synchronous>, transform_indices = @transform_4, window_bounds = array<i64: 1, 128>}, {pipeline_mode = #tpu.pipeline_mode<synchronous>, transform_indices = @transform_5, window_bounds = array<i64: 1, 128>}, {pipeline_mode = #tpu.pipeline_mode<synchronous>, transform_indices = @transform_6, window_bounds = array<i64: 128, 128>}, {pipeline_mode = #tpu.pipeline_mode<synchronous>, transform_indices = @transform_7, window_bounds = array<i64: 1, 128>}, {pipeline_mode = #tpu.pipeline_mode<synchronous>, transform_indices = @transform_8, window_bounds = array<i64: 128, 128>}, {pipeline_mode = #tpu.pipeline_mode<synchronous>, transform_indices = @transform_9, window_bounds = array<i64: 1, 128>}, {pipeline_mode = #tpu.pipeline_mode<synchronous>, transform_indices = @transform_10, window_bounds = array<i64: 128, 128>}, {pipeline_mode = #tpu.pipeline_mode<synchronous>, transform_indices = @transform_11, window_bounds = array<i64: 1, 128>}, {pipeline_mode = #tpu.pipeline_mode<synchronous>, transform_indices = @transform_12, window_bounds = array<i64: 128, 128>}, {pipeline_mode = #tpu.pipeline_mode<synchronous>, transform_indices = @transform_13, window_bounds = array<i64: 1, 128>}, {transform_indices = @transform_14, window_bounds = array<i64: 1, 8, 128>}]} {
    %c0_i32 = arith.constant 0 : i32
    %0 = arith.cmpi eq, %arg2, %c0_i32 : i32
    %1 = arith.extui %0 : i1 to i32
    %c0_i32_0 = arith.constant 0 : i32
    %2 = arith.cmpi ne, %1, %c0_i32_0 : i32
    scf.if %2 {
      %c0_45 = arith.constant 0 : index
      %c0_46 = arith.constant 0 : index
      %c0_47 = arith.constant 0 : index
      %83 = vector.load %arg3[%c0_45, %c0_46, %c0_47] : memref<1x8x128xf32, #tpu.memory_space<vmem>>, vector<1x8x128xf32>
      %84 = vector.shape_cast %83 : vector<1x8x128xf32> to vector<8x128xf32>
      %c0_48 = arith.constant 0 : index
      %c0_49 = arith.constant 0 : index
      %85 = vector.load %arg5[%c0_48, %c0_49] : memref<1x128xf32, #tpu.memory_space<vmem>>, vector<1x128xf32>
      %c0_50 = arith.constant 0 : index
      %c0_51 = arith.constant 0 : index
      %86 = vector.load %arg6[%c0_50, %c0_51] : memref<1x128xf32, #tpu.memory_space<vmem>>, vector<1x128xf32>
      %cst_52 = arith.constant dense<0.000000e+00> : vector<8xf32>
      %87 = vector.multi_reduction <add>, %84, %cst_52 [1] : vector<8x128xf32> to vector<8xf32>
      %88 = vector.shape_cast %87 : vector<8xf32> to vector<8x1xf32>
      %cst_53 = arith.constant 3.125000e-02 : f32
      %89 = vector.broadcast %cst_53 : f32 to vector<8x1xf32>
      %90 = arith.mulf %88, %89 : vector<8x1xf32>
      %91 = arith.mulf %84, %84 : vector<8x128xf32>
      %cst_54 = arith.constant dense<0.000000e+00> : vector<8xf32>
      %92 = vector.multi_reduction <add>, %91, %cst_54 [1] : vector<8x128xf32> to vector<8xf32>
      %93 = vector.shape_cast %92 : vector<8xf32> to vector<8x1xf32>
      %cst_55 = arith.constant 3.125000e-02 : f32
      %94 = vector.broadcast %cst_55 : f32 to vector<8x1xf32>
      %95 = arith.mulf %93, %94 : vector<8x1xf32>
      %96 = arith.mulf %90, %90 : vector<8x1xf32>
      %97 = arith.subf %95, %96 : vector<8x1xf32>
      %98 = vector.broadcast %90 : vector<8x1xf32> to vector<8x128xf32>
      %99 = arith.subf %84, %98 : vector<8x128xf32>
      %cst_56 = arith.constant 9.99999974E-6 : f32
      %100 = vector.broadcast %cst_56 : f32 to vector<8x1xf32>
      %101 = arith.addf %97, %100 : vector<8x1xf32>
      %102 = math.rsqrt %101 : vector<8x1xf32>
      %103 = vector.broadcast %102 : vector<8x1xf32> to vector<8x128xf32>
      %104 = arith.mulf %99, %103 : vector<8x128xf32>
      %105 = vector.broadcast %85 : vector<1x128xf32> to vector<8x128xf32>
      %106 = arith.mulf %104, %105 : vector<8x128xf32>
      %107 = vector.broadcast %86 : vector<1x128xf32> to vector<8x128xf32>
      %108 = arith.addf %106, %107 : vector<8x128xf32>
      %109 = arith.truncf %108 : vector<8x128xf32> to vector<8x128xbf16>
      %c0_57 = arith.constant 0 : index
      %c0_58 = arith.constant 0 : index
      %110 = vector.load %arg9[%c0_57, %c0_58] : memref<128x128xbf16, #tpu.memory_space<vmem>>, vector<128x128xbf16>
      %cst_59 = arith.constant dense<0.000000e+00> : vector<8x128xf32>
      %111 = tpu.matmul %109, %110, %cst_59 {dimension_numbers = #tpu.dot_dimension_numbers<[1], [0], [0], [1], [0, 0, 1, 1], [], []>} : vector<8x128xbf16>, vector<128x128xbf16>, vector<8x128xf32> -> vector<8x128xf32>
      %c0_60 = arith.constant 0 : index
      %c0_61 = arith.constant 0 : index
      %112 = vector.load %arg10[%c0_60, %c0_61] : memref<1x128xf32, #tpu.memory_space<vmem>>, vector<1x128xf32>
      %113 = vector.broadcast %112 : vector<1x128xf32> to vector<8x128xf32>
      %114 = arith.addf %111, %113 : vector<8x128xf32>
      %cst_62 = arith.constant 0.176776692 : f32
      %115 = vector.broadcast %cst_62 : f32 to vector<8x128xf32>
      %116 = arith.mulf %114, %115 : vector<8x128xf32>
      %117 = arith.truncf %116 : vector<8x128xf32> to vector<8x128xbf16>
      %c0_63 = arith.constant 0 : index
      %c0_64 = arith.constant 0 : index
      %118 = vector.load %arg18[%c0_63, %c0_64] : memref<8x128xbf16, #tpu.memory_space<vmem>>, vector<8x128xbf16>
      tpu.vector_store %arg18[%c0_63, %c0_64], %117 {strides = array<i32>} : memref<8x128xbf16, #tpu.memory_space<vmem>>, vector<8x128xbf16>,
      %cst_65 = arith.constant -1.000000e+30 : f32
      %119 = vector.broadcast %cst_65 : f32 to vector<8x1xf32>
      %c0_66 = arith.constant 0 : index
      %c0_67 = arith.constant 0 : index
      %120 = vector.load %arg19[%c0_66, %c0_67] : memref<8x1xf32, #tpu.memory_space<vmem>>, vector<8x1xf32>
      tpu.vector_store %arg19[%c0_66, %c0_67], %119 {strides = array<i32>} : memref<8x1xf32, #tpu.memory_space<vmem>>, vector<8x1xf32>,
      %cst_68 = arith.constant 0.000000e+00 : f32
      %121 = vector.broadcast %cst_68 : f32 to vector<8x1xf32>
      %c0_69 = arith.constant 0 : index
      %c0_70 = arith.constant 0 : index
      %122 = vector.load %arg20[%c0_69, %c0_70] : memref<8x1xf32, #tpu.memory_space<vmem>>, vector<8x1xf32>
      tpu.vector_store %arg20[%c0_69, %c0_70], %121 {strides = array<i32>} : memref<8x1xf32, #tpu.memory_space<vmem>>, vector<8x1xf32>,
      %cst_71 = arith.constant 0.000000e+00 : f32
      %123 = vector.broadcast %cst_71 : f32 to vector<8x128xf32>
      %c0_72 = arith.constant 0 : index
      %c0_73 = arith.constant 0 : index
      %124 = vector.load %arg21[%c0_72, %c0_73] : memref<8x128xf32, #tpu.memory_space<vmem>>, vector<8x128xf32>
      tpu.vector_store %arg21[%c0_72, %c0_73], %123 {strides = array<i32>} : memref<8x128xf32, #tpu.memory_space<vmem>>, vector<8x128xf32>,
    } else {
    }
    %c0 = arith.constant 0 : index
    %c0_1 = arith.constant 0 : index
    %c0_2 = arith.constant 0 : index
    %3 = vector.load %arg4[%c0, %c0_1, %c0_2] : memref<1x128x128xbf16, #tpu.memory_space<vmem>>, vector<1x128x128xbf16>
    %4 = vector.shape_cast %3 : vector<1x128x128xbf16> to vector<128x128xbf16>
    %5 = arith.extf %4 : vector<128x128xbf16> to vector<128x128xf32>
    %c0_3 = arith.constant 0 : index
    %c0_4 = arith.constant 0 : index
    %6 = vector.load %arg7[%c0_3, %c0_4] : memref<1x128xf32, #tpu.memory_space<vmem>>, vector<1x128xf32>
    %c0_5 = arith.constant 0 : index
    %c0_6 = arith.constant 0 : index
    %7 = vector.load %arg8[%c0_5, %c0_6] : memref<1x128xf32, #tpu.memory_space<vmem>>, vector<1x128xf32>
    %cst = arith.constant dense<0.000000e+00> : vector<128xf32>
    %8 = vector.multi_reduction <add>, %5, %cst [1] : vector<128x128xf32> to vector<128xf32>
    %9 = vector.shape_cast %8 : vector<128xf32> to vector<128x1xf32>
    %cst_7 = arith.constant 3.125000e-02 : f32
    %10 = vector.broadcast %cst_7 : f32 to vector<128x1xf32>
    %11 = arith.mulf %9, %10 : vector<128x1xf32>
    %12 = arith.mulf %5, %5 : vector<128x128xf32>
    %cst_8 = arith.constant dense<0.000000e+00> : vector<128xf32>
    %13 = vector.multi_reduction <add>, %12, %cst_8 [1] : vector<128x128xf32> to vector<128xf32>
    %14 = vector.shape_cast %13 : vector<128xf32> to vector<128x1xf32>
    %cst_9 = arith.constant 3.125000e-02 : f32
    %15 = vector.broadcast %cst_9 : f32 to vector<128x1xf32>
    %16 = arith.mulf %14, %15 : vector<128x1xf32>
    %17 = arith.mulf %11, %11 : vector<128x1xf32>
    %18 = arith.subf %16, %17 : vector<128x1xf32>
    %19 = vector.broadcast %11 : vector<128x1xf32> to vector<128x128xf32>
    %20 = arith.subf %5, %19 : vector<128x128xf32>
    %cst_10 = arith.constant 9.99999974E-6 : f32
    %21 = vector.broadcast %cst_10 : f32 to vector<128x1xf32>
    %22 = arith.addf %18, %21 : vector<128x1xf32>
    %23 = math.rsqrt %22 : vector<128x1xf32>
    %24 = vector.broadcast %23 : vector<128x1xf32> to vector<128x128xf32>
    %25 = arith.mulf %20, %24 : vector<128x128xf32>
    %26 = vector.broadcast %6 : vector<1x128xf32> to vector<128x128xf32>
    %27 = arith.mulf %25, %26 : vector<128x128xf32>
    %28 = vector.broadcast %7 : vector<1x128xf32> to vector<128x128xf32>
    %29 = arith.addf %27, %28 : vector<128x128xf32>
    %30 = arith.truncf %29 : vector<128x128xf32> to vector<128x128xbf16>
    %c0_11 = arith.constant 0 : index
    %c0_12 = arith.constant 0 : index
    %31 = vector.load %arg11[%c0_11, %c0_12] : memref<128x128xbf16, #tpu.memory_space<vmem>>, vector<128x128xbf16>
    %cst_13 = arith.constant dense<0.000000e+00> : vector<128x128xf32>
    %32 = tpu.matmul %30, %31, %cst_13 {dimension_numbers = #tpu.dot_dimension_numbers<[1], [0], [0], [1], [0, 0, 1, 1], [], []>} : vector<128x128xbf16>, vector<128x128xbf16>, vector<128x128xf32> -> vector<128x128xf32>
    %c0_14 = arith.constant 0 : index
    %c0_15 = arith.constant 0 : index
    %33 = vector.load %arg12[%c0_14, %c0_15] : memref<1x128xf32, #tpu.memory_space<vmem>>, vector<1x128xf32>
    %34 = vector.broadcast %33 : vector<1x128xf32> to vector<128x128xf32>
    %35 = arith.addf %32, %34 : vector<128x128xf32>
    %c0_16 = arith.constant 0 : index
    %c0_17 = arith.constant 0 : index
    %36 = vector.load %arg13[%c0_16, %c0_17] : memref<128x128xbf16, #tpu.memory_space<vmem>>, vector<128x128xbf16>
    %cst_18 = arith.constant dense<0.000000e+00> : vector<128x128xf32>
    %37 = tpu.matmul %30, %36, %cst_18 {dimension_numbers = #tpu.dot_dimension_numbers<[1], [0], [0], [1], [0, 0, 1, 1], [], []>} : vector<128x128xbf16>, vector<128x128xbf16>, vector<128x128xf32> -> vector<128x128xf32>
    %c0_19 = arith.constant 0 : index
    %c0_20 = arith.constant 0 : index
    %38 = vector.load %arg14[%c0_19, %c0_20] : memref<1x128xf32, #tpu.memory_space<vmem>>, vector<1x128xf32>
    %39 = vector.broadcast %38 : vector<1x128xf32> to vector<128x128xf32>
    %40 = arith.addf %37, %39 : vector<128x128xf32>
    %c0_21 = arith.constant 0 : index
    %c0_22 = arith.constant 0 : index
    %41 = vector.load %arg18[%c0_21, %c0_22] : memref<8x128xbf16, #tpu.memory_space<vmem>>, vector<8x128xbf16>
    %42 = arith.truncf %35 : vector<128x128xf32> to vector<128x128xbf16>
    %cst_23 = arith.constant dense<0.000000e+00> : vector<8x128xf32>
    %43 = tpu.matmul %41, %42, %cst_23 {dimension_numbers = #tpu.dot_dimension_numbers<[1], [1], [0], [0], [0, 0, 1, 0], [], []>} : vector<8x128xbf16>, vector<128x128xbf16>, vector<8x128xf32> -> vector<8x128xf32>
    %44 = tpu.iota {dimensions = array<i32: 1>} : vector<1x128xi32>
    %c128_i32 = arith.constant 128 : i32
    %45 = arith.muli %arg2, %c128_i32 : i32
    %46 = vector.broadcast %45 : i32 to vector<1x128xi32>
    %47 = arith.addi %44, %46 : vector<1x128xi32>
    %c16_i32 = arith.constant 16 : i32
    %48 = vector.broadcast %c16_i32 : i32 to vector<1x128xi32>
    %49 = arith.cmpi slt, %47, %48 : vector<1x128xi32>
    %cst_24 = arith.constant 0.000000e+00 : f32
    %cst_25 = arith.constant -1.000000e+30 : f32
    %50 = vector.broadcast %cst_24 : f32 to vector<1x128xf32>
    %51 = vector.broadcast %cst_25 : f32 to vector<1x128xf32>
    %52 = arith.select %49, %50, %51 : vector<1x128xi1>, vector<1x128xf32>
    %53 = vector.broadcast %52 : vector<1x128xf32> to vector<8x128xf32>
    %54 = arith.addf %43, %53 : vector<8x128xf32>
    %c0_26 = arith.constant 0 : index
    %c0_27 = arith.constant 0 : index
    %55 = vector.load %arg19[%c0_26, %c0_27] : memref<8x1xf32, #tpu.memory_space<vmem>>, vector<8x1xf32>
    %cst_28 = arith.constant dense<0xFF800000> : vector<8xf32>
    %56 = vector.multi_reduction <maximumf>, %54, %cst_28 [1] : vector<8x128xf32> to vector<8xf32>
    %57 = vector.shape_cast %56 : vector<8xf32> to vector<8x1xf32>
    %58 = arith.maximumf %55, %57 : vector<8x1xf32>
    %c0_29 = arith.constant 0 : index
    %c0_30 = arith.constant 0 : index
    %59 = vector.load %arg19[%c0_29, %c0_30] : memref<8x1xf32, #tpu.memory_space<vmem>>, vector<8x1xf32>
    %60 = arith.subf %59, %58 : vector<8x1xf32>
    %61 = math.exp %60 : vector<8x1xf32>
    %62 = vector.broadcast %58 : vector<8x1xf32> to vector<8x128xf32>
    %63 = arith.subf %54, %62 : vector<8x128xf32>
    %64 = math.exp %63 : vector<8x128xf32>
    %c0_31 = arith.constant 0 : index
    %c0_32 = arith.constant 0 : index
    %65 = vector.load %arg20[%c0_31, %c0_32] : memref<8x1xf32, #tpu.memory_space<vmem>>, vector<8x1xf32>
    %66 = arith.mulf %61, %65 : vector<8x1xf32>
    %cst_33 = arith.constant dense<0.000000e+00> : vector<8xf32>
    %67 = vector.multi_reduction <add>, %64, %cst_33 [1] : vector<8x128xf32> to vector<8xf32>
    %68 = vector.shape_cast %67 : vector<8xf32> to vector<8x1xf32>
    %69 = arith.addf %66, %68 : vector<8x1xf32>
    %c0_34 = arith.constant 0 : index
    %c0_35 = arith.constant 0 : index
    %70 = vector.load %arg20[%c0_34, %c0_35] : memref<8x1xf32, #tpu.memory_space<vmem>>, vector<8x1xf32>
    tpu.vector_store %arg20[%c0_34, %c0_35], %69 {strides = array<i32>} : memref<8x1xf32, #tpu.memory_space<vmem>>, vector<8x1xf32>,
    %c0_36 = arith.constant 0 : index
    %c0_37 = arith.constant 0 : index
    %71 = vector.load %arg21[%c0_36, %c0_37] : memref<8x128xf32, #tpu.memory_space<vmem>>, vector<8x128xf32>
    %72 = vector.broadcast %61 : vector<8x1xf32> to vector<8x128xf32>
    %73 = arith.mulf %72, %71 : vector<8x128xf32>
    %74 = arith.truncf %64 : vector<8x128xf32> to vector<8x128xbf16>
    %75 = arith.truncf %40 : vector<128x128xf32> to vector<128x128xbf16>
    %cst_38 = arith.constant dense<0.000000e+00> : vector<8x128xf32>
    %76 = tpu.matmul %74, %75, %cst_38 {dimension_numbers = #tpu.dot_dimension_numbers<[1], [0], [0], [1], [0, 0, 1, 1], [], []>} : vector<8x128xbf16>, vector<128x128xbf16>, vector<8x128xf32> -> vector<8x128xf32>
    %77 = arith.addf %73, %76 : vector<8x128xf32>
    %c0_39 = arith.constant 0 : index
    %c0_40 = arith.constant 0 : index
    %78 = vector.load %arg21[%c0_39, %c0_40] : memref<8x128xf32, #tpu.memory_space<vmem>>, vector<8x128xf32>
    tpu.vector_store %arg21[%c0_39, %c0_40], %77 {strides = array<i32>} : memref<8x128xf32, #tpu.memory_space<vmem>>, vector<8x128xf32>,
    %c0_41 = arith.constant 0 : index
    %c0_42 = arith.constant 0 : index
    %79 = vector.load %arg19[%c0_41, %c0_42] : memref<8x1xf32, #tpu.memory_space<vmem>>, vector<8x1xf32>
    tpu.vector_store %arg19[%c0_41, %c0_42], %58 {strides = array<i32>} : memref<8x1xf32, #tpu.memory_space<vmem>>, vector<8x1xf32>,
    %c0_i32_43 = arith.constant 0 : i32
    %80 = arith.cmpi eq, %arg2, %c0_i32_43 : i32
    %81 = arith.extui %80 : i1 to i32
    %c0_i32_44 = arith.constant 0 : i32
    %82 = arith.cmpi ne, %81, %c0_i32_44 : i32
    scf.if %82 {
      %c0_45 = arith.constant 0 : index
      %c0_46 = arith.constant 0 : index
      %83 = vector.load %arg21[%c0_45, %c0_46] : memref<8x128xf32, #tpu.memory_space<vmem>>, vector<8x128xf32>
      %c0_47 = arith.constant 0 : index
      %c0_48 = arith.constant 0 : index
      %84 = vector.load %arg20[%c0_47, %c0_48] : memref<8x1xf32, #tpu.memory_space<vmem>>, vector<8x1xf32>
      %85 = tpu.reciprocal %84 : vector<8x1xf32> -> vector<8x1xf32>
      %86 = vector.broadcast %85 : vector<8x1xf32> to vector<8x128xf32>
      %87 = arith.mulf %83, %86 : vector<8x128xf32>
      %88 = arith.truncf %87 : vector<8x128xf32> to vector<8x128xbf16>
      %c0_49 = arith.constant 0 : index
      %c0_50 = arith.constant 0 : index
      %89 = vector.load %arg15[%c0_49, %c0_50] : memref<128x128xbf16, #tpu.memory_space<vmem>>, vector<128x128xbf16>
      %cst_51 = arith.constant dense<0.000000e+00> : vector<8x128xf32>
      %90 = tpu.matmul %88, %89, %cst_51 {dimension_numbers = #tpu.dot_dimension_numbers<[1], [0], [0], [1], [0, 0, 1, 1], [], []>} : vector<8x128xbf16>, vector<128x128xbf16>, vector<8x128xf32> -> vector<8x128xf32>
      %c0_52 = arith.constant 0 : index
      %c0_53 = arith.constant 0 : index
      %91 = vector.load %arg16[%c0_52, %c0_53] : memref<1x128xf32, #tpu.memory_space<vmem>>, vector<1x128xf32>
      %92 = vector.broadcast %91 : vector<1x128xf32> to vector<8x128xf32>
      %93 = arith.addf %90, %92 : vector<8x128xf32>
      %c0_54 = arith.constant 0 : index
      %c0_55 = arith.constant 0 : index
      %c0_56 = arith.constant 0 : index
      %94 = vector.load %arg3[%c0_54, %c0_55, %c0_56] : memref<1x8x128xf32, #tpu.memory_space<vmem>>, vector<1x8x128xf32>
      %95 = vector.shape_cast %94 : vector<1x8x128xf32> to vector<8x128xf32>
      %96 = arith.addf %95, %93 : vector<8x128xf32>
      %c0_57 = arith.constant 0 : index
      %c0_58 = arith.constant 0 : index
      %c0_59 = arith.constant 0 : index
      %97 = vector.load %arg17[%c0_57, %c0_58, %c0_59] : memref<1x8x128xf32, #tpu.memory_space<vmem>>, vector<1x8x128xf32>
      %98 = vector.shape_cast %97 : vector<1x8x128xf32> to vector<8x128xf32>
      %99 = vector.shape_cast %96 : vector<8x128xf32> to vector<1x8x128xf32>
      tpu.vector_store %arg17[%c0_57, %c0_58, %c0_59], %99 {strides = array<i32>} : memref<1x8x128xf32, #tpu.memory_space<vmem>>, vector<1x8x128xf32>,
    } else {
    }
    return
  }
  func.func @transform_0(%arg0: i32, %arg1: i32, %arg2: i32) -> (i32, i32, i32) {
    %c0_i32 = arith.constant 0 : i32
    %c0_i32_0 = arith.constant 0 : i32
    return %arg0, %arg1, %c0_i32 : i32, i32, i32
  }
  func.func @transform_1(%arg0: i32, %arg1: i32, %arg2: i32) -> (i32, i32, i32) {
    %c0_i32 = arith.constant 0 : i32
    %c0_i32_0 = arith.constant 0 : i32
    return %arg0, %arg2, %c0_i32 : i32, i32, i32
  }
  func.func @transform_2(%arg0: i32, %arg1: i32, %arg2: i32) -> (i32, i32) {
    %c0_i32 = arith.constant 0 : i32
    %c0_i32_0 = arith.constant 0 : i32
    %c0_i32_1 = arith.constant 0 : i32
    return %c0_i32, %c0_i32_0 : i32, i32
  }
  func.func @transform_3(%arg0: i32, %arg1: i32, %arg2: i32) -> (i32, i32) {
    %c0_i32 = arith.constant 0 : i32
    %c0_i32_0 = arith.constant 0 : i32
    %c0_i32_1 = arith.constant 0 : i32
    return %c0_i32, %c0_i32_0 : i32, i32
  }
  func.func @transform_4(%arg0: i32, %arg1: i32, %arg2: i32) -> (i32, i32) {
    %c0_i32 = arith.constant 0 : i32
    %c0_i32_0 = arith.constant 0 : i32
    %c0_i32_1 = arith.constant 0 : i32
    return %c0_i32, %c0_i32_0 : i32, i32
  }
  func.func @transform_5(%arg0: i32, %arg1: i32, %arg2: i32) -> (i32, i32) {
    %c0_i32 = arith.constant 0 : i32
    %c0_i32_0 = arith.constant 0 : i32
    %c0_i32_1 = arith.constant 0 : i32
    return %c0_i32, %c0_i32_0 : i32, i32
  }
  func.func @transform_6(%arg0: i32, %arg1: i32, %arg2: i32) -> (i32, i32) {
    %c0_i32 = arith.constant 0 : i32
    %c0_i32_0 = arith.constant 0 : i32
    %c0_i32_1 = arith.constant 0 : i32
    return %c0_i32, %c0_i32_0 : i32, i32
  }
  func.func @transform_7(%arg0: i32, %arg1: i32, %arg2: i32) -> (i32, i32) {
    %c0_i32 = arith.constant 0 : i32
    %c0_i32_0 = arith.constant 0 : i32
    %c0_i32_1 = arith.constant 0 : i32
    return %c0_i32, %c0_i32_0 : i32, i32
  }
  func.func @transform_8(%arg0: i32, %arg1: i32, %arg2: i32) -> (i32, i32) {
    %c0_i32 = arith.constant 0 : i32
    %c0_i32_0 = arith.constant 0 : i32
    %c0_i32_1 = arith.constant 0 : i32
    return %c0_i32, %c0_i32_0 : i32, i32
  }
  func.func @transform_9(%arg0: i32, %arg1: i32, %arg2: i32) -> (i32, i32) {
    %c0_i32 = arith.constant 0 : i32
    %c0_i32_0 = arith.constant 0 : i32
    %c0_i32_1 = arith.constant 0 : i32
    return %c0_i32, %c0_i32_0 : i32, i32
  }
  func.func @transform_10(%arg0: i32, %arg1: i32, %arg2: i32) -> (i32, i32) {
    %c0_i32 = arith.constant 0 : i32
    %c0_i32_0 = arith.constant 0 : i32
    %c0_i32_1 = arith.constant 0 : i32
    return %c0_i32, %c0_i32_0 : i32, i32
  }
  func.func @transform_11(%arg0: i32, %arg1: i32, %arg2: i32) -> (i32, i32) {
    %c0_i32 = arith.constant 0 : i32
    %c0_i32_0 = arith.constant 0 : i32
    %c0_i32_1 = arith.constant 0 : i32
    return %c0_i32, %c0_i32_0 : i32, i32
  }
  func.func @transform_12(%arg0: i32, %arg1: i32, %arg2: i32) -> (i32, i32) {
    %c0_i32 = arith.constant 0 : i32
    %c0_i32_0 = arith.constant 0 : i32
    %c0_i32_1 = arith.constant 0 : i32
    return %c0_i32, %c0_i32_0 : i32, i32
  }
  func.func @transform_13(%arg0: i32, %arg1: i32, %arg2: i32) -> (i32, i32) {
    %c0_i32 = arith.constant 0 : i32
    %c0_i32_0 = arith.constant 0 : i32
    %c0_i32_1 = arith.constant 0 : i32
    return %c0_i32, %c0_i32_0 : i32, i32
  }
  func.func @transform_14(%arg0: i32, %arg1: i32, %arg2: i32) -> (i32, i32, i32) {
    %c0_i32 = arith.constant 0 : i32
    %c0_i32_0 = arith.constant 0 : i32
    return %arg0, %arg1, %c0_i32 : i32, i32, i32
  }
}

</mosaic_0001>

<bundles_post_ra>
// kernel: tpu_custom_call.1
= control target key start
LH: loop header
LB: loop body
LE: loop exit
PB: predicated region body
PF: predicated region fallthrough
CT: control target
= control target key end

     0   :  { %s3274_s0 = inlined_call_operand.hbm [shape: f32[2,8,128], index: 0, kind: input, shape index: {}]   ;;  %s3275_s1 = inlined_call_operand.hbm [shape: bf16[2,128,128], index: 1, kind: input, shape index: {}]   ;;  %s3276_s2 = inlined_call_operand.vmem [shape: f32[1,128], index: 2, kind: input, shape index: {}]   ;;  %s3277_s3 = inlined_call_operand.vmem [shape: f32[1,128], index: 3, kind: input, shape index: {}]   ;;  %s3278_s4 = inlined_call_operand.vmem [shape: f32[1,128], index: 4, kind: input, shape index: {}]   ;;  %s3279_s5 = inlined_call_operand.vmem [shape: f32[1,128], index: 5, kind: input, shape index: {}]   ;;  %s3280_s6 = inlined_call_operand.hbm [shape: bf16[128,128], index: 6, kind: input, shape index: {}]   ;;  %s3281_s7 = inlined_call_operand.vmem [shape: f32[1,128], index: 7, kind: input, shape index: {}]   ;;  %s3282_s8 = inlined_call_operand.hbm [shape: bf16[128,128], index: 8, kind: input, shape index: {}]   ;;  %s3283_s9 = inlined_call_operand.vmem [shape: f32[1,128], index: 9, kind: input, shape index: {}]   ;;  %s3284_s10 = inlined_call_operand.hbm [shape: bf16[128,128], index: 10, kind: input, shape index: {}]   ;;  %s3285_s11 = inlined_call_operand.vmem [shape: f32[1,128], index: 11, kind: input, shape index: {}]   ;;  %s3286_s12 = inlined_call_operand.hbm [shape: bf16[128,128], index: 12, kind: input, shape index: {}]   ;;  %s3287_s13 = inlined_call_operand.vmem [shape: f32[1,128], index: 13, kind: input, shape index: {}]   ;;  %s3288_s14 = inlined_call_operand.hbm [shape: f32[2,8,128], index: 14, kind: output, shape index: {}]  }
   0x1   :  { %3296 = sst [smem:[#allocation30_spill]] %s3274_s0 }
   0x2   :  { %3297 = sst [smem:[#allocation31_spill]] %s3280_s6 }
   0x3   :  { %3298 = sst [smem:[#allocation32_spill]] %s3282_s8 }
   0x4   :  { %3299 = sst [smem:[#allocation33_spill]] %s3284_s10 }
   0x5   :  { %3300 = sst [smem:[#allocation34_spill]] %s3286_s12 }
   0x6   :  { %3301 = sst [smem:[#allocation35_spill]] %s3287_s13 }
   0x7   :  { %3302 = sst [smem:[#allocation36_spill]] %s3288_s14 }
   0x8   :  { %19 = vsyncpa [#allocation7], 0 }
   0x9   :  { %21 = vsyncpa [#allocation7 + $0x1], 0 }
   0xa   :  { %22 = vsyncpa [#allocation10], 0 }
   0xb   :  { %24 = vsyncpa [#allocation10 + $0x1], 0 }
   0xc   :  { %25 = vsyncpa [#allocation13], 0 }
   0xd   :  { %26 = vsyncpa [#allocation16], 0 }
   0xe   :  { %27 = vsyncpa [#allocation8], 0 }
   0xf   :  { %29 = vsyncpa [#allocation8 + $0x1], 0  ;;  %s2671_s29 = smov 0   ;;  %s2673_s30 = smov 0  }
  0x10   :  { %s2675_s15 = smov 0   ;;  %s2677_s16 = smov 0  }
  0x11   :  { %s2679_s17 = smov 0   ;;  %s2681_s18 = smov 0  }
  0x12 LB: > { %3303 = sst [smem:[#allocation24_spill]] %s2561_s29  ;;  %s2702_s19 = sadd.s32 4294967295, %s2581_s18   ;;  %s2581_s18 = sphi %s2681_s18, %s35_s18   ;;  %s2577_s17 = sphi %s2679_s17, %s3335_s17   ;;  %s2573_s16 = sphi %s2677_s16, %s3334_s16   ;;  %s2569_s15 = sphi %s2675_s15, %s3330_s15   ;;  %s2565_s30 = sphi %s2673_s30, %s3333_s30   ;;  %s2561_s29 = sphi %s2671_s29, %s3332_s29  }
  0x13   : > { %3304 = sst [smem:[#allocation25_spill]] %s2569_s15  ;;  %p1822_p0 = scmp.ge.s32.totalorder %s2581_s18, 1 }
  0x14   : > { %3305 = sst [smem:[#allocation26_spill]] %s2573_s16  ;;  %p77_p1 = scmp.eq.s32.totalorder %s2702_s19, 0 }
  0x15   : > { %p395_p2 = scmp.lt.s32.totalorder %s2581_s18, 3  ;;  %s2583_s21 = smov [#allocation11]  }
  0x16   : > { %s419_s22 = sshll.u32 %s2583_s21, 4  ;;  %s2584_s24 = smov [#allocation12]   ;;  %s420_s22 = int_to_ptr.vmem [resolvable:$true] %s419_s22 }
  0x17   : > { %p2707_p3 = pnand %p1822_p0, %p395_p2  ;;  %s435_s25 = sshll.u32 %s2584_s24, 4  ;;  %s436_s25 = int_to_ptr.vmem [resolvable:$true] %s435_s25 }
  0x18   : > { %s2585_s26 = smov [#allocation14]   ;;  %s2336_s28 = scalar_lea.vmem %s420_s22, 1024 }
  0x19   : > { %p2159_p4 = pneg %p2707_p3  ;;  %s451_s27 = sshll.u32 %s2585_s26, 4  ;;  %s452_s27 = int_to_ptr.vmem [resolvable:$true] %s451_s27 }
  0x1a   : > { %p2337_p8 = scmp.ne.s32.totalorder %s420_s22, %s2336_s28  ;;  %p2344_p11 = scmp.lt.s32.totalorder %s420_s22, %s420_s22 }
  0x1b   : > { %p2716_p6 = pnand %p2159_p4, %p77_p1  ;;  %p2345_p12 = scmp.lt.s32.totalorder %s2336_s28, %s2336_s28 }
  0x1d   : > { %p2327_p7 = pneg %p2716_p6  ;;  %p2346_p13 = por %p2345_p12, %p2344_p11 }
  0x1f   : > { %p2339_p9 = pnand %p2337_p8, %p2327_p7 }
  0x21   : > { %p2340_p10 = pneg %p2339_p9 }
  0x23   : > { %p2347_p0 = pnand %p2346_p13, %p2340_p10 }
  0x25   : > { %2350 = shalt.err (!%p2347_p0)
}
  0x26   : > { %s3290_s21 = smov 64   ;;  %s3291_s24 = smov 4  }
  0x27   : > { %s3308_s6 = sld [smem:[#allocation31_spill]]  ;;  %s2362_s13 = scalar_lea.vmem %s436_s25, 1024 }
  0x28   : > { %p2363_p2 = scmp.ne.s32.totalorder %s436_s25, %s2362_s13  ;;  %p2370_p9 = scmp.lt.s32.totalorder %s436_s25, %s436_s25 }
  0x29   : > { %p2371_p10 = scmp.lt.s32.totalorder %s2362_s13, %s2362_s13 }
  0x2a   : > { %p2365_p4 = pnand %p2363_p2, %p2327_p7 }
  0x2b   : > { %p2372_p11 = por %p2371_p10, %p2370_p9 }
  0x2c   : > { %p2366_p8 = pneg %p2365_p4 }
  0x2d   : > { %2162 = dma.hbm_to_vmem [thread:$0]  (!%p2716_p6), %s3308_s6, 1024, %s420_s22, [#allocation10], %s3290_s21, %s3290_s21, %s3291_s24  }
  0x2e   : > { %p2373_p12 = pnand %p2372_p11, %p2366_p8 }
  0x30   : > { %2376 = shalt.err (!%p2373_p12)
}
  0x31   : > { %s3309_s8 = sld [smem:[#allocation32_spill]]  ;;  %s2388_s14 = scalar_lea.vmem %s452_s27, 1024 }
  0x32   : > { %p2389_p13 = scmp.ne.s32.totalorder %s452_s27, %s2388_s14  ;;  %p2396_p4 = scmp.lt.s32.totalorder %s452_s27, %s452_s27 }
  0x33   : > { %p2397_p8 = scmp.lt.s32.totalorder %s2388_s14, %s2388_s14 }
  0x34   : > { %p2391_p0 = pnand %p2389_p13, %p2327_p7 }
  0x35   : > { %p2398_p9 = por %p2397_p8, %p2396_p4 }
  0x36   : > { %p2392_p2 = pneg %p2391_p0 }
  0x37   : > { %2165 = dma.hbm_to_vmem [thread:$0]  (!%p2716_p6), %s3309_s8, 1024, %s436_s25, [#allocation13], %s3290_s21, %s3290_s21, %s3291_s24  }
  0x38   : > { %p2399_p10 = pnand %p2398_p9, %p2392_p2 }
  0x3a   : > { %2402 = shalt.err (!%p2399_p10)
}
  0x3b   : > { %s3310_s10 = sld [smem:[#allocation33_spill]]  ;;  %s2588_s22 = smov [#allocation15]  }
  0x3c   : > { %s467_s25 = sshll.u32 %s2588_s22, 4  ;;  %s468_s25 = int_to_ptr.vmem [resolvable:$true] %s467_s25 }
  0x3d   : > { %s2414_s26 = scalar_lea.vmem %s468_s25, 1024  ;;  %p2422_p0 = scmp.lt.s32.totalorder %s468_s25, %s468_s25 }
  0x3e   : > { %p2415_p11 = scmp.ne.s32.totalorder %s468_s25, %s2414_s26  ;;  %p2423_p2 = scmp.lt.s32.totalorder %s2414_s26, %s2414_s26 }
  0x40   : > { %p2417_p12 = pnand %p2415_p11, %p2327_p7  ;;  %p2424_p4 = por %p2423_p2, %p2422_p0 }
  0x41   : > { %2168 = dma.hbm_to_vmem [thread:$0]  (!%p2716_p6), %s3310_s10, 1024, %s452_s27, [#allocation13], %s3290_s21, %s3290_s21, %s3291_s24  }
  0x42   : > { %p2418_p13 = pneg %p2417_p12 }
  0x44   : > { %p2425_p8 = pnand %p2424_p4, %p2418_p13 }
  0x46   : > { %2428 = shalt.err (!%p2425_p8)
}
  0x47   : > { %s3311_s12 = sld [smem:[#allocation34_spill]]  ;;  %s1821_s23 = sadd.s32 4294967294, %s2581_s18  }
  0x48   : > { %s54_s14 = sadd.s32 1, %s2577_s17  ;;  %s63_s13 = sadd.s32 1, %s2569_s15 }
  0x49   : > { %p56_p7 = scmp.ge.s32.totalorder %s54_s14, 2  ;;  %p70_p9 = scmp.ne.s32.totalorder %s2569_s15, %s2565_s30 }
  0x4a   : > { %p71_p10 = scmp.eq.s32.totalorder %s2581_s18, 0  ;;  %p76_p12 = scmp.ne.s32.totalorder %s2565_s30, %s2561_s29 }
  0x4b   : > { %s3337_s14 = smov (%p56_p7, %s54_s14), 0  ;;  %p388_p4 = scmp.eq.s32.totalorder %s1821_s23, 1 }
  0x4c   : > { %3312 = sst [smem:[#allocation27_spill]] %s3337_s14  ;;  %p2774_p11 = por %p71_p10, %p70_p9 }
  0x4d   : > { %2171 = dma.hbm_to_vmem [thread:$0]  (!%p2716_p6), %s3311_s12, 1024, %s468_s25, [#allocation16], %s3290_s21, %s3290_s21, %s3291_s24  }
  0x4e   : > { %s58_s22 = ssub.s32 %s2577_s17, %s3337_s14  ;;  %p382_p6 = scmp.eq.s32.totalorder %s2702_s19, 1 }
  0x4f   : > { %p61_p13 = scmp.eq.s32.totalorder %s58_s22, 0  ;;  %p2785_p0 = por %p77_p1, %p76_p12 }
  0x50   : > { %p2789_p2 = por %p382_p6, %p70_p9  ;;  %p2796_p8 = por %p388_p4, %p76_p12 }
  0x51   : > { %s2794_s27 = scalar_select %p61_p13, %s2569_s15, %s63_s13  }
  0x52   : > { %s3317_s28 = scalar_select %p2796_p8, 1, 0 }
  0x53   : > { %3316 = sst [smem:[#allocation28_spill]] %s2794_s27  ;;  %p2187_p7 = scmp.lt.s32.totalorder %s2581_s18, 2 }
  0x54   : > { %3318 = sst [smem:[#allocation29_spill]] %s3317_s28  ;;  %s484_s21 = sand.u32 1, %s2569_s15  }
  0x55   : > { %s1829_s24 = sshll.u32 %s2577_s17, 7  ;;  %s1828_s22 = sshll.u32 %s484_s21, 3 }
  0x56   : > { %s3319_s0 = sld [smem:[#allocation30_spill]]  ;;  %s488_s12 = scalar_lea.vmem [#allocation6], %s1828_s22 }
  0x57   : > { %s496_s14 = sshll.u32 %s488_s12, 4  ;;  %p2808_p9 = pnand %p2187_p7, %p2774_p11  ;;  %s497_s14 = int_to_ptr.vmem [resolvable:$true] %s496_s14 }
  0x58   : > { %s1830_s23 = sshll.u32 %s484_s21, 6  ;;  %s485_s13 = scalar_lea.sflag [#allocation7], %s484_s21 }
  0x59   : > { %p2431_p10 = pneg %p2808_p9  ;;  %s2442_s27 = scalar_lea.vmem %s497_s14, 128 }
  0x5a   : > { %p2443_p12 = scmp.ne.s32.totalorder %s497_s14, %s2442_s27  ;;  %s2589_s6 = smov [#allocation6]  }
  0x5b   : > { %s2447_s8 = sshll.u32 %s2589_s6, 4  ;;  %s2448_s8 = int_to_ptr.vmem [resolvable:$false] %s2447_s8 }
  0x5c   : > { %s494_s10 = scalar_lea.hbm %s3319_s0, %s1829_s24  ;;  %p2445_p6 = pnand %p2443_p12, %p2431_p10 }
  0x5d   : > { %s2449_s12 = scalar_lea.vmem %s2448_s8, 256  ;;  %p2450_p11 = scmp.lt.s32.totalorder %s497_s14, %s2448_s8 }
  0x5e   : > { %p2446_p13 = pneg %p2445_p6  ;;  %p2451_p4 = scmp.lt.s32.totalorder %s2449_s12, %s2442_s27 }
  0x60   : > { %p2452_p7 = por %p2451_p4, %p2450_p11 }
  0x62   : > { %p2453_p5 = pnand %p2452_p7, %p2446_p13 }
  0x64   : > { %2456 = shalt.err (!%p2453_p5)
}
  0x65   : > { %2175 = dma.hbm_to_vmem [thread:$0]  (!%p2808_p9), %s494_s10, 128, %s497_s14, %s485_s13  }
  0x66   : > { %s1885_s21 = sshll.u32 %s2577_s17, 10  ;;  %s507_s24 = scalar_lea.vmem [#allocation9], %s1830_s23 }
  0x67   : > { %s516_s16 = sshll.u32 %s507_s24, 4  ;;  %s503_s22 = sand.u32 1, %s2581_s18   ;;  %s517_s16 = int_to_ptr.vmem [resolvable:$true] %s516_s16 }
  0x68   : > { %s515_s15 = scalar_lea.hbm %s3275_s1, %s1885_s21  ;;  %s504_s8 = scalar_lea.sflag [#allocation10], %s503_s22 }
  0x69   : > { %s2470_s27 = scalar_lea.vmem %s517_s16, 1024  ;;  %s2590_s12 = smov [#allocation9]  }
  0x6a   : > { %p2471_p12 = scmp.ne.s32.totalorder %s517_s16, %s2470_s27  ;;  %s2475_s28 = sshll.u32 %s2590_s12, 4  ;;  %s2476_s28 = int_to_ptr.vmem [resolvable:$false] %s2475_s28 }
  0x6b   : > { %s2477_s10 = scalar_lea.vmem %s2476_s28, 2048  ;;  %p2478_p13 = scmp.lt.s32.totalorder %s517_s16, %s2476_s28 }
  0x6c   : > { %p2473_p5 = pnand %p2471_p12, %p2431_p10  ;;  %p2479_p11 = scmp.lt.s32.totalorder %s2477_s10, %s2470_s27 }
  0x6e   : > { %p2474_p6 = pneg %p2473_p5  ;;  %p2480_p4 = por %p2479_p11, %p2478_p13 }
  0x70   : > { %p2481_p7 = pnand %p2480_p4, %p2474_p6 }
  0x72   : > { %2484 = shalt.err (!%p2481_p7)
}
  0x73   : > { %s3321_s0 = smov 4   ;;  %s3322_s14 = smov 64  }
  0x74   : > { %2178 = dma.hbm_to_vmem [thread:$0]  (!%p2808_p9), %s515_s15, 1024, %s517_s16, %s504_s8, %s3322_s14, %s3322_s14, %s3321_s0  }
  0x75   : > { %528 = sbr.rel (%p2707_p3) target bundleno = 1604 (0x644), region = 76  ;;  %s2835_s23 = sand.u32 (!%p2707_p3), 1, %s2565_s30  }
  0x76   : > { %s1834_s28 = sshll.u32 (!%p2707_p3), %s2835_s23, 3  ;;  %s531_s13 = scalar_lea.sflag (!%p2707_p3), [#allocation7], %s2835_s23 }
  0x77   : > { %s2841_s21 = scalar_lea.vmem (!%p2707_p3), [#allocation6], %s1834_s28 }
  0x7a   : > { %2536 = dma.done.wait (%p2785_p0), %s531_s13, 128  }
  0x7b   : > { %2538 = vsyncadd (%p2785_p0), %s531_s13, 4294967168  ;;  %s539_s29 = sand.u32 1, %s2702_s19   ;;  %s1835_s15 = sshll.u32 %s2835_s23, 6 }
  0x7c   : > { %s540_s20 = scalar_lea.sflag [#allocation10], %s539_s29  ;;  %s2849_s24 = scalar_lea.vmem [#allocation9], %s1835_s15 }
  0x7d   : > { %2540 = dma.done.wait (%p2785_p0), %s540_s20, 1024  }
  0x7e   : > { %2542 = vsyncadd (%p2785_p0), %s540_s20, 4294966272 }
  0x7f   : > { %2544 = dma.done.wait (%p77_p1), [#allocation10], 1024  }
  0x80   : > { %2546 = vsyncadd (%p77_p1), [#allocation10], 4294966272 }
  0x81   : > { %2548 = dma.done.wait (%p77_p1), [#allocation13], 2048  }
  0x82   : > { %2550 = vsyncadd (%p77_p1), [#allocation13], 4294965248 }
  0x83   : > { %2552 = dma.done.wait (%p77_p1), [#allocation16], 1024  }
  0x84   : > { %2554 = vsyncadd (%p77_p1), [#allocation16], 4294966272  ;;  %v1918_v0 = vld [vmem:[%s2849_s24 + $0x8] sm:$0xff]   ;;  %v1887_v1 = vld [vmem:[%s2849_s24] sm:$0xff]   ;;  %v2591_v51 = vmov 0.0   ;;  %vm2592_vm0 = vmmov 0  }
  0x85   : > { %v2869_v2 = vunpack.c.l.bf16 %v1918_v0  ;;  %v2871_v3 = vunpack.c.l.bf16 %v1887_v1  ;;  %v2875_v4 = vunpack.c.h.bf16 %v1918_v0  ;;  %v2877_v5 = vunpack.c.h.bf16 %v1887_v1  ;;  %v1919_v8 = vld [vmem:[%s2849_s24 + $0x10] sm:$0xff]   ;;  %v1920_v11 = vld [vmem:[%s2849_s24 + $0x18] sm:$0xff]   ;;  %v1921_v22 = vld [vmem:[%s2849_s24 + $0x20] sm:$0xff]   ;;  %1993 = vmatprep.subr.bf16.mxu0 %v2591_v51  ;;  %2009 = vmatprep.mubr.msk.bf16.mxu0 %vm2592_vm0, %v2591_v51  ;;  %s3323_s20 = sld [smem:[#allocation26_spill]]  ;;  %s608_s22 = scalar_lea.vmem [#allocation17], %s1834_s28 }
  0x86   : > { %v2891_v12 = vunpack.c.h.bf16 %v1919_v8  ;;  %v2893_v13 = vunpack.c.l.bf16 %v1919_v8  ;;  %v2897_v14 = vunpack.c.h.bf16 %v1920_v11  ;;  %v2899_v15 = vunpack.c.l.bf16 %v1920_v11  ;;  %v2253_v16 = vld [vmem:[#allocation12 + $0x38] sm:$0xff]   ;;  %v2254_v19 = vld [vmem:[#allocation12 + $0x30] sm:$0xff]   ;;  %v2255_v23 = vld [vmem:[#allocation12 + $0x28] sm:$0xff]   ;;  %s3324_s25 = sld [smem:[#allocation35_spill]]  ;;  %s1673_s6 = sshll.u32 %s608_s22, 4  ;;  %s3228_s6 = int_to_ptr.vmem [resolvable:$true] %s1673_s6 }
  0x87   : > { %802 = vadd.xlane.f32.xlu1 %v2869_v2  ;;  %798 = vadd.xlane.f32.xlu0 %v2871_v3  ;;  %v847_v6 = vmul.f32 %v2877_v5, %v2877_v5  ;;  %v846_v7 = vmul.f32 %v2871_v3, %v2871_v3  ;;  %v849_v9 = vmul.f32 %v2875_v4, %v2875_v4  ;;  %v2912_v24 = vunpack.c.h.bf16 %v1921_v22  ;;  %v1922_v26 = vld [vmem:[%s2849_s24 + $0x28] sm:$0xff]   ;;  %v2256_v27 = vld [vmem:[#allocation12 + $0x20] sm:$0xff]   ;;  %v2257_v30 = vld [vmem:[#allocation12 + $0x18] sm:$0xff]   ;;  %s3325_s12 = sld [smem:[#allocation36_spill]]  ;;  %s2485_s0 = scalar_lea.vmem %s3228_s6, 128 }
  0x88   : > { %v848_v10 = vmul.f32 %v2869_v2, %v2869_v2  ;;  %2013 = vmatprep.subr.bf16.mxu1 %v2253_v16  ;;  %v851_v17 = vmul.f32 %v2891_v12, %v2891_v12  ;;  %v850_v18 = vmul.f32 %v2893_v13, %v2893_v13  ;;  %v853_v20 = vmul.f32 %v2897_v14, %v2897_v14  ;;  %v2258_v33 = vld [vmem:[#allocation12 + $0x10] sm:$0xff]   ;;  %v2259_v37 = vld [vmem:[#allocation12 + $0x8] sm:$0xff]   ;;  %v1924_v40 = vld [vmem:[%s2849_s24 + $0x38] sm:$0xff]   ;;  %p2486_p1 = scmp.ne.s32.totalorder %s3228_s6, %s2485_s0  ;;  %s2595_s28 = smov [#allocation17]  }
  0x89   : > { %2014 = vmatpush3.bf16.msra.mxu1 %v2253_v16  ;;  %v852_v21 = vmul.f32 %v2899_v15, %v2899_v15  ;;  %v2914_v25 = vunpack.c.l.bf16 %v1921_v22  ;;  %v2919_v28 = vunpack.c.h.bf16 %v1922_v26  ;;  %v2921_v29 = vunpack.c.l.bf16 %v1922_v26  ;;  %v1923_v36 = vld [vmem:[%s2849_s24 + $0x30] sm:$0xff]   ;;  %v2260_v41 = vld [vmem:[#allocation12] sm:$0xff]   ;;  %v2261_v50 = vld [vmem:[#allocation11 + $0x38] sm:$0xff]   ;;  %s2489_s14 = sshll.u32 %s2595_s28, 4  ;;  %s2490_s14 = int_to_ptr.vmem [resolvable:$false] %s2489_s14 }
  0x8a   : > { %2015 = vmatprep.subr.bf16.mxu1 %v2254_v19  ;;  %v855_v31 = vmul.f32 %v2912_v24, %v2912_v24  ;;  %v2934_v38 = vunpack.c.h.bf16 %v1923_v36  ;;  %v2936_v39 = vunpack.c.l.bf16 %v1923_v36  ;;  %v2941_v42 = vunpack.c.h.bf16 %v1924_v40  ;;  %v2956_v48 = vld [vmem:[%s2841_s21] sm:$0xff]  ;;  %1994 = vmatpush3.bf16.msra.mxu0 %v2261_v50  ;;  %v2263_v53 = vld [vmem:[#allocation11 + $0x28] sm:$0xff]   ;;  %v2264_v54 = vld [vmem:[#allocation11 + $0x20] sm:$0xff]   ;;  %p2487_p3 = pnand %p2486_p1, %p2789_p2  ;;  %s2491_s13 = scalar_lea.vmem %s2490_s14, 256 }
  0x8b   : > { %804 = vadd.xlane.f32.xlu1 %v2875_v4  ;;  %800 = vadd.xlane.f32.xlu0 %v2877_v5  ;;  %v854_v32 = vmul.f32 %v2914_v25, %v2914_v25  ;;  %v857_v34 = vmul.f32 %v2919_v28, %v2919_v28  ;;  %v856_v35 = vmul.f32 %v2921_v29, %v2921_v29  ;;  %v2943_v43 = vunpack.c.l.bf16 %v1924_v40  ;;  %v2262_v52 = vld [vmem:[#allocation11 + $0x30] sm:$0xff]   ;;  %v2265_v55 = vld [vmem:[#allocation11 + $0x18] sm:$0xff]   ;;  %v2267_v57 = vld [vmem:[#allocation11 + $0x8] sm:$0xff]   ;;  %s1882_s16 = sshll.u32 %s3323_s20, 7  ;;  %p2492_p9 = scmp.lt.s32.totalorder %s3228_s6, %s2490_s14 }
  0x8c   : > { %v859_v44 = vmul.f32 %v2934_v38, %v2934_v38  ;;  %v858_v45 = vmul.f32 %v2936_v39, %v2936_v39  ;;  %v861_v46 = vmul.f32 %v2941_v42, %v2941_v42  ;;  %v621_v49 = vmul.f32 %v2956_v48, %v2956_v48  ;;  %1995 = vmatprep.subr.bf16.mxu0 %v2591_v51  ;;  %v2266_v56 = vld [vmem:[#allocation11 + $0x10] sm:$0xff]   ;;  %v2268_v58 = vld [vmem:[#allocation11] sm:$0xff]   ;;  %v2972_v59 = vld [vmem:[#allocation14 + $0x38] sm:$0xff]   ;;  %p2488_p0 = pneg %p2487_p3  ;;  %p2493_p10 = scmp.lt.s32.totalorder %s2491_s13, %s2485_s0 }
  0x8d   : > { %2016 = vmatpush3.bf16.msra.mxu1 %v2254_v19  ;;  %v860_v47 = vmul.f32 %v2943_v43, %v2943_v43  ;;  %vm760_vm1 = vcmask 7168   ;;  %s3226_s10 = scalar_lea.hbm %s3325_s12, %s1882_s16 }
  0x8e   : > { %2017 = vmatprep.subr.bf16.mxu1 %v2255_v23  ;;  %1996 = vmatpush3.bf16.msra.mxu0 %v2262_v52  ;;  %762 = vst.msk [vmem:[#allocation4] sm:$0xff] %vm760_vm1, %v2591_v51  ;;  %p2494_p12 = por %p2493_p10, %p2492_p9 }
  0x8f   : > { %864 = vadd.xlane.f32.xlu1 %v847_v6  ;;  %862 = vadd.xlane.f32.xlu0 %v846_v7 }
  0x90   : > { %1997 = vmatprep.subr.bf16.mxu0 %v2591_v51  ;;  %p2495_p5 = pnand %p2494_p12, %p2488_p0 }
  0x91   : > { %2018 = vmatpush3.bf16.msra.mxu1 %v2255_v23 }
  0x92   : > { %2019 = vmatprep.subr.bf16.mxu1 %v2256_v27  ;;  %1998 = vmatpush3.bf16.msra.mxu0 %v2263_v53 }
  0x93   : > { %868 = vadd.xlane.f32.xlu1 %v849_v9  ;;  %866 = vadd.xlane.f32.xlu0 %v848_v10 }
  0x94   : > { %1999 = vmatprep.subr.bf16.mxu0 %v2591_v51 }
  0x95   : > { %2020 = vmatpush3.bf16.msra.mxu1 %v2256_v27 }
  0x96   : > { %2021 = vmatprep.subr.bf16.mxu1 %v2257_v30  ;;  %2000 = vmatpush3.bf16.msra.mxu0 %v2264_v54 }
  0x97   : > { %808 = vadd.xlane.f32.xlu1 %v2891_v12  ;;  %806 = vadd.xlane.f32.xlu0 %v2893_v13 }
  0x98   : > { %2001 = vmatprep.subr.bf16.mxu0 %v2591_v51 }
  0x99   : > { %2022 = vmatpush3.bf16.msra.mxu1 %v2257_v30 }
  0x9a   : > { %2023 = vmatprep.subr.bf16.mxu1 %v2258_v33  ;;  %2002 = vmatpush3.bf16.msra.mxu0 %v2265_v55 }
  0x9b   : > { %812 = vadd.xlane.f32.xlu1 %v2897_v14  ;;  %810 = vadd.xlane.f32.xlu0 %v2899_v15 }
  0x9c   : > { %2003 = vmatprep.subr.bf16.mxu0 %v2591_v51 }
  0x9d   : > { %2024 = vmatpush3.bf16.msra.mxu1 %v2258_v33 }
  0x9e   : > { %2025 = vmatprep.subr.bf16.mxu1 %v2259_v37  ;;  %2004 = vmatpush3.bf16.msra.mxu0 %v2266_v56 }
  0x9f   : > { %872 = vadd.xlane.f32.xlu1 %v851_v17  ;;  %870 = vadd.xlane.f32.xlu0 %v850_v18 }
  0xa0   : > { %2005 = vmatprep.subr.bf16.mxu0 %v2591_v51 }
  0xa1   : > { %2026 = vmatpush3.bf16.msra.mxu1 %v2259_v37 }
  0xa2   : > { %2027 = vmatprep.subr.bf16.mxu1 %v2260_v41  ;;  %2006 = vmatpush3.bf16.msra.mxu0 %v2267_v57 }
  0xa3   : > { %876 = vadd.xlane.f32.xlu1 %v853_v20  ;;  %874 = vadd.xlane.f32.xlu0 %v852_v21 }
  0xa4   : > { %2007 = vmatprep.subr.bf16.mxu0 %v2591_v51 }
  0xa5   : > { %2028 = vmatpush3.bf16.msra.mxu1 %v2260_v41 }
  0xa6   : > { %2077 = vmatprep.subr.bf16.mxu1 %v2591_v51  ;;  %2008 = vmatpush3.bf16.msra.mxu0 %v2268_v58 }
  0xa7   : > { %816 = vadd.xlane.f32.xlu1 %v2912_v24  ;;  %814 = vadd.xlane.f32.xlu0 %v2914_v25 }
  0xa8   : > { %2045 = vmatprep.subr.bf16.mxu0 %v2972_v59 }
  0xab   : > { %820 = vadd.xlane.f32.xlu1 %v2919_v28  ;;  %818 = vadd.xlane.f32.xlu0 %v2921_v29 }
  0xaf   : > { %880 = vadd.xlane.f32.xlu1 %v855_v31  ;;  %878 = vadd.xlane.f32.xlu0 %v854_v32 }
  0xb3   : > { %884 = vadd.xlane.f32.xlu1 %v857_v34  ;;  %882 = vadd.xlane.f32.xlu0 %v856_v35 }
  0xb7   : > { %824 = vadd.xlane.f32.xlu1 %v2934_v38  ;;  %822 = vadd.xlane.f32.xlu0 %v2936_v39 }
  0xbb   : > { %828 = vadd.xlane.f32.xlu1 %v2941_v42  ;;  %826 = vadd.xlane.f32.xlu0 %v2943_v43 }
  0xbf   : > { %888 = vadd.xlane.f32.xlu1 %v859_v44  ;;  %886 = vadd.xlane.f32.xlu0 %v858_v45 }
  0xc3   : > { %892 = vadd.xlane.f32.xlu1 %v861_v46  ;;  %890 = vadd.xlane.f32.xlu0 %v860_v47 }
  0xc7   : > { %618 = vadd.xlane.f32.xlu0 %v2956_v48  ;;  %622 = vadd.xlane.f32.xlu1 %v621_v49 }
 0x110   : > { %v803_v60 = vpop.xlane.xlu1 %802  ;;  %v799_v61 = vpop.xlane.xlu0 %798 }
 0x111   : > { %v830_v0 = vmul.f32 0.03125, %v799_v61  ;;  %v2975_v6 = vmul.f32 0.03125, %v803_v60 }
 0x113   : > { %v910_v10 = vmul.f32 %v830_v0, %v830_v0  ;;  %v912_v20 = vmul.f32 %v2975_v6, %v2975_v6  ;;  %v942_v60 = vsub.f32 %v2871_v3, %v830_v0 }
 0x114   : > { %v805_v62 = vpop.xlane.xlu1 %804  ;;  %v801_v63 = vpop.xlane.xlu0 %800 }
 0x115   : > { %v831_v1 = vmul.f32 0.03125, %v801_v63  ;;  %v2977_v7 = vmul.f32 0.03125, %v805_v62 }
 0x117   : > { %v911_v11 = vmul.f32 %v831_v1, %v831_v1  ;;  %v913_v21 = vmul.f32 %v2977_v7, %v2977_v7  ;;  %v943_v61 = vsub.f32 %v2877_v5, %v831_v1  ;;  %v944_v1 = vsub.f32 %v2869_v2, %v2975_v6 }
 0x118   : > { %v865_v8 = vpop.xlane.xlu1 %864  ;;  %v863_v9 = vpop.xlane.xlu0 %862 }
 0x119   : > { %v895_v16 = vmul.f32 0.03125, %v865_v8  ;;  %v894_v17 = vmul.f32 0.03125, %v863_v9 }
 0x11b   : > { %v927_v18 = vsub.f32 %v895_v16, %v911_v11  ;;  %v926_v19 = vsub.f32 %v894_v17, %v910_v10  ;;  %v3004_v10 = vld [vmem:[%s3278_s4] ss:$0 sm:$0xff] }
 0x11c   : > { %v869_v22 = vpop.xlane.xlu1 %868  ;;  %v867_v23 = vpop.xlane.xlu0 %866 }
 0x11d   : > { %v959_v26 = vadd.f32 1e-05, %v927_v18  ;;  %v958_v27 = vadd.f32 1e-05, %v926_v19  ;;  %v897_v30 = vmul.f32 0.03125, %v869_v22  ;;  %v896_v31 = vmul.f32 0.03125, %v867_v23 }
 0x11e   : > { %v945_v23 = vsub.f32 %v2875_v4, %v2977_v7 }
 0x11f   : > { %2285 = vrsqrt.f32 %v959_v26  ;;  %v929_v32 = vsub.f32 %v897_v30, %v913_v21  ;;  %v928_v33 = vsub.f32 %v896_v31, %v912_v20  ;;  %v3011_v21 = vld [vmem:[%s3279_s5] ss:$0 sm:$0xff] }
 0x120   : > { %2287 = vrsqrt.f32 %v958_v27  ;;  %v809_v34 = vpop.xlane.xlu1 %808  ;;  %v807_v35 = vpop.xlane.xlu0 %806 }
 0x121   : > { %v961_v36 = vadd.f32 1e-05, %v929_v32  ;;  %v960_v37 = vadd.f32 1e-05, %v928_v33  ;;  %v2983_v44 = vmul.f32 0.03125, %v809_v34  ;;  %v2985_v45 = vmul.f32 0.03125, %v807_v35 }
 0x123   : > { %2289 = vrsqrt.f32 %v961_v36  ;;  %v915_v52 = vmul.f32 %v2983_v44, %v2983_v44  ;;  %v914_v53 = vmul.f32 %v2985_v45, %v2985_v45 }
 0x124   : > { %2291 = vrsqrt.f32 %v960_v37  ;;  %v813_v40 = vpop.xlane.xlu1 %812  ;;  %v811_v41 = vpop.xlane.xlu0 %810 }
 0x125   : > { %v2987_v46 = vmul.f32 0.03125, %v813_v40  ;;  %v2989_v47 = vmul.f32 0.03125, %v811_v41 }
 0x127   : > { %v917_v62 = vmul.f32 %v2987_v46, %v2987_v46  ;;  %v916_v63 = vmul.f32 %v2989_v47, %v2989_v47 }
 0x128   : > { %v873_v49 = vpop.xlane.xlu1 %872  ;;  %v871_v50 = vpop.xlane.xlu0 %870 }
 0x129   : > { %v899_v54 = vmul.f32 0.03125, %v873_v49  ;;  %v898_v55 = vmul.f32 0.03125, %v871_v50 }
 0x12b   : > { %v931_v56 = vsub.f32 %v899_v54, %v915_v52  ;;  %v930_v57 = vsub.f32 %v898_v55, %v914_v53 }
 0x12c   : > { %v2286_v58 = vpop.eup %2285  ;;  %v877_v8 = vpop.xlane.xlu1 %876 }
 0x12d   : > { %v875_v9 = vpop.xlane.xlu0 %874  ;;  %v2288_v11 = vpop.eup %2287  ;;  %v963_v16 = vadd.f32 1e-05, %v931_v56  ;;  %v962_v17 = vadd.f32 1e-05, %v930_v57  ;;  %v901_v18 = vmul.f32 0.03125, %v877_v8  ;;  %v991_v5 = vmul.f32 %v2286_v58, %v943_v61 }
 0x12e   : > { %v900_v3 = vmul.f32 0.03125, %v875_v9  ;;  %v990_v0 = vmul.f32 %v2288_v11, %v942_v60 }
 0x12f   : > { %2293 = vrsqrt.f32 %v963_v16  ;;  %v933_v19 = vsub.f32 %v901_v18, %v917_v62  ;;  %v1013_v31 = vmul.f32 %v3004_v10, %v991_v5  ;;  %v947_v16 = vsub.f32 %v2891_v12, %v2983_v44 }
 0x130   : > { %v932_v20 = vsub.f32 %v900_v3, %v916_v63  ;;  %v2290_v22 = vpop.eup %2289  ;;  %2295 = vrsqrt.f32 %v962_v17  ;;  %v817_v26 = vpop.xlane.xlu1 %816  ;;  %v1012_v30 = vmul.f32 %v3004_v10, %v990_v0  ;;  %v946_v17 = vsub.f32 %v2893_v13, %v2985_v45 }
 0x131   : > { %v815_v27 = vpop.xlane.xlu0 %814  ;;  %v2292_v2 = vpop.eup %2291  ;;  %v965_v6 = vadd.f32 1e-05, %v933_v19  ;;  %v1035_v34 = vadd.f32 %v3011_v21, %v1013_v31  ;;  %v993_v36 = vmul.f32 %v2290_v22, %v945_v23  ;;  %v3022_v41 = vmul.f32 0.03125, %v817_v26 }
 0x132   : > { %v964_v32 = vadd.f32 1e-05, %v932_v20  ;;  %v1034_v33 = vadd.f32 %v3011_v21, %v1012_v30  ;;  %v992_v35 = vmul.f32 %v2292_v2, %v944_v1  ;;  %v3024_v49 = vmul.f32 0.03125, %v815_v27 }
 0x133   : > { %2297 = vrsqrt.f32 %v965_v6  ;;  %v1015_v50 = vmul.f32 %v3004_v10, %v993_v36  ;;  %v919_v58 = vmul.f32 %v3022_v41, %v3022_v41  ;;  %v949_v13 = vsub.f32 %v2897_v14, %v2987_v46 }
 0x134   : > { %2299 = vrsqrt.f32 %v964_v32  ;;  %v821_v37 = vpop.xlane.xlu1 %820  ;;  %v3019_v7 = vpack.c.bf16 %v1035_v34, %v1034_v33  ;;  %v1014_v40 = vmul.f32 %v3004_v10, %v992_v35  ;;  %v918_v60 = vmul.f32 %v3024_v49, %v3024_v49 }
 0x135   : > { %v819_v4 = vpop.xlane.xlu0 %818  ;;  %v3029_v53 = vmul.f32 0.03125, %v821_v37  ;;  %v1037_v57 = vadd.f32 %v3011_v21, %v1015_v50  ;;  %v948_v30 = vsub.f32 %v2899_v15, %v2989_v47 }
 0x136   : > { %2029 = vmatprep.mubr.bf16.mxu1 %v3019_v7  ;;  %v1036_v52 = vadd.f32 %v3011_v21, %v1014_v40  ;;  %v3031_v54 = vmul.f32 0.03125, %v819_v4 }
 0x137   : > { %v921_v18 = vmul.f32 %v3029_v53, %v3029_v53 }
 0x138   : > { %v881_v55 = vpop.xlane.xlu1 %880  ;;  %v3038_v63 = vpack.c.bf16 %v1037_v57, %v1036_v52  ;;  %v920_v3 = vmul.f32 %v3031_v54, %v3031_v54 }
 0x139   : > { %v879_v56 = vpop.xlane.xlu0 %878  ;;  %v903_v61 = vmul.f32 0.03125, %v881_v55 }
 0x13a   : > { %v902_v62 = vmul.f32 0.03125, %v879_v56  ;;  %2030 = vmatmul.mubr.bf16.vlgmr.msra.gmra.mxu1 %v3038_v63 }
 0x13b   : > { %v935_v8 = vsub.f32 %v903_v61, %v919_v58 }
 0x13c   : > { %v934_v9 = vsub.f32 %v902_v62, %v918_v60  ;;  %v2294_v11 = vpop.eup %2293  ;;  %v885_v0 = vpop.xlane.xlu1 %884 }
 0x13d   : > { %v883_v5 = vpop.xlane.xlu0 %882  ;;  %v2296_v1 = vpop.eup %2295  ;;  %v967_v19 = vadd.f32 1e-05, %v935_v8  ;;  %v905_v22 = vmul.f32 0.03125, %v885_v0  ;;  %v995_v12 = vmul.f32 %v2294_v11, %v947_v16 }
 0x13e   : > { %v966_v20 = vadd.f32 1e-05, %v934_v9  ;;  %v904_v23 = vmul.f32 0.03125, %v883_v5  ;;  %v994_v26 = vmul.f32 %v2296_v1, %v946_v17  ;;  %v951_v5 = vsub.f32 %v2912_v24, %v3022_v41 }
 0x13f   : > { %2301 = vrsqrt.f32 %v967_v19  ;;  %v937_v44 = vsub.f32 %v905_v22, %v921_v18  ;;  %v1017_v32 = vmul.f32 %v3004_v10, %v995_v12  ;;  %v950_v1 = vsub.f32 %v2914_v25, %v3024_v49 }
 0x140   : > { %v936_v45 = vsub.f32 %v904_v23, %v920_v3  ;;  %v2298_v27 = vpop.eup %2297  ;;  %2303 = vrsqrt.f32 %v966_v20  ;;  %v825_v31 = vpop.xlane.xlu1 %824  ;;  %v1016_v6 = vmul.f32 %v3004_v10, %v994_v26  ;;  %v953_v25 = vsub.f32 %v2919_v28, %v3029_v53 }
 0x141   : > { %v823_v2 = vpop.xlane.xlu0 %822  ;;  %v2300_v33 = vpop.eup %2299  ;;  %v969_v34 = vadd.f32 1e-05, %v937_v44  ;;  %v1039_v14 = vadd.f32 %v3011_v21, %v1017_v32  ;;  %v997_v37 = vmul.f32 %v2298_v27, %v949_v13  ;;  %v3060_v50 = vmul.f32 0.03125, %v825_v31 }
 0x142   : > { %v968_v35 = vadd.f32 1e-05, %v936_v45  ;;  %v1038_v36 = vadd.f32 %v3011_v21, %v1016_v6  ;;  %v996_v46 = vmul.f32 %v2300_v33, %v948_v30  ;;  %v3062_v52 = vmul.f32 0.03125, %v823_v2 }
 0x143   : > { %2305 = vrsqrt.f32 %v969_v34  ;;  %v1019_v55 = vmul.f32 %v3004_v10, %v997_v37  ;;  %v923_v8 = vmul.f32 %v3060_v50, %v3060_v50  ;;  %v952_v31 = vsub.f32 %v2921_v29, %v3031_v54 }
 0x144   : > { %2307 = vrsqrt.f32 %v968_v35  ;;  %v829_v4 = vpop.xlane.xlu1 %828  ;;  %v3057_v47 = vpack.c.bf16 %v1039_v14, %v1038_v36  ;;  %v1018_v40 = vmul.f32 %v3004_v10, %v996_v46  ;;  %v922_v9 = vmul.f32 %v3062_v52, %v3062_v52 }
 0x145   : > { %v827_v15 = vpop.xlane.xlu0 %826  ;;  %v3067_v57 = vmul.f32 0.03125, %v829_v4  ;;  %v1041_v62 = vadd.f32 %v3011_v21, %v1019_v55 }
 0x146   : > { %2033 = vmatprep.mubr.bf16.mxu1 %v3057_v47  ;;  %v1040_v56 = vadd.f32 %v3011_v21, %v1018_v40  ;;  %v3069_v58 = vmul.f32 0.03125, %v827_v15 }
 0x147   : > { %v925_v19 = vmul.f32 %v3067_v57, %v3067_v57 }
 0x148   : > { %v889_v60 = vpop.xlane.xlu1 %888  ;;  %v3076_v17 = vpack.c.bf16 %v1041_v62, %v1040_v56  ;;  %v924_v20 = vmul.f32 %v3069_v58, %v3069_v58 }
 0x149   : > { %v887_v61 = vpop.xlane.xlu0 %886  ;;  %v907_v11 = vmul.f32 0.03125, %v889_v60 }
 0x14a   : > { %v906_v16 = vmul.f32 0.03125, %v887_v61  ;;  %2034 = vmatmul.mubr.bf16.gmra.mxu1 %v3076_v17 }
 0x14b   : > { %v939_v18 = vsub.f32 %v907_v11, %v923_v8  ;;  %v955_v8 = vsub.f32 %v2934_v38, %v3060_v50  ;;  %v954_v11 = vsub.f32 %v2936_v39, %v3062_v52 }
 0x14c   : > { %v938_v3 = vsub.f32 %v906_v16, %v922_v9  ;;  %v2302_v0 = vpop.eup %2301  ;;  %v893_v22 = vpop.xlane.xlu1 %892 }
 0x14d   : > { %v891_v23 = vpop.xlane.xlu0 %890  ;;  %v2304_v26 = vpop.eup %2303  ;;  %v971_v12 = vadd.f32 1e-05, %v939_v18  ;;  %v909_v44 = vmul.f32 0.03125, %v893_v22  ;;  %v999_v24 = vmul.f32 %v2302_v0, %v951_v5  ;;  %v957_v0 = vsub.f32 %v2941_v42, %v3067_v57 }
 0x14e   : > { %v970_v13 = vadd.f32 1e-05, %v938_v3  ;;  %v908_v45 = vmul.f32 0.03125, %v891_v23  ;;  %v998_v27 = vmul.f32 %v2304_v26, %v950_v1 }
 0x14f   : > { %2309 = vrsqrt.f32 %v971_v12  ;;  %v941_v41 = vsub.f32 %v909_v44, %v925_v19  ;;  %v1021_v33 = vmul.f32 %v3004_v10, %v999_v24  ;;  %v956_v19 = vsub.f32 %v2943_v43, %v3069_v58  ;;  %v1841_v58 = vld [vmem:[%s3276_s2] ss:$0 sm:$0xff] }
 0x150   : > { %v940_v49 = vsub.f32 %v908_v45, %v924_v20  ;;  %v2306_v30 = vpop.eup %2305  ;;  %2311 = vrsqrt.f32 %v970_v13  ;;  %v623_v6 = vpop.xlane.xlu1 %622  ;;  %v1020_v32 = vmul.f32 %v3004_v10, %v998_v27 }
 0x151   : > { %v619_v2 = vpop.xlane.xlu0 %618  ;;  %v2308_v34 = vpop.eup %2307  ;;  %v973_v35 = vadd.f32 1e-05, %v941_v41  ;;  %v624_v46 = vmul.f32 0.03125, %v623_v6  ;;  %v1043_v53 = vadd.f32 %v3011_v21, %v1021_v33  ;;  %v1001_v4 = vmul.f32 %v2306_v30, %v953_v25  ;;  %v2270_v25 = vld [vmem:[#allocation14 + $0x30] sm:$0xff]   ;;  %v2272_v41 = vld [vmem:[#allocation14 + $0x20] sm:$0xff]  }
 0x152   : > { %v972_v36 = vadd.f32 1e-05, %v940_v49  ;;  %v620_v14 = vmul.f32 0.03125, %v619_v2  ;;  %v1042_v28 = vadd.f32 %v3011_v21, %v1020_v32  ;;  %v1000_v37 = vmul.f32 %v2308_v34, %v952_v31  ;;  %v2273_v49 = vld [vmem:[#allocation14 + $0x18] sm:$0xff]   ;;  %v2274_v30 = vld [vmem:[#allocation14 + $0x10] sm:$0xff]   ;;  %v2275_v31 = vld [vmem:[#allocation14 + $0x8] sm:$0xff]  }
 0x153   : > { %2313 = vrsqrt.f32 %v973_v35  ;;  %v1023_v40 = vmul.f32 %v3004_v10, %v1001_v4  ;;  %v2276_v2 = vld [vmem:[#allocation14] sm:$0xff]  }
 0x154   : > { %v625_v29 = vmul.f32 %v620_v14, %v620_v14  ;;  %2315 = vrsqrt.f32 %v972_v36  ;;  %v3095_v54 = vpack.c.bf16 %v1043_v53, %v1042_v28  ;;  %v1022_v15 = vmul.f32 %v3004_v10, %v1000_v37 }
 0x155   : > { %v1045_v60 = vadd.f32 %v3011_v21, %v1023_v40  ;;  %v627_v23 = vsub.f32 %v2956_v48, %v620_v14  ;;  %v1842_v48 = vld [vmem:[%s3277_s3] ss:$0 sm:$0xff]  ;;  %v2593_v14 = vmov -1e+30  }
 0x156   : > { %v626_v55 = vsub.f32 %v624_v46, %v625_v29  ;;  %2037 = vmatprep.mubr.bf16.mxu1 %v3095_v54  ;;  %v1044_v56 = vadd.f32 %v3011_v21, %v1022_v15  ;;  %761 = vst.msk [vmem:[#allocation3] sm:$0xff] %vm760_vm1, %v2593_v14 }
 0x158   : > { %v628_v61 = vadd.f32 1e-05, %v626_v55  ;;  %v3102_v62 = vpack.c.bf16 %v1045_v60, %v1044_v56  ;;  %v1843_v56 = vld [vmem:[%s3281_s7] ss:$0 sm:$0xff] }
 0x15a   : > { %2317 = vrsqrt.f32 %v628_v61  ;;  %2038 = vmatmul.mubr.bf16.gmra.mxu1 %v3102_v62 }
 0x15c   : > { %v2310_v9 = vpop.eup %2309 }
 0x15d   : > { %v2312_v16 = vpop.eup %2311  ;;  %v1003_v18 = vmul.f32 %v2310_v9, %v955_v8 }
 0x15e   : > { %v1002_v3 = vmul.f32 %v2312_v16, %v954_v11 }
 0x15f   : > { %v1025_v5 = vmul.f32 %v3004_v10, %v1003_v18 }
 0x160   : > { %v2314_v1 = vpop.eup %2313  ;;  %v1024_v20 = vmul.f32 %v3004_v10, %v1002_v3 }
 0x161   : > { %v2316_v22 = vpop.eup %2315  ;;  %v1047_v38 = vadd.f32 %v3011_v21, %v1025_v5  ;;  %v1005_v50 = vmul.f32 %v2314_v1, %v957_v0 }
 0x162   : > { %v1046_v39 = vadd.f32 %v3011_v21, %v1024_v20  ;;  %v1004_v52 = vmul.f32 %v2316_v22, %v956_v19 }
 0x163   : > { %v1027_v26 = vmul.f32 %v3004_v10, %v1005_v50 }
 0x164   : > { %v1056_v42 = vpack.c.bf16 %v1047_v38, %v1046_v39  ;;  %v1026_v57 = vmul.f32 %v3004_v10, %v1004_v52 }
 0x165   : > { %v1049_v12 = vadd.f32 %v3011_v21, %v1027_v26 }
 0x166   : > { %2041 = vmatprep.mubr.bf16.mxu1 %v1056_v42  ;;  %v1048_v43 = vadd.f32 %v3011_v21, %v1026_v57  ;;  %v2271_v21 = vld [vmem:[#allocation14 + $0x28] sm:$0xff]  }
 0x167   : > { %v2318_v13 = vpop.eup %2317 }
 0x168   : > { %v630_v44 = vmul.f32 %v2318_v13, %v627_v23  ;;  %v1057_v45 = vpack.c.bf16 %v1049_v12, %v1048_v43 }
 0x16a   : > { %v637_v27 = vmul.f32 %v1841_v58, %v630_v44  ;;  %2042 = vmatmul.mubr.bf16.gmra.mxu1 %v1057_v45 }
 0x16b   : > { %2093 = vmatprep.mubr.msk.bf16.mxu1 %vm2592_vm0, %v2591_v51 }
 0x16c   : > { %v644_v24 = vadd.f32 %v1842_v48, %v637_v27 }
 0x16e   : > { %v645_v10 = vpack.c.bf16 %v644_v24, %v644_v24 }
 0x170   : > { %2010 = vmatmul.mubr.bf16.vlgmr.msra.gmra.mxu0 %v645_v10 }
 0x171   : > { %2046 = vmatpush3.bf16.msra.mxu0 %v2972_v59  ;;  %2061 = vmatprep.mubr.bf16.mxu0 %v3019_v7  ;;  %v3143_v7 = vld [vmem:[%s3283_s9] ss:$0 sm:$0xff] }
 0x172   : > { %2047 = vmatprep.subr.bf16.mxu0 %v2270_v25 }
 0x175   : > { %2048 = vmatpush3.bf16.msra.mxu0 %v2270_v25 }
 0x176   : > { %2049 = vmatprep.subr.bf16.mxu0 %v2271_v21 }
 0x179   : > { %2050 = vmatpush3.bf16.msra.mxu0 %v2271_v21 }
 0x17a   : > { %2051 = vmatprep.subr.bf16.mxu0 %v2272_v41 }
 0x17d   : > { %2052 = vmatpush3.bf16.msra.mxu0 %v2272_v41 }
 0x17e   : > { %2053 = vmatprep.subr.bf16.mxu0 %v2273_v49 }
 0x181   : > { %2054 = vmatpush3.bf16.msra.mxu0 %v2273_v49 }
 0x182   : > { %2055 = vmatprep.subr.bf16.mxu0 %v2274_v30 }
 0x185   : > { %2056 = vmatpush3.bf16.msra.mxu0 %v2274_v30 }
 0x186   : > { %2057 = vmatprep.subr.bf16.mxu0 %v2275_v31 }
 0x189   : > { %2058 = vmatpush3.bf16.msra.mxu0 %v2275_v31 }
 0x18a   : > { %2059 = vmatprep.subr.bf16.mxu0 %v2276_v2 }
 0x18d   : > { %2060 = vmatpush3.bf16.msra.mxu0 %v2276_v2 }
 0x18e   : > { %2097 = vmatprep.subr.bf16.mxu0 %v2591_v51 }
 0x190   : > { %2062 = vmatmul.mubr.bf16.vlgmr.msra.gmra.mxu0 %v3038_v63 }
 0x191   : > { %2065 = vmatprep.mubr.bf16.mxu0 %v3057_v47 }
 0x198   : > { %2066 = vmatmul.mubr.bf16.gmra.mxu0 %v3076_v17 }
 0x199   : > { %2069 = vmatprep.mubr.bf16.mxu0 %v3095_v54 }
 0x1a0   : > { %2070 = vmatmul.mubr.bf16.gmra.mxu0 %v3102_v62 }
 0x1a1   : > { %2073 = vmatprep.mubr.bf16.mxu0 %v1056_v42 }
 0x1a8   : > { %2074 = vmatmul.mubr.bf16.gmra.mxu0 %v1057_v45 }
 0x1a9   : > { %2113 = vmatprep.mubr.msk.bf16.mxu0 %vm2592_vm0, %v2591_v51 }
 0x1fa   : > { %v2031_v59 = vpop.f32.mrf.mxu1 }
 0x1fb   : > { %v3146_v47 = vadd.f32 %v2031_v59, %v3143_v7 }
 0x1fc   : > { %v1163_v63 = vpop.f32.mrf.mxu1 }
 0x1fd   : > { %v3152_v33 = vadd.f32 %v3143_v7, %v1163_v63 }
 0x1fe   : > { %v2032_v6 = vpop.f32.mrf.mxu1 }
 0x1ff   : > { %v3149_v17 = vadd.f32 %v2032_v6, %v3143_v7 }
 0x200   : > { %v1166_v32 = vpop.f32.mrf.mxu1 }
 0x201   : > { %v1396_v34 = vpack.c.bf16 %v3149_v17, %v3146_v47  ;;  %v3157_v35 = vadd.f32 %v3143_v7, %v1166_v32 }
 0x203   : > { %v1395_v36 = vpack.c.bf16 %v3157_v35, %v3152_v33 }
 0x20a   : > { %v2035_v46 = vpop.f32.mrf.mxu1 }
 0x20b   : > { %v1188_v57 = vadd.f32 %v2035_v46, %v3143_v7 }
 0x20c   : > { %v1179_v28 = vpop.f32.mrf.mxu1 }
 0x20d   : > { %v1180_v48 = vadd.f32 %v3143_v7, %v1179_v28 }
 0x20e   : > { %v2036_v53 = vpop.f32.mrf.mxu1 }
 0x20f   : > { %v1191_v42 = vadd.f32 %v2036_v53, %v3143_v7 }
 0x210   : > { %v1182_v37 = vpop.f32.mrf.mxu1 }
 0x211   : > { %v1398_v13 = vpack.c.bf16 %v1191_v42, %v1188_v57  ;;  %v1183_v44 = vadd.f32 %v3143_v7, %v1182_v37 }
 0x213   : > { %v1397_v24 = vpack.c.bf16 %v1183_v44, %v1180_v48  ;;  %v2278_v44 = vld [vmem:[#allocation15 + $0x30] sm:$0xff]   ;;  %v2280_v48 = vld [vmem:[#allocation15 + $0x20] sm:$0xff]  }
 0x21a   : > { %v2039_v4 = vpop.f32.mrf.mxu1 }
 0x21b   : > { %v1204_v50 = vadd.f32 %v2039_v4, %v3143_v7 }
 0x21c   : > { %v1195_v29 = vpop.f32.mrf.mxu1 }
 0x21d   : > { %v1196_v23 = vadd.f32 %v3143_v7, %v1195_v29 }
 0x21e   : > { %v2040_v54 = vpop.f32.mrf.mxu1 }
 0x21f   : > { %v1207_v38 = vadd.f32 %v2040_v54, %v3143_v7 }
 0x220   : > { %v1198_v15 = vpop.f32.mrf.mxu1 }
 0x221   : > { %v1400_v39 = vpack.c.bf16 %v1207_v38, %v1204_v50  ;;  %v1199_v52 = vadd.f32 %v3143_v7, %v1198_v15  ;;  %v2594_v38 = vmov 0   ;;  %v1450_v50 = vld [vmem:[#allocation3] sm:$0xff] }
 0x222   : > { %2251 = vset.pattern.permute.xlu1 %v2594_v38  ;;  %2252 = vset.pattern.permute.xlu0 %v2594_v38 }
 0x223   : > { %v1399_v26 = vpack.c.bf16 %v1199_v52, %v1196_v23 }
 0x22a   : > { %v2043_v40 = vpop.f32.mrf.mxu1 }
 0x22b   : > { %v1220_v61 = vadd.f32 %v2043_v40, %v3143_v7 }
 0x22c   : > { %v1211_v55 = vpop.f32.mrf.mxu1 }
 0x22d   : > { %v1212_v20 = vadd.f32 %v3143_v7, %v1211_v55 }
 0x22e   : > { %v2044_v60 = vpop.f32.mrf.mxu1 }
 0x22f   : > { %v1223_v62 = vadd.f32 %v2044_v60, %v3143_v7 }
 0x230   : > { %v751_v8 = vpop.f32.mrf.mxu0  ;;  %v1214_v18 = vpop.f32.mrf.mxu1 }
 0x231   : > { %v752_v9 = vadd.f32 %v1843_v56, %v751_v8  ;;  %v1402_v11 = vpack.c.bf16 %v1223_v62, %v1220_v61  ;;  %v1215_v1 = vadd.f32 %v3143_v7, %v1214_v18  ;;  %v1863_v7 = vld [vmem:[%s3285_s11] ss:$0 sm:$0xff]  ;;  %v1403_v18 = vlaneseq }
 0x232   : > { %v2011_v16 = vpop.f32.mrf.mxu0 }
 0x233   : > { %v757_v3 = vmul.f32 0.17677669, %v752_v9  ;;  %2078 = vmatpush3.bf16.xpose.msra.mxu1 %v1402_v11  ;;  %v1401_v22 = vpack.c.bf16 %v1215_v1, %v1212_v20 }
 0x234   : > { %v754_v0 = vpop.f32.mrf.mxu0  ;;  %2079 = vmatprep.subr.bf16.mxu1 %v2591_v51 }
 0x235   : > { %v758_v5 = vpack.c.bf16 %v757_v3, %v757_v3  ;;  %v1404_v3 = vand.u32 127, %v1403_v18 }
 0x236   : > { %v2012_v19 = vpop.f32.mrf.mxu0 }
 0x237   : > { %759 = vst [vmem:[#allocation2] sm:$0xf] %v758_v5  ;;  %vm1408_vm2 = vcmp.lt.s32.totalorder %v1404_v3, 16 }
 0x238   : > { %v1409_v0 = vsel %vm1408_vm2, 0.0, %v2593_v14 }
 0x23b   : > { %2080 = vmatpush3.bf16.xpose.msra.mxu1 %v1401_v22 }
 0x23c   : > { %2081 = vmatprep.subr.bf16.mxu1 %v2591_v51 }
 0x243   : > { %2082 = vmatpush3.bf16.xpose.msra.mxu1 %v1400_v39 }
 0x244   : > { %2083 = vmatprep.subr.bf16.mxu1 %v2591_v51 }
 0x24b   : > { %2084 = vmatpush3.bf16.xpose.msra.mxu1 %v1399_v26 }
 0x24c   : > { %2085 = vmatprep.subr.bf16.mxu1 %v2591_v51 }
 0x250   : > { %v2063_v12 = vpop.f32.mrf.mxu0 }
 0x251   : > { %v1340_v62 = vadd.f32 %v2063_v12, %v1863_v7 }
 0x252   : > { %v1331_v43 = vpop.f32.mrf.mxu0 }
 0x253   : > { %2086 = vmatpush3.bf16.xpose.msra.mxu1 %v1398_v13  ;;  %v1332_v11 = vadd.f32 %v1863_v7, %v1331_v43 }
 0x254   : > { %v2064_v58 = vpop.f32.mrf.mxu0  ;;  %2087 = vmatprep.subr.bf16.mxu1 %v2591_v51 }
 0x255   : > { %v1343_v60 = vadd.f32 %v2064_v58, %v1863_v7  ;;  %v2277_v58 = vld [vmem:[#allocation15 + $0x38] sm:$0xff]  }
 0x256   : > { %v1334_v45 = vpop.f32.mrf.mxu0 }
 0x257   : > { %v1481_v8 = vpack.c.bf16 %v1343_v60, %v1340_v62  ;;  %v1335_v9 = vadd.f32 %v1863_v7, %v1334_v45  ;;  %v2279_v45 = vld [vmem:[#allocation15 + $0x28] sm:$0xff]  }
 0x258   : > { %v2067_v27 = vpop.f32.mrf.mxu0 }
 0x259   : > { %v1356_v15 = vadd.f32 %v2067_v27, %v1863_v7  ;;  %v1480_v16 = vpack.c.bf16 %v1335_v9, %v1332_v11  ;;  %v2281_v27 = vld [vmem:[#allocation15 + $0x18] sm:$0xff]  }
 0x25a   : > { %v1347_v10 = vpop.f32.mrf.mxu0 }
 0x25b   : > { %2088 = vmatpush3.bf16.xpose.msra.mxu1 %v1397_v24  ;;  %v1348_v56 = vadd.f32 %v1863_v7, %v1347_v10  ;;  %v2282_v24 = vld [vmem:[#allocation15 + $0x10] sm:$0xff]   ;;  %v2283_v10 = vld [vmem:[#allocation15 + $0x8] sm:$0xff]  }
 0x25c   : > { %v2068_v25 = vpop.f32.mrf.mxu0  ;;  %2089 = vmatprep.subr.bf16.mxu1 %v2591_v51 }
 0x25e   : > { %v1350_v21 = vpop.f32.mrf.mxu0 }
 0x25f   : > { %v1351_v55 = vadd.f32 %v1863_v7, %v1350_v21 }
 0x260   : > { %v2071_v41 = vpop.f32.mrf.mxu0 }
 0x261   : > { %v1372_v4 = vadd.f32 %v2071_v41, %v1863_v7  ;;  %v1482_v61 = vpack.c.bf16 %v1351_v55, %v1348_v56 }
 0x262   : > { %v1363_v49 = vpop.f32.mrf.mxu0 }
 0x263   : > { %2090 = vmatpush3.bf16.xpose.msra.mxu1 %v1396_v34  ;;  %v1394_v34 = vld [vmem:[#allocation2] sm:$0xf]  ;;  %v1364_v35 = vadd.f32 %v1863_v7, %v1363_v49 }
 0x264   : > { %v2072_v30 = vpop.f32.mrf.mxu0  ;;  %2091 = vmatprep.subr.bf16.mxu1 %v2591_v51 }
 0x265   : > { %v1375_v53 = vadd.f32 %v2072_v30, %v1863_v7 }
 0x266   : > { %v1366_v31 = vpop.f32.mrf.mxu0 }
 0x267   : > { %v1485_v29 = vpack.c.bf16 %v1375_v53, %v1372_v4  ;;  %v1367_v33 = vadd.f32 %v1863_v7, %v1366_v31  ;;  %v2284_v31 = vld [vmem:[#allocation15] sm:$0xff]  }
 0x268   : > { %v2075_v2 = vpop.f32.mrf.mxu0 }
 0x269   : > { %v1388_v6 = vadd.f32 %v2075_v2, %v1863_v7  ;;  %v1484_v54 = vpack.c.bf16 %v1367_v33, %v1364_v35 }
 0x26a   : > { %v1379_v59 = vpop.f32.mrf.mxu0 }
 0x26b   : > { %2092 = vmatpush3.bf16.xpose.msra.mxu1 %v1395_v36  ;;  %v1380_v17 = vadd.f32 %v1863_v7, %v1379_v59  ;;  %v1359_v36 = vadd.f32 %v2068_v25, %v1863_v7  ;;  %v1465_v25 = vld [vmem:[#allocation4] sm:$0xff] }
 0x26c   : > { %v2076_v63 = vpop.f32.mrf.mxu0 }
 0x26d   : > { %v1391_v32 = vadd.f32 %v2076_v63, %v1863_v7  ;;  %v1483_v40 = vpack.c.bf16 %v1359_v36, %v1356_v15 }
 0x26e   : > { %v1382_v46 = vpop.f32.mrf.mxu0 }
 0x26f   : > { %v1487_v28 = vpack.c.bf16 %v1391_v32, %v1388_v6  ;;  %v1383_v47 = vadd.f32 %v1863_v7, %v1382_v46 }
 0x271   : > { %2098 = vmatpush3.bf16.msra.mxu0 %v1487_v28  ;;  %v1486_v37 = vpack.c.bf16 %v1383_v47, %v1380_v17 }
 0x272   : > { %2099 = vmatprep.subr.bf16.mxu0 %v2591_v51  ;;  %2094 = vmatmul.mubr.bf16.vlgmr.msra.gmra.mxu1 %v1394_v34  ;;  %v1872_v34 = vld [vmem:[%s3324_s25] ss:$0 sm:$0xff] }
 0x275   : > { %2100 = vmatpush3.bf16.msra.mxu0 %v1486_v37  ;;  %v1655_v37 = vld [vmem:[%s2841_s21] sm:$0xff]  ;;  %s1659_s21 = scalar_lea.sflag [#allocation8], %s2835_s23 }
 0x276   : > { %2101 = vmatprep.subr.bf16.mxu0 %v2591_v51 }
 0x279   : > { %2102 = vmatpush3.bf16.msra.mxu0 %v1485_v29 }
 0x27a   : > { %2103 = vmatprep.subr.bf16.mxu0 %v2591_v51 }
 0x27d   : > { %2104 = vmatpush3.bf16.msra.mxu0 %v1484_v54 }
 0x27e   : > { %2105 = vmatprep.subr.bf16.mxu0 %v2591_v51 }
 0x281   : > { %2106 = vmatpush3.bf16.msra.mxu0 %v1483_v40 }
 0x282   : > { %2107 = vmatprep.subr.bf16.mxu0 %v2591_v51 }
 0x285   : > { %2108 = vmatpush3.bf16.msra.mxu0 %v1482_v61 }
 0x286   : > { %2109 = vmatprep.subr.bf16.mxu0 %v2591_v51 }
 0x289   : > { %2110 = vmatpush3.bf16.msra.mxu0 %v1481_v8 }
 0x28a   : > { %2111 = vmatprep.subr.bf16.mxu0 %v2591_v51 }
 0x28d   : > { %2112 = vmatpush3.bf16.msra.mxu0 %v1480_v16 }
 0x28e   : > { %2117 = vmatprep.subr.bf16.mxu0 %v2591_v51 }
 0x332   : > { %v1444_v5 = vpop.f32.mrf.mxu1 }
 0x333   : > { %v1445_v1 = vadd.f32 %v1444_v5, %v1409_v0 }
 0x334   : > { %v2095_v19 = vpop.f32.mrf.mxu1 }
 0x335   : > { %1451 = vmax.xlane.f32.xlu0 %v1445_v1 }
 0x336   : > { %v1447_v20 = vpop.f32.mrf.mxu1 }
 0x338   : > { %v2096_v22 = vpop.f32.mrf.mxu1 }
 0x3be   : > { %v1452_v39 = vpop.xlane.xlu0 %1451 }
 0x3bf   : > { %v1453_v52 = vmax.f32 %v1450_v50, %v1452_v39 }
 0x3c1   : > { %v1454_v23 = vsub.f32 %v1450_v50, %v1453_v52  ;;  %1530 = vst.msk [vmem:[#allocation3] sm:$0xff] %vm760_vm1, %v1453_v52  ;;  %1459 = vperm.xlu1 %2251, %v1453_v52  }
 0x3c3   : > { %v1455_v13 = vmul.f32 1.442695, %v1454_v23 }
 0x43c   : > { %v1460_v26 = vpop.permute.xlu1 %1459 }
 0x43d   : > { %v1462_v42 = vsub.f32 %v1445_v1, %v1460_v26 }
 0x43f   : > { %v1463_v57 = vmul.f32 1.442695, %v1462_v42 }
 0x441   : > { %2319 = vpow2.f32 %v1463_v57 }
 0x442   : > { %2321 = vpow2.f32 %v1455_v13 }
 0x44e   : > { %v2320_v14 = vpop.eup %2319 }
 0x44f   : > { %1467 = vadd.xlane.f32.xlu0 %v2320_v14  ;;  %v1479_v12 = vpack.c.bf16 %v2320_v14, %v2320_v14  ;;  %v2322_v43 = vpop.eup %2321 }
 0x450   : > { %v1466_v21 = vmul.f32 %v2322_v43, %v1465_v25 }
 0x451   : > { %2114 = vmatmul.mubr.bf16.vlgmr.msra.gmra.mxu0 %v1479_v12 }
 0x452   : > { %2133 = vmatprep.mubr.msk.bf16.mxu0 %vm2592_vm0, %v2591_v51  ;;  %2118 = vmatpush3.bf16.msra.mxu0 %v2277_v58 }
 0x453   : > { %2119 = vmatprep.subr.bf16.mxu0 %v2591_v51 }
 0x456   : > { %2120 = vmatpush3.bf16.msra.mxu0 %v2278_v44 }
 0x457   : > { %2121 = vmatprep.subr.bf16.mxu0 %v2591_v51 }
 0x45a   : > { %2122 = vmatpush3.bf16.msra.mxu0 %v2279_v45 }
 0x45b   : > { %2123 = vmatprep.subr.bf16.mxu0 %v2591_v51 }
 0x45e   : > { %2124 = vmatpush3.bf16.msra.mxu0 %v2280_v48 }
 0x45f   : > { %2125 = vmatprep.subr.bf16.mxu0 %v2591_v51 }
 0x462   : > { %2126 = vmatpush3.bf16.msra.mxu0 %v2281_v27 }
 0x463   : > { %2127 = vmatprep.subr.bf16.mxu0 %v2591_v51 }
 0x465   : > { %1475 = vperm.xlu0 %2252, %v2322_v43  }
 0x466   : > { %2128 = vmatpush3.bf16.msra.mxu0 %v2282_v24 }
 0x467   : > { %2129 = vmatprep.subr.bf16.mxu0 %v2591_v51 }
 0x46a   : > { %2130 = vmatpush3.bf16.msra.mxu0 %v2283_v10 }
 0x46b   : > { %2131 = vmatprep.subr.bf16.mxu0 %v2591_v51 }
 0x46e   : > { %2132 = vmatpush3.bf16.msra.mxu0 %v2284_v31 }
 0x4d8   : > { %v1468_v41 = vpop.xlane.xlu0 %1467 }
 0x4d9   : > { %v1469_v49 = vadd.f32 %v1468_v41, %v1466_v21 }
 0x4db   : > { %1471 = vst.msk [vmem:[#allocation4] sm:$0xff] %vm760_vm1, %v1469_v49 }
 0x4e0   : > { %v1476_v51 = vpop.permute.xlu0 %1475 }
 0x4e1   : > { %v1478_v32 = vmul.f32 0.0, %v1476_v51 }
 0x4e2   : > { %v1535_v30 = vld [vmem:[#allocation4] sm:$0xff] }
 0x4e3   : > { %2323 = vrcp.f32 %v1535_v30 }
 0x4f0   : > { %v2324_v2 = vpop.eup %2323 }
 0x4f1   : > { %1539 = vperm.xlu1 %2251, %v2324_v2  }
 0x511   : > { %v1522_v59 = vpop.f32.mrf.mxu0 }
 0x512   : > { %v1528_v46 = vadd.f32 %v1522_v59, %v1478_v32 }
 0x513   : > { %v2115_v7 = vpop.f32.mrf.mxu0 }
 0x515   : > { %v1525_v63 = vpop.f32.mrf.mxu0 }
 0x517   : > { %v2116_v6 = vpop.f32.mrf.mxu0 }
 0x56c   : > { %v1540_v28 = vpop.permute.xlu1 %1539 }
 0x56d   : > { %v1542_v47 = vmul.f32 %v1540_v28, %v1528_v46 }
 0x56f   : > { %v1543_v17 = vpack.c.bf16 %v1542_v47, %v1542_v47 }
 0x571   : > { %2134 = vmatmul.mubr.bf16.vlgmr.msra.gmra.mxu0 %v1543_v17 }
 0x631   : > { %v1649_v53 = vpop.f32.mrf.mxu0 }
 0x632   : > { %v1650_v4 = vadd.f32 %v1872_v34, %v1649_v53 }
 0x633   : > { %v2135_v29 = vpop.f32.mrf.mxu0 }
 0x634   : > { %v1656_v33 = vadd.f32 %v1655_v37, %v1650_v4 }
 0x635   : > { %v1652_v35 = vpop.f32.mrf.mxu0 }
 0x636   : > { %1657 = vst [vmem:[%s608_s22] sm:$0xff] %v1656_v33 }
 0x637   : > { %v2136_v36 = vpop.f32.mrf.mxu0 }
 0x638   : > { %2498 = shalt.err (!%p2495_p5)
}
 0x639   : > { %s2499_s29 = scalar_lea.hbm %s3226_s10, 128  ;;  %s2503_s20 = scalar_lea.hbm %s3325_s12, 256 }
 0x63a   : > { %p2500_p6 = scmp.ne.s32.totalorder %s3226_s10, %s2499_s29  ;;  %p2504_p4 = scmp.lt.s32.totalorder %s3226_s10, %s3325_s12 }
 0x63b   : > { %p2505_p7 = scmp.lt.s32.totalorder %s2503_s20, %s2499_s29 }
 0x63c   : > { %p2501_p13 = pnand %p2500_p6, %p2789_p2 }
 0x63d   : > { %p2506_p1 = por %p2505_p7, %p2504_p4 }
 0x63e   : > { %p2502_p11 = pneg %p2501_p13 }
 0x640   : > { %p2507_p3 = pnand %p2506_p1, %p2502_p11 }
 0x642   : > { %2510 = shalt.err (!%p2507_p3)
}
 0x643   : > { %2157 = dma.vmem_to_hbm [thread:$0]  (%p2789_p2), %s3228_s6, 128, %s3226_s10, %s1659_s21  }
 0x644 PF: > { %s3326_s25 = sld [smem:[#allocation24_spill]]  ;;  %p3328_p0 = scmp.ge.s32.totalorder %s2581_s18, 2 }
 0x646   : > { %p2180_p9 = pnand %p3328_p0, %p2796_p8 }
 0x648   : > { %p2181_p10 = pneg %p2180_p9 }
 0x64a   : > { %s1685_s22 = sand.u32 1, %s3326_s25  }
 0x64b   : > { %s1686_s8 = scalar_lea.sflag [#allocation8], %s1685_s22 }
 0x64c   : > { %2556 = dma.done.wait (%p2181_p10), %s1686_s8, 128  }
 0x64d   : > { %2558 = vsyncadd (%p2181_p10), %s1686_s8, 4294967168  ;;  %s35_s18 = sadd.s32 1, %s2581_s18   ;;  %s3329_s26 = sld [smem:[#allocation25_spill]] }
 0x64e   : > { %p32_p12 = scmp.ge.s32.totalorder %s35_s18, 4   ;;  %s3330_s15 = sld [smem:[#allocation28_spill]] }
 0x64f   : > { %s3331_s6 = sld [smem:[#allocation27_spill]]  ;;  %s3332_s29 = smov %s2565_s30 }
 0x650   : > { %s3334_s16 = smov %s2577_s17 }
 0x651   :  { %34 = sbr.rel (!%p32_p12) target bundleno = 18 (0x12), region = 158 }
 0x653   : > { %s3333_s30 = smov %s3329_s26 }
 0x655   : > { %s3335_s17 = smov %s3331_s6 }
 0x656   :  { %1691 = vsyncpa [#allocation7], 1 }
 0x657   :  { %1693 = vsyncpa [#allocation7 + $0x1], 1 }
 0x658   :  { %1694 = vsyncpa [#allocation10], 1 }
 0x659   :  { %1696 = vsyncpa [#allocation10 + $0x1], 1 }
 0x65a   :  { %1697 = vsyncpa [#allocation13], 1 }
 0x65b   :  { %1698 = vsyncpa [#allocation16], 1 }
 0x65c   :  { %1699 = vsyncpa [#allocation8], 1 }
 0x65d   :  { %1701 = vsyncpa [#allocation8 + $0x1], 1 }

// kernel: tpu_custom_call.1
= control target key start
LH: loop header
LB: loop body
LE: loop exit
PB: predicated region body
PF: predicated region fallthrough
CT: control target
= control target key end

     0   :  { %s3274_s0 = inlined_call_operand.hbm [shape: f32[2,8,128], index: 0, kind: input, shape index: {}]   ;;  %s3275_s1 = inlined_call_operand.hbm [shape: bf16[2,128,128], index: 1, kind: input, shape index: {}]   ;;  %s3276_s2 = inlined_call_operand.vmem [shape: f32[1,128], index: 2, kind: input, shape index: {}]   ;;  %s3277_s3 = inlined_call_operand.vmem [shape: f32[1,128], index: 3, kind: input, shape index: {}]   ;;  %s3278_s4 = inlined_call_operand.vmem [shape: f32[1,128], index: 4, kind: input, shape index: {}]   ;;  %s3279_s5 = inlined_call_operand.vmem [shape: f32[1,128], index: 5, kind: input, shape index: {}]   ;;  %s3280_s6 = inlined_call_operand.hbm [shape: bf16[128,128], index: 6, kind: input, shape index: {}]   ;;  %s3281_s7 = inlined_call_operand.vmem [shape: f32[1,128], index: 7, kind: input, shape index: {}]   ;;  %s3282_s8 = inlined_call_operand.hbm [shape: bf16[128,128], index: 8, kind: input, shape index: {}]   ;;  %s3283_s9 = inlined_call_operand.vmem [shape: f32[1,128], index: 9, kind: input, shape index: {}]   ;;  %s3284_s10 = inlined_call_operand.hbm [shape: bf16[128,128], index: 10, kind: input, shape index: {}]   ;;  %s3285_s11 = inlined_call_operand.vmem [shape: f32[1,128], index: 11, kind: input, shape index: {}]   ;;  %s3286_s12 = inlined_call_operand.hbm [shape: bf16[128,128], index: 12, kind: input, shape index: {}]   ;;  %s3287_s13 = inlined_call_operand.vmem [shape: f32[1,128], index: 13, kind: input, shape index: {}]   ;;  %s3288_s14 = inlined_call_operand.hbm [shape: f32[2,8,128], index: 14, kind: output, shape index: {}]  }
   0x1   :  { %3296 = sst [smem:[#allocation30_spill]] %s3274_s0 }
   0x2   :  { %3297 = sst [smem:[#allocation31_spill]] %s3280_s6 }
   0x3   :  { %3298 = sst [smem:[#allocation32_spill]] %s3282_s8 }
   0x4   :  { %3299 = sst [smem:[#allocation33_spill]] %s3284_s10 }
   0x5   :  { %3300 = sst [smem:[#allocation34_spill]] %s3286_s12 }
   0x6   :  { %3301 = sst [smem:[#allocation35_spill]] %s3287_s13 }
   0x7   :  { %3302 = sst [smem:[#allocation36_spill]] %s3288_s14 }
   0x8   :  { %19 = vsyncpa [#allocation7], 0 }
   0x9   :  { %21 = vsyncpa [#allocation7 + $0x1], 0 }
   0xa   :  { %22 = vsyncpa [#allocation10], 0 }
   0xb   :  { %24 = vsyncpa [#allocation10 + $0x1], 0 }
   0xc   :  { %25 = vsyncpa [#allocation13], 0 }
   0xd   :  { %26 = vsyncpa [#allocation16], 0 }
   0xe   :  { %27 = vsyncpa [#allocation8], 0 }
   0xf   :  { %29 = vsyncpa [#allocation8 + $0x1], 0  ;;  %s2671_s29 = smov 0   ;;  %s2673_s30 = smov 0  }
  0x10   :  { %s2675_s15 = smov 0   ;;  %s2677_s16 = smov 0  }
  0x11   :  { %s2679_s17 = smov 0   ;;  %s2681_s18 = smov 0  }
  0x12 LB: > { %3303 = sst [smem:[#allocation24_spill]] %s2561_s29  ;;  %s2702_s19 = sadd.s32 4294967295, %s2581_s18   ;;  %s2581_s18 = sphi %s2681_s18, %s35_s18   ;;  %s2577_s17 = sphi %s2679_s17, %s3335_s17   ;;  %s2573_s16 = sphi %s2677_s16, %s3334_s16   ;;  %s2569_s15 = sphi %s2675_s15, %s3330_s15   ;;  %s2565_s30 = sphi %s2673_s30, %s3333_s30   ;;  %s2561_s29 = sphi %s2671_s29, %s3332_s29  }
  0x13   : > { %3304 = sst [smem:[#allocation25_spill]] %s2569_s15  ;;  %p1822_p0 = scmp.ge.s32.totalorder %s2581_s18, 1 }
  0x14   : > { %3305 = sst [smem:[#allocation26_spill]] %s2573_s16  ;;  %p77_p1 = scmp.eq.s32.totalorder %s2702_s19, 0 }
  0x15   : > { %p395_p2 = scmp.lt.s32.totalorder %s2581_s18, 3  ;;  %s2583_s21 = smov [#allocation11]  }
  0x16   : > { %s419_s22 = sshll.u32 %s2583_s21, 4  ;;  %s2584_s24 = smov [#allocation12]   ;;  %s420_s22 = int_to_ptr.vmem [resolvable:$true] %s419_s22 }
  0x17   : > { %p2707_p3 = pnand %p1822_p0, %p395_p2  ;;  %s435_s25 = sshll.u32 %s2584_s24, 4  ;;  %s436_s25 = int_to_ptr.vmem [resolvable:$true] %s435_s25 }
  0x18   : > { %s2585_s26 = smov [#allocation14]   ;;  %s2336_s28 = scalar_lea.vmem %s420_s22, 1024 }
  0x19   : > { %p2159_p4 = pneg %p2707_p3  ;;  %s451_s27 = sshll.u32 %s2585_s26, 4  ;;  %s452_s27 = int_to_ptr.vmem [resolvable:$true] %s451_s27 }
  0x1a   : > { %p2337_p8 = scmp.ne.s32.totalorder %s420_s22, %s2336_s28  ;;  %p2344_p11 = scmp.lt.s32.totalorder %s420_s22, %s420_s22 }
  0x1b   : > { %p2716_p6 = pnand %p2159_p4, %p77_p1  ;;  %p2345_p12 = scmp.lt.s32.totalorder %s2336_s28, %s2336_s28 }
  0x1d   : > { %p2327_p7 = pneg %p2716_p6  ;;  %p2346_p13 = por %p2345_p12, %p2344_p11 }
  0x1f   : > { %p2339_p9 = pnand %p2337_p8, %p2327_p7 }
  0x21   : > { %p2340_p10 = pneg %p2339_p9 }
  0x23   : > { %p2347_p0 = pnand %p2346_p13, %p2340_p10 }
  0x25   : > { %2350 = shalt.err (!%p2347_p0)
}
  0x26   : > { %s3290_s21 = smov 64   ;;  %s3291_s24 = smov 4  }
  0x27   : > { %s3308_s6 = sld [smem:[#allocation31_spill]]  ;;  %s2362_s13 = scalar_lea.vmem %s436_s25, 1024 }
  0x28   : > { %p2363_p2 = scmp.ne.s32.totalorder %s436_s25, %s2362_s13  ;;  %p2370_p9 = scmp.lt.s32.totalorder %s436_s25, %s436_s25 }
  0x29   : > { %p2371_p10 = scmp.lt.s32.totalorder %s2362_s13, %s2362_s13 }
  0x2a   : > { %p2365_p4 = pnand %p2363_p2, %p2327_p7 }
  0x2b   : > { %p2372_p11 = por %p2371_p10, %p2370_p9 }
  0x2c   : > { %p2366_p8 = pneg %p2365_p4 }
  0x2d   : > { %2162 = dma.hbm_to_vmem [thread:$0]  (!%p2716_p6), %s3308_s6, 1024, %s420_s22, [#allocation10], %s3290_s21, %s3290_s21, %s3291_s24  }
  0x2e   : > { %p2373_p12 = pnand %p2372_p11, %p2366_p8 }
  0x30   : > { %2376 = shalt.err (!%p2373_p12)
}
  0x31   : > { %s3309_s8 = sld [smem:[#allocation32_spill]]  ;;  %s2388_s14 = scalar_lea.vmem %s452_s27, 1024 }
  0x32   : > { %p2389_p13 = scmp.ne.s32.totalorder %s452_s27, %s2388_s14  ;;  %p2396_p4 = scmp.lt.s32.totalorder %s452_s27, %s452_s27 }
  0x33   : > { %p2397_p8 = scmp.lt.s32.totalorder %s2388_s14, %s2388_s14 }
  0x34   : > { %p2391_p0 = pnand %p2389_p13, %p2327_p7 }
  0x35   : > { %p2398_p9 = por %p2397_p8, %p2396_p4 }
  0x36   : > { %p2392_p2 = pneg %p2391_p0 }
  0x37   : > { %2165 = dma.hbm_to_vmem [thread:$0]  (!%p2716_p6), %s3309_s8, 1024, %s436_s25, [#allocation13], %s3290_s21, %s3290_s21, %s3291_s24  }
  0x38   : > { %p2399_p10 = pnand %p2398_p9, %p2392_p2 }
  0x3a   : > { %2402 = shalt.err (!%p2399_p10)
}
  0x3b   : > { %s3310_s10 = sld [smem:[#allocation33_spill]]  ;;  %s2588_s22 = smov [#allocation15]  }
  0x3c   : > { %s467_s25 = sshll.u32 %s2588_s22, 4  ;;  %s468_s25 = int_to_ptr.vmem [resolvable:$true] %s467_s25 }
  0x3d   : > { %s2414_s26 = scalar_lea.vmem %s468_s25, 1024  ;;  %p2422_p0 = scmp.lt.s32.totalorder %s468_s25, %s468_s25 }
  0x3e   : > { %p2415_p11 = scmp.ne.s32.totalorder %s468_s25, %s2414_s26  ;;  %p2423_p2 = scmp.lt.s32.totalorder %s2414_s26, %s2414_s26 }
  0x40   : > { %p2417_p12 = pnand %p2415_p11, %p2327_p7  ;;  %p2424_p4 = por %p2423_p2, %p2422_p0 }
  0x41   : > { %2168 = dma.hbm_to_vmem [thread:$0]  (!%p2716_p6), %s3310_s10, 1024, %s452_s27, [#allocation13], %s3290_s21, %s3290_s21, %s3291_s24  }
  0x42   : > { %p2418_p13 = pneg %p2417_p12 }
  0x44   : > { %p2425_p8 = pnand %p2424_p4, %p2418_p13 }
  0x46   : > { %2428 = shalt.err (!%p2425_p8)
}
  0x47   : > { %s3311_s12 = sld [smem:[#allocation34_spill]]  ;;  %s1821_s23 = sadd.s32 4294967294, %s2581_s18  }
  0x48   : > { %s54_s14 = sadd.s32 1, %s2577_s17  ;;  %s63_s13 = sadd.s32 1, %s2569_s15 }
  0x49   : > { %p56_p7 = scmp.ge.s32.totalorder %s54_s14, 2  ;;  %p70_p9 = scmp.ne.s32.totalorder %s2569_s15, %s2565_s30 }
  0x4a   : > { %p71_p10 = scmp.eq.s32.totalorder %s2581_s18, 0  ;;  %p76_p12 = scmp.ne.s32.totalorder %s2565_s30, %s2561_s29 }
  0x4b   : > { %s3337_s14 = smov (%p56_p7, %s54_s14), 0  ;;  %p388_p4 = scmp.eq.s32.totalorder %s1821_s23, 1 }
  0x4c   : > { %3312 = sst [smem:[#allocation27_spill]] %s3337_s14  ;;  %p2774_p11 = por %p71_p10, %p70_p9 }
  0x4d   : > { %2171 = dma.hbm_to_vmem [thread:$0]  (!%p2716_p6), %s3311_s12, 1024, %s468_s25, [#allocation16], %s3290_s21, %s3290_s21, %s3291_s24  }
  0x4e   : > { %s58_s22 = ssub.s32 %s2577_s17, %s3337_s14  ;;  %p382_p6 = scmp.eq.s32.totalorder %s2702_s19, 1 }
  0x4f   : > { %p61_p13 = scmp.eq.s32.totalorder %s58_s22, 0  ;;  %p2785_p0 = por %p77_p1, %p76_p12 }
  0x50   : > { %p2789_p2 = por %p382_p6, %p70_p9  ;;  %p2796_p8 = por %p388_p4, %p76_p12 }
  0x51   : > { %s2794_s27 = scalar_select %p61_p13, %s2569_s15, %s63_s13  }
  0x52   : > { %s3317_s28 = scalar_select %p2796_p8, 1, 0 }
  0x53   : > { %3316 = sst [smem:[#allocation28_spill]] %s2794_s27  ;;  %p2187_p7 = scmp.lt.s32.totalorder %s2581_s18, 2 }
  0x54   : > { %3318 = sst [smem:[#allocation29_spill]] %s3317_s28  ;;  %s484_s21 = sand.u32 1, %s2569_s15  }
  0x55   : > { %s1829_s24 = sshll.u32 %s2577_s17, 7  ;;  %s1828_s22 = sshll.u32 %s484_s21, 3 }
  0x56   : > { %s3319_s0 = sld [smem:[#allocation30_spill]]  ;;  %s488_s12 = scalar_lea.vmem [#allocation6], %s1828_s22 }
  0x57   : > { %s496_s14 = sshll.u32 %s488_s12, 4  ;;  %p2808_p9 = pnand %p2187_p7, %p2774_p11  ;;  %s497_s14 = int_to_ptr.vmem [resolvable:$true] %s496_s14 }
  0x58   : > { %s1830_s23 = sshll.u32 %s484_s21, 6  ;;  %s485_s13 = scalar_lea.sflag [#allocation7], %s484_s21 }
  0x59   : > { %p2431_p10 = pneg %p2808_p9  ;;  %s2442_s27 = scalar_lea.vmem %s497_s14, 128 }
  0x5a   : > { %p2443_p12 = scmp.ne.s32.totalorder %s497_s14, %s2442_s27  ;;  %s2589_s6 = smov [#allocation6]  }
  0x5b   : > { %s2447_s8 = sshll.u32 %s2589_s6, 4  ;;  %s2448_s8 = int_to_ptr.vmem [resolvable:$false] %s2447_s8 }
  0x5c   : > { %s494_s10 = scalar_lea.hbm %s3319_s0, %s1829_s24  ;;  %p2445_p6 = pnand %p2443_p12, %p2431_p10 }
  0x5d   : > { %s2449_s12 = scalar_lea.vmem %s2448_s8, 256  ;;  %p2450_p11 = scmp.lt.s32.totalorder %s497_s14, %s2448_s8 }
  0x5e   : > { %p2446_p13 = pneg %p2445_p6  ;;  %p2451_p4 = scmp.lt.s32.totalorder %s2449_s12, %s2442_s27 }
  0x60   : > { %p2452_p7 = por %p2451_p4, %p2450_p11 }
  0x62   : > { %p2453_p5 = pnand %p2452_p7, %p2446_p13 }
  0x64   : > { %2456 = shalt.err (!%p2453_p5)
}
  0x65   : > { %2175 = dma.hbm_to_vmem [thread:$0]  (!%p2808_p9), %s494_s10, 128, %s497_s14, %s485_s13  }
  0x66   : > { %s1885_s21 = sshll.u32 %s2577_s17, 10  ;;  %s507_s24 = scalar_lea.vmem [#allocation9], %s1830_s23 }
  0x67   : > { %s516_s16 = sshll.u32 %s507_s24, 4  ;;  %s503_s22 = sand.u32 1, %s2581_s18   ;;  %s517_s16 = int_to_ptr.vmem [resolvable:$true] %s516_s16 }
  0x68   : > { %s515_s15 = scalar_lea.hbm %s3275_s1, %s1885_s21  ;;  %s504_s8 = scalar_lea.sflag [#allocation10], %s503_s22 }
  0x69   : > { %s2470_s27 = scalar_lea.vmem %s517_s16, 1024  ;;  %s2590_s12 = smov [#allocation9]  }
  0x6a   : > { %p2471_p12 = scmp.ne.s32.totalorder %s517_s16, %s2470_s27  ;;  %s2475_s28 = sshll.u32 %s2590_s12, 4  ;;  %s2476_s28 = int_to_ptr.vmem [resolvable:$false] %s2475_s28 }
  0x6b   : > { %s2477_s10 = scalar_lea.vmem %s2476_s28, 2048  ;;  %p2478_p13 = scmp.lt.s32.totalorder %s517_s16, %s2476_s28 }
  0x6c   : > { %p2473_p5 = pnand %p2471_p12, %p2431_p10  ;;  %p2479_p11 = scmp.lt.s32.totalorder %s2477_s10, %s2470_s27 }
  0x6e   : > { %p2474_p6 = pneg %p2473_p5  ;;  %p2480_p4 = por %p2479_p11, %p2478_p13 }
  0x70   : > { %p2481_p7 = pnand %p2480_p4, %p2474_p6 }
  0x72   : > { %2484 = shalt.err (!%p2481_p7)
}
  0x73   : > { %s3321_s0 = smov 4   ;;  %s3322_s14 = smov 64  }
  0x74   : > { %2178 = dma.hbm_to_vmem [thread:$0]  (!%p2808_p9), %s515_s15, 1024, %s517_s16, %s504_s8, %s3322_s14, %s3322_s14, %s3321_s0  }
  0x75   : > { %528 = sbr.rel (%p2707_p3) target bundleno = 1604 (0x644), region = 76  ;;  %s2835_s23 = sand.u32 (!%p2707_p3), 1, %s2565_s30  }
  0x76   : > { %s1834_s28 = sshll.u32 (!%p2707_p3), %s2835_s23, 3  ;;  %s531_s13 = scalar_lea.sflag (!%p2707_p3), [#allocation7], %s2835_s23 }
  0x77   : > { %s2841_s21 = scalar_lea.vmem (!%p2707_p3), [#allocation6], %s1834_s28 }
  0x7a   : > { %2536 = dma.done.wait (%p2785_p0), %s531_s13, 128  }
  0x7b   : > { %2538 = vsyncadd (%p2785_p0), %s531_s13, 4294967168  ;;  %s539_s29 = sand.u32 1, %s2702_s19   ;;  %s1835_s15 = sshll.u32 %s2835_s23, 6 }
  0x7c   : > { %s540_s20 = scalar_lea.sflag [#allocation10], %s539_s29  ;;  %s2849_s24 = scalar_lea.vmem [#allocation9], %s1835_s15 }
  0x7d   : > { %2540 = dma.done.wait (%p2785_p0), %s540_s20, 1024  }
  0x7e   : > { %2542 = vsyncadd (%p2785_p0), %s540_s20, 4294966272 }
  0x7f   : > { %2544 = dma.done.wait (%p77_p1), [#allocation10], 1024  }
  0x80   : > { %2546 = vsyncadd (%p77_p1), [#allocation10], 4294966272 }
  0x81   : > { %2548 = dma.done.wait (%p77_p1), [#allocation13], 2048  }
  0x82   : > { %2550 = vsyncadd (%p77_p1), [#allocation13], 4294965248 }
  0x83   : > { %2552 = dma.done.wait (%p77_p1), [#allocation16], 1024  }
  0x84   : > { %2554 = vsyncadd (%p77_p1), [#allocation16], 4294966272  ;;  %v1918_v0 = vld [vmem:[%s2849_s24 + $0x8] sm:$0xff]   ;;  %v1887_v1 = vld [vmem:[%s2849_s24] sm:$0xff]   ;;  %v2591_v51 = vmov 0.0   ;;  %vm2592_vm0 = vmmov 0  }
  0x85   : > { %v2869_v2 = vunpack.c.l.bf16 %v1918_v0  ;;  %v2871_v3 = vunpack.c.l.bf16 %v1887_v1  ;;  %v2875_v4 = vunpack.c.h.bf16 %v1918_v0  ;;  %v2877_v5 = vunpack.c.h.bf16 %v1887_v1  ;;  %v1919_v8 = vld [vmem:[%s2849_s24 + $0x10] sm:$0xff]   ;;  %v1920_v11 = vld [vmem:[%s2849_s24 + $0x18] sm:$0xff]   ;;  %v1921_v22 = vld [vmem:[%s2849_s24 + $0x20] sm:$0xff]   ;;  %1993 = vmatprep.subr.bf16.mxu0 %v2591_v51  ;;  %2009 = vmatprep.mubr.msk.bf16.mxu0 %vm2592_vm0, %v2591_v51  ;;  %s3323_s20 = sld [smem:[#allocation26_spill]]  ;;  %s608_s22 = scalar_lea.vmem [#allocation17], %s1834_s28 }
  0x86   : > { %v2891_v12 = vunpack.c.h.bf16 %v1919_v8  ;;  %v2893_v13 = vunpack.c.l.bf16 %v1919_v8  ;;  %v2897_v14 = vunpack.c.h.bf16 %v1920_v11  ;;  %v2899_v15 = vunpack.c.l.bf16 %v1920_v11  ;;  %v2253_v16 = vld [vmem:[#allocation12 + $0x38] sm:$0xff]   ;;  %v2254_v19 = vld [vmem:[#allocation12 + $0x30] sm:$0xff]   ;;  %v2255_v23 = vld [vmem:[#allocation12 + $0x28] sm:$0xff]   ;;  %s3324_s25 = sld [smem:[#allocation35_spill]]  ;;  %s1673_s6 = sshll.u32 %s608_s22, 4  ;;  %s3228_s6 = int_to_ptr.vmem [resolvable:$true] %s1673_s6 }
  0x87   : > { %802 = vadd.xlane.f32.xlu1 %v2869_v2  ;;  %798 = vadd.xlane.f32.xlu0 %v2871_v3  ;;  %v847_v6 = vmul.f32 %v2877_v5, %v2877_v5  ;;  %v846_v7 = vmul.f32 %v2871_v3, %v2871_v3  ;;  %v849_v9 = vmul.f32 %v2875_v4, %v2875_v4  ;;  %v2912_v24 = vunpack.c.h.bf16 %v1921_v22  ;;  %v1922_v26 = vld [vmem:[%s2849_s24 + $0x28] sm:$0xff]   ;;  %v2256_v27 = vld [vmem:[#allocation12 + $0x20] sm:$0xff]   ;;  %v2257_v30 = vld [vmem:[#allocation12 + $0x18] sm:$0xff]   ;;  %s3325_s12 = sld [smem:[#allocation36_spill]]  ;;  %s2485_s0 = scalar_lea.vmem %s3228_s6, 128 }
  0x88   : > { %v848_v10 = vmul.f32 %v2869_v2, %v2869_v2  ;;  %2013 = vmatprep.subr.bf16.mxu1 %v2253_v16  ;;  %v851_v17 = vmul.f32 %v2891_v12, %v2891_v12  ;;  %v850_v18 = vmul.f32 %v2893_v13, %v2893_v13  ;;  %v853_v20 = vmul.f32 %v2897_v14, %v2897_v14  ;;  %v2258_v33 = vld [vmem:[#allocation12 + $0x10] sm:$0xff]   ;;  %v2259_v37 = vld [vmem:[#allocation12 + $0x8] sm:$0xff]   ;;  %v1924_v40 = vld [vmem:[%s2849_s24 + $0x38] sm:$0xff]   ;;  %p2486_p1 = scmp.ne.s32.totalorder %s3228_s6, %s2485_s0  ;;  %s2595_s28 = smov [#allocation17]  }
  0x89   : > { %2014 = vmatpush3.bf16.msra.mxu1 %v2253_v16  ;;  %v852_v21 = vmul.f32 %v2899_v15, %v2899_v15  ;;  %v2914_v25 = vunpack.c.l.bf16 %v1921_v22  ;;  %v2919_v28 = vunpack.c.h.bf16 %v1922_v26  ;;  %v2921_v29 = vunpack.c.l.bf16 %v1922_v26  ;;  %v1923_v36 = vld [vmem:[%s2849_s24 + $0x30] sm:$0xff]   ;;  %v2260_v41 = vld [vmem:[#allocation12] sm:$0xff]   ;;  %v2261_v50 = vld [vmem:[#allocation11 + $0x38] sm:$0xff]   ;;  %s2489_s14 = sshll.u32 %s2595_s28, 4  ;;  %s2490_s14 = int_to_ptr.vmem [resolvable:$false] %s2489_s14 }
  0x8a   : > { %2015 = vmatprep.subr.bf16.mxu1 %v2254_v19  ;;  %v855_v31 = vmul.f32 %v2912_v24, %v2912_v24  ;;  %v2934_v38 = vunpack.c.h.bf16 %v1923_v36  ;;  %v2936_v39 = vunpack.c.l.bf16 %v1923_v36  ;;  %v2941_v42 = vunpack.c.h.bf16 %v1924_v40  ;;  %v2956_v48 = vld [vmem:[%s2841_s21] sm:$0xff]  ;;  %1994 = vmatpush3.bf16.msra.mxu0 %v2261_v50  ;;  %v2263_v53 = vld [vmem:[#allocation11 + $0x28] sm:$0xff]   ;;  %v2264_v54 = vld [vmem:[#allocation11 + $0x20] sm:$0xff]   ;;  %p2487_p3 = pnand %p2486_p1, %p2789_p2  ;;  %s2491_s13 = scalar_lea.vmem %s2490_s14, 256 }
  0x8b   : > { %804 = vadd.xlane.f32.xlu1 %v2875_v4  ;;  %800 = vadd.xlane.f32.xlu0 %v2877_v5  ;;  %v854_v32 = vmul.f32 %v2914_v25, %v2914_v25  ;;  %v857_v34 = vmul.f32 %v2919_v28, %v2919_v28  ;;  %v856_v35 = vmul.f32 %v2921_v29, %v2921_v29  ;;  %v2943_v43 = vunpack.c.l.bf16 %v1924_v40  ;;  %v2262_v52 = vld [vmem:[#allocation11 + $0x30] sm:$0xff]   ;;  %v2265_v55 = vld [vmem:[#allocation11 + $0x18] sm:$0xff]   ;;  %v2267_v57 = vld [vmem:[#allocation11 + $0x8] sm:$0xff]   ;;  %s1882_s16 = sshll.u32 %s3323_s20, 7  ;;  %p2492_p9 = scmp.lt.s32.totalorder %s3228_s6, %s2490_s14 }
  0x8c   : > { %v859_v44 = vmul.f32 %v2934_v38, %v2934_v38  ;;  %v858_v45 = vmul.f32 %v2936_v39, %v2936_v39  ;;  %v861_v46 = vmul.f32 %v2941_v42, %v2941_v42  ;;  %v621_v49 = vmul.f32 %v2956_v48, %v2956_v48  ;;  %1995 = vmatprep.subr.bf16.mxu0 %v2591_v51  ;;  %v2266_v56 = vld [vmem:[#allocation11 + $0x10] sm:$0xff]   ;;  %v2268_v58 = vld [vmem:[#allocation11] sm:$0xff]   ;;  %v2972_v59 = vld [vmem:[#allocation14 + $0x38] sm:$0xff]   ;;  %p2488_p0 = pneg %p2487_p3  ;;  %p2493_p10 = scmp.lt.s32.totalorder %s2491_s13, %s2485_s0 }
  0x8d   : > { %2016 = vmatpush3.bf16.msra.mxu1 %v2254_v19  ;;  %v860_v47 = vmul.f32 %v2943_v43, %v2943_v43  ;;  %vm760_vm1 = vcmask 7168   ;;  %s3226_s10 = scalar_lea.hbm %s3325_s12, %s1882_s16 }
  0x8e   : > { %2017 = vmatprep.subr.bf16.mxu1 %v2255_v23  ;;  %1996 = vmatpush3.bf16.msra.mxu0 %v2262_v52  ;;  %762 = vst.msk [vmem:[#allocation4] sm:$0xff] %vm760_vm1, %v2591_v51  ;;  %p2494_p12 = por %p2493_p10, %p2492_p9 }
  0x8f   : > { %864 = vadd.xlane.f32.xlu1 %v847_v6  ;;  %862 = vadd.xlane.f32.xlu0 %v846_v7 }
  0x90   : > { %1997 = vmatprep.subr.bf16.mxu0 %v2591_v51  ;;  %p2495_p5 = pnand %p2494_p12, %p2488_p0 }
  0x91   : > { %2018 = vmatpush3.bf16.msra.mxu1 %v2255_v23 }
  0x92   : > { %2019 = vmatprep.subr.bf16.mxu1 %v2256_v27  ;;  %1998 = vmatpush3.bf16.msra.mxu0 %v2263_v53 }
  0x93   : > { %868 = vadd.xlane.f32.xlu1 %v849_v9  ;;  %866 = vadd.xlane.f32.xlu0 %v848_v10 }
  0x94   : > { %1999 = vmatprep.subr.bf16.mxu0 %v2591_v51 }
  0x95   : > { %2020 = vmatpush3.bf16.msra.mxu1 %v2256_v27 }
  0x96   : > { %2021 = vmatprep.subr.bf16.mxu1 %v2257_v30  ;;  %2000 = vmatpush3.bf16.msra.mxu0 %v2264_v54 }
  0x97   : > { %808 = vadd.xlane.f32.xlu1 %v2891_v12  ;;  %806 = vadd.xlane.f32.xlu0 %v2893_v13 }
  0x98   : > { %2001 = vmatprep.subr.bf16.mxu0 %v2591_v51 }
  0x99   : > { %2022 = vmatpush3.bf16.msra.mxu1 %v2257_v30 }
  0x9a   : > { %2023 = vmatprep.subr.bf16.mxu1 %v2258_v33  ;;  %2002 = vmatpush3.bf16.msra.mxu0 %v2265_v55 }
  0x9b   : > { %812 = vadd.xlane.f32.xlu1 %v2897_v14  ;;  %810 = vadd.xlane.f32.xlu0 %v2899_v15 }
  0x9c   : > { %2003 = vmatprep.subr.bf16.mxu0 %v2591_v51 }
  0x9d   : > { %2024 = vmatpush3.bf16.msra.mxu1 %v2258_v33 }
  0x9e   : > { %2025 = vmatprep.subr.bf16.mxu1 %v2259_v37  ;;  %2004 = vmatpush3.bf16.msra.mxu0 %v2266_v56 }
  0x9f   : > { %872 = vadd.xlane.f32.xlu1 %v851_v17  ;;  %870 = vadd.xlane.f32.xlu0 %v850_v18 }
  0xa0   : > { %2005 = vmatprep.subr.bf16.mxu0 %v2591_v51 }
  0xa1   : > { %2026 = vmatpush3.bf16.msra.mxu1 %v2259_v37 }
  0xa2   : > { %2027 = vmatprep.subr.bf16.mxu1 %v2260_v41  ;;  %2006 = vmatpush3.bf16.msra.mxu0 %v2267_v57 }
  0xa3   : > { %876 = vadd.xlane.f32.xlu1 %v853_v20  ;;  %874 = vadd.xlane.f32.xlu0 %v852_v21 }
  0xa4   : > { %2007 = vmatprep.subr.bf16.mxu0 %v2591_v51 }
  0xa5   : > { %2028 = vmatpush3.bf16.msra.mxu1 %v2260_v41 }
  0xa6   : > { %2077 = vmatprep.subr.bf16.mxu1 %v2591_v51  ;;  %2008 = vmatpush3.bf16.msra.mxu0 %v2268_v58 }
  0xa7   : > { %816 = vadd.xlane.f32.xlu1 %v2912_v24  ;;  %814 = vadd.xlane.f32.xlu0 %v2914_v25 }
  0xa8   : > { %2045 = vmatprep.subr.bf16.mxu0 %v2972_v59 }
  0xab   : > { %820 = vadd.xlane.f32.xlu1 %v2919_v28  ;;  %818 = vadd.xlane.f32.xlu0 %v2921_v29 }
  0xaf   : > { %880 = vadd.xlane.f32.xlu1 %v855_v31  ;;  %878 = vadd.xlane.f32.xlu0 %v854_v32 }
  0xb3   : > { %884 = vadd.xlane.f32.xlu1 %v857_v34  ;;  %882 = vadd.xlane.f32.xlu0 %v856_v35 }
  0xb7   : > { %824 = vadd.xlane.f32.xlu1 %v2934_v38  ;;  %822 = vadd.xlane.f32.xlu0 %v2936_v39 }
  0xbb   : > { %828 = vadd.xlane.f32.xlu1 %v2941_v42  ;;  %826 = vadd.xlane.f32.xlu0 %v2943_v43 }
  0xbf   : > { %888 = vadd.xlane.f32.xlu1 %v859_v44  ;;  %886 = vadd.xlane.f32.xlu0 %v858_v45 }
  0xc3   : > { %892 = vadd.xlane.f32.xlu1 %v861_v46  ;;  %890 = vadd.xlane.f32.xlu0 %v860_v47 }
  0xc7   : > { %618 = vadd.xlane.f32.xlu0 %v2956_v48  ;;  %622 = vadd.xlane.f32.xlu1 %v621_v49 }
 0x110   : > { %v803_v60 = vpop.xlane.xlu1 %802  ;;  %v799_v61 = vpop.xlane.xlu0 %798 }
 0x111   : > { %v830_v0 = vmul.f32 0.03125, %v799_v61  ;;  %v2975_v6 = vmul.f32 0.03125, %v803_v60 }
 0x113   : > { %v910_v10 = vmul.f32 %v830_v0, %v830_v0  ;;  %v912_v20 = vmul.f32 %v2975_v6, %v2975_v6  ;;  %v942_v60 = vsub.f32 %v2871_v3, %v830_v0 }
 0x114   : > { %v805_v62 = vpop.xlane.xlu1 %804  ;;  %v801_v63 = vpop.xlane.xlu0 %800 }
 0x115   : > { %v831_v1 = vmul.f32 0.03125, %v801_v63  ;;  %v2977_v7 = vmul.f32 0.03125, %v805_v62 }
 0x117   : > { %v911_v11 = vmul.f32 %v831_v1, %v831_v1  ;;  %v913_v21 = vmul.f32 %v2977_v7, %v2977_v7  ;;  %v943_v61 = vsub.f32 %v2877_v5, %v831_v1  ;;  %v944_v1 = vsub.f32 %v2869_v2, %v2975_v6 }
 0x118   : > { %v865_v8 = vpop.xlane.xlu1 %864  ;;  %v863_v9 = vpop.xlane.xlu0 %862 }
 0x119   : > { %v895_v16 = vmul.f32 0.03125, %v865_v8  ;;  %v894_v17 = vmul.f32 0.03125, %v863_v9 }
 0x11b   : > { %v927_v18 = vsub.f32 %v895_v16, %v911_v11  ;;  %v926_v19 = vsub.f32 %v894_v17, %v910_v10  ;;  %v3004_v10 = vld [vmem:[%s3278_s4] ss:$0 sm:$0xff] }
 0x11c   : > { %v869_v22 = vpop.xlane.xlu1 %868  ;;  %v867_v23 = vpop.xlane.xlu0 %866 }
 0x11d   : > { %v959_v26 = vadd.f32 1e-05, %v927_v18  ;;  %v958_v27 = vadd.f32 1e-05, %v926_v19  ;;  %v897_v30 = vmul.f32 0.03125, %v869_v22  ;;  %v896_v31 = vmul.f32 0.03125, %v867_v23 }
 0x11e   : > { %v945_v23 = vsub.f32 %v2875_v4, %v2977_v7 }
 0x11f   : > { %2285 = vrsqrt.f32 %v959_v26  ;;  %v929_v32 = vsub.f32 %v897_v30, %v913_v21  ;;  %v928_v33 = vsub.f32 %v896_v31, %v912_v20  ;;  %v3011_v21 = vld [vmem:[%s3279_s5] ss:$0 sm:$0xff] }
 0x120   : > { %2287 = vrsqrt.f32 %v958_v27  ;;  %v809_v34 = vpop.xlane.xlu1 %808  ;;  %v807_v35 = vpop.xlane.xlu0 %806 }
 0x121   : > { %v961_v36 = vadd.f32 1e-05, %v929_v32  ;;  %v960_v37 = vadd.f32 1e-05, %v928_v33  ;;  %v2983_v44 = vmul.f32 0.03125, %v809_v34  ;;  %v2985_v45 = vmul.f32 0.03125, %v807_v35 }
 0x123   : > { %2289 = vrsqrt.f32 %v961_v36  ;;  %v915_v52 = vmul.f32 %v2983_v44, %v2983_v44  ;;  %v914_v53 = vmul.f32 %v2985_v45, %v2985_v45 }
 0x124   : > { %2291 = vrsqrt.f32 %v960_v37  ;;  %v813_v40 = vpop.xlane.xlu1 %812  ;;  %v811_v41 = vpop.xlane.xlu0 %810 }
 0x125   : > { %v2987_v46 = vmul.f32 0.03125, %v813_v40  ;;  %v2989_v47 = vmul.f32 0.03125, %v811_v41 }
 0x127   : > { %v917_v62 = vmul.f32 %v2987_v46, %v2987_v46  ;;  %v916_v63 = vmul.f32 %v2989_v47, %v2989_v47 }
 0x128   : > { %v873_v49 = vpop.xlane.xlu1 %872  ;;  %v871_v50 = vpop.xlane.xlu0 %870 }
 0x129   : > { %v899_v54 = vmul.f32 0.03125, %v873_v49  ;;  %v898_v55 = vmul.f32 0.03125, %v871_v50 }
 0x12b   : > { %v931_v56 = vsub.f32 %v899_v54, %v915_v52  ;;  %v930_v57 = vsub.f32 %v898_v55, %v914_v53 }
 0x12c   : > { %v2286_v58 = vpop.eup %2285  ;;  %v877_v8 = vpop.xlane.xlu1 %876 }
 0x12d   : > { %v875_v9 = vpop.xlane.xlu0 %874  ;;  %v2288_v11 = vpop.eup %2287  ;;  %v963_v16 = vadd.f32 1e-05, %v931_v56  ;;  %v962_v17 = vadd.f32 1e-05, %v930_v57  ;;  %v901_v18 = vmul.f32 0.03125, %v877_v8  ;;  %v991_v5 = vmul.f32 %v2286_v58, %v943_v61 }
 0x12e   : > { %v900_v3 = vmul.f32 0.03125, %v875_v9  ;;  %v990_v0 = vmul.f32 %v2288_v11, %v942_v60 }
 0x12f   : > { %2293 = vrsqrt.f32 %v963_v16  ;;  %v933_v19 = vsub.f32 %v901_v18, %v917_v62  ;;  %v1013_v31 = vmul.f32 %v3004_v10, %v991_v5  ;;  %v947_v16 = vsub.f32 %v2891_v12, %v2983_v44 }
 0x130   : > { %v932_v20 = vsub.f32 %v900_v3, %v916_v63  ;;  %v2290_v22 = vpop.eup %2289  ;;  %2295 = vrsqrt.f32 %v962_v17  ;;  %v817_v26 = vpop.xlane.xlu1 %816  ;;  %v1012_v30 = vmul.f32 %v3004_v10, %v990_v0  ;;  %v946_v17 = vsub.f32 %v2893_v13, %v2985_v45 }
 0x131   : > { %v815_v27 = vpop.xlane.xlu0 %814  ;;  %v2292_v2 = vpop.eup %2291  ;;  %v965_v6 = vadd.f32 1e-05, %v933_v19  ;;  %v1035_v34 = vadd.f32 %v3011_v21, %v1013_v31  ;;  %v993_v36 = vmul.f32 %v2290_v22, %v945_v23  ;;  %v3022_v41 = vmul.f32 0.03125, %v817_v26 }
 0x132   : > { %v964_v32 = vadd.f32 1e-05, %v932_v20  ;;  %v1034_v33 = vadd.f32 %v3011_v21, %v1012_v30  ;;  %v992_v35 = vmul.f32 %v2292_v2, %v944_v1  ;;  %v3024_v49 = vmul.f32 0.03125, %v815_v27 }
 0x133   : > { %2297 = vrsqrt.f32 %v965_v6  ;;  %v1015_v50 = vmul.f32 %v3004_v10, %v993_v36  ;;  %v919_v58 = vmul.f32 %v3022_v41, %v3022_v41  ;;  %v949_v13 = vsub.f32 %v2897_v14, %v2987_v46 }
 0x134   : > { %2299 = vrsqrt.f32 %v964_v32  ;;  %v821_v37 = vpop.xlane.xlu1 %820  ;;  %v3019_v7 = vpack.c.bf16 %v1035_v34, %v1034_v33  ;;  %v1014_v40 = vmul.f32 %v3004_v10, %v992_v35  ;;  %v918_v60 = vmul.f32 %v3024_v49, %v3024_v49 }
 0x135   : > { %v819_v4 = vpop.xlane.xlu0 %818  ;;  %v3029_v53 = vmul.f32 0.03125, %v821_v37  ;;  %v1037_v57 = vadd.f32 %v3011_v21, %v1015_v50  ;;  %v948_v30 = vsub.f32 %v2899_v15, %v2989_v47 }
 0x136   : > { %2029 = vmatprep.mubr.bf16.mxu1 %v3019_v7  ;;  %v1036_v52 = vadd.f32 %v3011_v21, %v1014_v40  ;;  %v3031_v54 = vmul.f32 0.03125, %v819_v4 }
 0x137   : > { %v921_v18 = vmul.f32 %v3029_v53, %v3029_v53 }
 0x138   : > { %v881_v55 = vpop.xlane.xlu1 %880  ;;  %v3038_v63 = vpack.c.bf16 %v1037_v57, %v1036_v52  ;;  %v920_v3 = vmul.f32 %v3031_v54, %v3031_v54 }
 0x139   : > { %v879_v56 = vpop.xlane.xlu0 %878  ;;  %v903_v61 = vmul.f32 0.03125, %v881_v55 }
 0x13a   : > { %v902_v62 = vmul.f32 0.03125, %v879_v56  ;;  %2030 = vmatmul.mubr.bf16.vlgmr.msra.gmra.mxu1 %v3038_v63 }
 0x13b   : > { %v935_v8 = vsub.f32 %v903_v61, %v919_v58 }
 0x13c   : > { %v934_v9 = vsub.f32 %v902_v62, %v918_v60  ;;  %v2294_v11 = vpop.eup %2293  ;;  %v885_v0 = vpop.xlane.xlu1 %884 }
 0x13d   : > { %v883_v5 = vpop.xlane.xlu0 %882  ;;  %v2296_v1 = vpop.eup %2295  ;;  %v967_v19 = vadd.f32 1e-05, %v935_v8  ;;  %v905_v22 = vmul.f32 0.03125, %v885_v0  ;;  %v995_v12 = vmul.f32 %v2294_v11, %v947_v16 }
 0x13e   : > { %v966_v20 = vadd.f32 1e-05, %v934_v9  ;;  %v904_v23 = vmul.f32 0.03125, %v883_v5  ;;  %v994_v26 = vmul.f32 %v2296_v1, %v946_v17  ;;  %v951_v5 = vsub.f32 %v2912_v24, %v3022_v41 }
 0x13f   : > { %2301 = vrsqrt.f32 %v967_v19  ;;  %v937_v44 = vsub.f32 %v905_v22, %v921_v18  ;;  %v1017_v32 = vmul.f32 %v3004_v10, %v995_v12  ;;  %v950_v1 = vsub.f32 %v2914_v25, %v3024_v49 }
 0x140   : > { %v936_v45 = vsub.f32 %v904_v23, %v920_v3  ;;  %v2298_v27 = vpop.eup %2297  ;;  %2303 = vrsqrt.f32 %v966_v20  ;;  %v825_v31 = vpop.xlane.xlu1 %824  ;;  %v1016_v6 = vmul.f32 %v3004_v10, %v994_v26  ;;  %v953_v25 = vsub.f32 %v2919_v28, %v3029_v53 }
 0x141   : > { %v823_v2 = vpop.xlane.xlu0 %822  ;;  %v2300_v33 = vpop.eup %2299  ;;  %v969_v34 = vadd.f32 1e-05, %v937_v44  ;;  %v1039_v14 = vadd.f32 %v3011_v21, %v1017_v32  ;;  %v997_v37 = vmul.f32 %v2298_v27, %v949_v13  ;;  %v3060_v50 = vmul.f32 0.03125, %v825_v31 }
 0x142   : > { %v968_v35 = vadd.f32 1e-05, %v936_v45  ;;  %v1038_v36 = vadd.f32 %v3011_v21, %v1016_v6  ;;  %v996_v46 = vmul.f32 %v2300_v33, %v948_v30  ;;  %v3062_v52 = vmul.f32 0.03125, %v823_v2 }
 0x143   : > { %2305 = vrsqrt.f32 %v969_v34  ;;  %v1019_v55 = vmul.f32 %v3004_v10, %v997_v37  ;;  %v923_v8 = vmul.f32 %v3060_v50, %v3060_v50  ;;  %v952_v31 = vsub.f32 %v2921_v29, %v3031_v54 }
 0x144   : > { %2307 = vrsqrt.f32 %v968_v35  ;;  %v829_v4 = vpop.xlane.xlu1 %828  ;;  %v3057_v47 = vpack.c.bf16 %v1039_v14, %v1038_v36  ;;  %v1018_v40 = vmul.f32 %v3004_v10, %v996_v46  ;;  %v922_v9 = vmul.f32 %v3062_v52, %v3062_v52 }
 0x145   : > { %v827_v15 = vpop.xlane.xlu0 %826  ;;  %v3067_v57 = vmul.f32 0.03125, %v829_v4  ;;  %v1041_v62 = vadd.f32 %v3011_v21, %v1019_v55 }
 0x146   : > { %2033 = vmatprep.mubr.bf16.mxu1 %v3057_v47  ;;  %v1040_v56 = vadd.f32 %v3011_v21, %v1018_v40  ;;  %v3069_v58 = vmul.f32 0.03125, %v827_v15 }
 0x147   : > { %v925_v19 = vmul.f32 %v3067_v57, %v3067_v57 }
 0x148   : > { %v889_v60 = vpop.xlane.xlu1 %888  ;;  %v3076_v17 = vpack.c.bf16 %v1041_v62, %v1040_v56  ;;  %v924_v20 = vmul.f32 %v3069_v58, %v3069_v58 }
 0x149   : > { %v887_v61 = vpop.xlane.xlu0 %886  ;;  %v907_v11 = vmul.f32 0.03125, %v889_v60 }
 0x14a   : > { %v906_v16 = vmul.f32 0.03125, %v887_v61  ;;  %2034 = vmatmul.mubr.bf16.gmra.mxu1 %v3076_v17 }
 0x14b   : > { %v939_v18 = vsub.f32 %v907_v11, %v923_v8  ;;  %v955_v8 = vsub.f32 %v2934_v38, %v3060_v50  ;;  %v954_v11 = vsub.f32 %v2936_v39, %v3062_v52 }
 0x14c   : > { %v938_v3 = vsub.f32 %v906_v16, %v922_v9  ;;  %v2302_v0 = vpop.eup %2301  ;;  %v893_v22 = vpop.xlane.xlu1 %892 }
 0x14d   : > { %v891_v23 = vpop.xlane.xlu0 %890  ;;  %v2304_v26 = vpop.eup %2303  ;;  %v971_v12 = vadd.f32 1e-05, %v939_v18  ;;  %v909_v44 = vmul.f32 0.03125, %v893_v22  ;;  %v999_v24 = vmul.f32 %v2302_v0, %v951_v5  ;;  %v957_v0 = vsub.f32 %v2941_v42, %v3067_v57 }
 0x14e   : > { %v970_v13 = vadd.f32 1e-05, %v938_v3  ;;  %v908_v45 = vmul.f32 0.03125, %v891_v23  ;;  %v998_v27 = vmul.f32 %v2304_v26, %v950_v1 }
 0x14f   : > { %2309 = vrsqrt.f32 %v971_v12  ;;  %v941_v41 = vsub.f32 %v909_v44, %v925_v19  ;;  %v1021_v33 = vmul.f32 %v3004_v10, %v999_v24  ;;  %v956_v19 = vsub.f32 %v2943_v43, %v3069_v58  ;;  %v1841_v58 = vld [vmem:[%s3276_s2] ss:$0 sm:$0xff] }
 0x150   : > { %v940_v49 = vsub.f32 %v908_v45, %v924_v20  ;;  %v2306_v30 = vpop.eup %2305  ;;  %2311 = vrsqrt.f32 %v970_v13  ;;  %v623_v6 = vpop.xlane.xlu1 %622  ;;  %v1020_v32 = vmul.f32 %v3004_v10, %v998_v27 }
 0x151   : > { %v619_v2 = vpop.xlane.xlu0 %618  ;;  %v2308_v34 = vpop.eup %2307  ;;  %v973_v35 = vadd.f32 1e-05, %v941_v41  ;;  %v624_v46 = vmul.f32 0.03125, %v623_v6  ;;  %v1043_v53 = vadd.f32 %v3011_v21, %v1021_v33  ;;  %v1001_v4 = vmul.f32 %v2306_v30, %v953_v25  ;;  %v2270_v25 = vld [vmem:[#allocation14 + $0x30] sm:$0xff]   ;;  %v2272_v41 = vld [vmem:[#allocation14 + $0x20] sm:$0xff]  }
 0x152   : > { %v972_v36 = vadd.f32 1e-05, %v940_v49  ;;  %v620_v14 = vmul.f32 0.03125, %v619_v2  ;;  %v1042_v28 = vadd.f32 %v3011_v21, %v1020_v32  ;;  %v1000_v37 = vmul.f32 %v2308_v34, %v952_v31  ;;  %v2273_v49 = vld [vmem:[#allocation14 + $0x18] sm:$0xff]   ;;  %v2274_v30 = vld [vmem:[#allocation14 + $0x10] sm:$0xff]   ;;  %v2275_v31 = vld [vmem:[#allocation14 + $0x8] sm:$0xff]  }
 0x153   : > { %2313 = vrsqrt.f32 %v973_v35  ;;  %v1023_v40 = vmul.f32 %v3004_v10, %v1001_v4  ;;  %v2276_v2 = vld [vmem:[#allocation14] sm:$0xff]  }
 0x154   : > { %v625_v29 = vmul.f32 %v620_v14, %v620_v14  ;;  %2315 = vrsqrt.f32 %v972_v36  ;;  %v3095_v54 = vpack.c.bf16 %v1043_v53, %v1042_v28  ;;  %v1022_v15 = vmul.f32 %v3004_v10, %v1000_v37 }
 0x155   : > { %v1045_v60 = vadd.f32 %v3011_v21, %v1023_v40  ;;  %v627_v23 = vsub.f32 %v2956_v48, %v620_v14  ;;  %v1842_v48 = vld [vmem:[%s3277_s3] ss:$0 sm:$0xff]  ;;  %v2593_v14 = vmov -1e+30  }
 0x156   : > { %v626_v55 = vsub.f32 %v624_v46, %v625_v29  ;;  %2037 = vmatprep.mubr.bf16.mxu1 %v3095_v54  ;;  %v1044_v56 = vadd.f32 %v3011_v21, %v1022_v15  ;;  %761 = vst.msk [vmem:[#allocation3] sm:$0xff] %vm760_vm1, %v2593_v14 }
 0x158   : > { %v628_v61 = vadd.f32 1e-05, %v626_v55  ;;  %v3102_v62 = vpack.c.bf16 %v1045_v60, %v1044_v56  ;;  %v1843_v56 = vld [vmem:[%s3281_s7] ss:$0 sm:$0xff] }
 0x15a   : > { %2317 = vrsqrt.f32 %v628_v61  ;;  %2038 = vmatmul.mubr.bf16.gmra.mxu1 %v3102_v62 }
 0x15c   : > { %v2310_v9 = vpop.eup %2309 }
 0x15d   : > { %v2312_v16 = vpop.eup %2311  ;;  %v1003_v18 = vmul.f32 %v2310_v9, %v955_v8 }
 0x15e   : > { %v1002_v3 = vmul.f32 %v2312_v16, %v954_v11 }
 0x15f   : > { %v1025_v5 = vmul.f32 %v3004_v10, %v1003_v18 }
 0x160   : > { %v2314_v1 = vpop.eup %2313  ;;  %v1024_v20 = vmul.f32 %v3004_v10, %v1002_v3 }
 0x161   : > { %v2316_v22 = vpop.eup %2315  ;;  %v1047_v38 = vadd.f32 %v3011_v21, %v1025_v5  ;;  %v1005_v50 = vmul.f32 %v2314_v1, %v957_v0 }
 0x162   : > { %v1046_v39 = vadd.f32 %v3011_v21, %v1024_v20  ;;  %v1004_v52 = vmul.f32 %v2316_v22, %v956_v19 }
 0x163   : > { %v1027_v26 = vmul.f32 %v3004_v10, %v1005_v50 }
 0x164   : > { %v1056_v42 = vpack.c.bf16 %v1047_v38, %v1046_v39  ;;  %v1026_v57 = vmul.f32 %v3004_v10, %v1004_v52 }
 0x165   : > { %v1049_v12 = vadd.f32 %v3011_v21, %v1027_v26 }
 0x166   : > { %2041 = vmatprep.mubr.bf16.mxu1 %v1056_v42  ;;  %v1048_v43 = vadd.f32 %v3011_v21, %v1026_v57  ;;  %v2271_v21 = vld [vmem:[#allocation14 + $0x28] sm:$0xff]  }
 0x167   : > { %v2318_v13 = vpop.eup %2317 }
 0x168   : > { %v630_v44 = vmul.f32 %v2318_v13, %v627_v23  ;;  %v1057_v45 = vpack.c.bf16 %v1049_v12, %v1048_v43 }
 0x16a   : > { %v637_v27 = vmul.f32 %v1841_v58, %v630_v44  ;;  %2042 = vmatmul.mubr.bf16.gmra.mxu1 %v1057_v45 }
 0x16b   : > { %2093 = vmatprep.mubr.msk.bf16.mxu1 %vm2592_vm0, %v2591_v51 }
 0x16c   : > { %v644_v24 = vadd.f32 %v1842_v48, %v637_v27 }
 0x16e   : > { %v645_v10 = vpack.c.bf16 %v644_v24, %v644_v24 }
 0x170   : > { %2010 = vmatmul.mubr.bf16.vlgmr.msra.gmra.mxu0 %v645_v10 }
 0x171   : > { %2046 = vmatpush3.bf16.msra.mxu0 %v2972_v59  ;;  %2061 = vmatprep.mubr.bf16.mxu0 %v3019_v7  ;;  %v3143_v7 = vld [vmem:[%s3283_s9] ss:$0 sm:$0xff] }
 0x172   : > { %2047 = vmatprep.subr.bf16.mxu0 %v2270_v25 }
 0x175   : > { %2048 = vmatpush3.bf16.msra.mxu0 %v2270_v25 }
 0x176   : > { %2049 = vmatprep.subr.bf16.mxu0 %v2271_v21 }
 0x179   : > { %2050 = vmatpush3.bf16.msra.mxu0 %v2271_v21 }
 0x17a   : > { %2051 = vmatprep.subr.bf16.mxu0 %v2272_v41 }
 0x17d   : > { %2052 = vmatpush3.bf16.msra.mxu0 %v2272_v41 }
 0x17e   : > { %2053 = vmatprep.subr.bf16.mxu0 %v2273_v49 }
 0x181   : > { %2054 = vmatpush3.bf16.msra.mxu0 %v2273_v49 }
 0x182   : > { %2055 = vmatprep.subr.bf16.mxu0 %v2274_v30 }
 0x185   : > { %2056 = vmatpush3.bf16.msra.mxu0 %v2274_v30 }
 0x186   : > { %2057 = vmatprep.subr.bf16.mxu0 %v2275_v31 }
 0x189   : > { %2058 = vmatpush3.bf16.msra.mxu0 %v2275_v31 }
 0x18a   : > { %2059 = vmatprep.subr.bf16.mxu0 %v2276_v2 }
 0x18d   : > { %2060 = vmatpush3.bf16.msra.mxu0 %v2276_v2 }
 0x18e   : > { %2097 = vmatprep.subr.bf16.mxu0 %v2591_v51 }
 0x190   : > { %2062 = vmatmul.mubr.bf16.vlgmr.msra.gmra.mxu0 %v3038_v63 }
 0x191   : > { %2065 = vmatprep.mubr.bf16.mxu0 %v3057_v47 }
 0x198   : > { %2066 = vmatmul.mubr.bf16.gmra.mxu0 %v3076_v17 }
 0x199   : > { %2069 = vmatprep.mubr.bf16.mxu0 %v3095_v54 }
 0x1a0   : > { %2070 = vmatmul.mubr.bf16.gmra.mxu0 %v3102_v62 }
 0x1a1   : > { %2073 = vmatprep.mubr.bf16.mxu0 %v1056_v42 }
 0x1a8   : > { %2074 = vmatmul.mubr.bf16.gmra.mxu0 %v1057_v45 }
 0x1a9   : > { %2113 = vmatprep.mubr.msk.bf16.mxu0 %vm2592_vm0, %v2591_v51 }
 0x1fa   : > { %v2031_v59 = vpop.f32.mrf.mxu1 }
 0x1fb   : > { %v3146_v47 = vadd.f32 %v2031_v59, %v3143_v7 }
 0x1fc   : > { %v1163_v63 = vpop.f32.mrf.mxu1 }
 0x1fd   : > { %v3152_v33 = vadd.f32 %v3143_v7, %v1163_v63 }
 0x1fe   : > { %v2032_v6 = vpop.f32.mrf.mxu1 }
 0x1ff   : > { %v3149_v17 = vadd.f32 %v2032_v6, %v3143_v7 }
 0x200   : > { %v1166_v32 = vpop.f32.mrf.mxu1 }
 0x201   : > { %v1396_v34 = vpack.c.bf16 %v3149_v17, %v3146_v47  ;;  %v3157_v35 = vadd.f32 %v3143_v7, %v1166_v32 }
 0x203   : > { %v1395_v36 = vpack.c.bf16 %v3157_v35, %v3152_v33 }
 0x20a   : > { %v2035_v46 = vpop.f32.mrf.mxu1 }
 0x20b   : > { %v1188_v57 = vadd.f32 %v2035_v46, %v3143_v7 }
 0x20c   : > { %v1179_v28 = vpop.f32.mrf.mxu1 }
 0x20d   : > { %v1180_v48 = vadd.f32 %v3143_v7, %v1179_v28 }
 0x20e   : > { %v2036_v53 = vpop.f32.mrf.mxu1 }
 0x20f   : > { %v1191_v42 = vadd.f32 %v2036_v53, %v3143_v7 }
 0x210   : > { %v1182_v37 = vpop.f32.mrf.mxu1 }
 0x211   : > { %v1398_v13 = vpack.c.bf16 %v1191_v42, %v1188_v57  ;;  %v1183_v44 = vadd.f32 %v3143_v7, %v1182_v37 }
 0x213   : > { %v1397_v24 = vpack.c.bf16 %v1183_v44, %v1180_v48  ;;  %v2278_v44 = vld [vmem:[#allocation15 + $0x30] sm:$0xff]   ;;  %v2280_v48 = vld [vmem:[#allocation15 + $0x20] sm:$0xff]  }
 0x21a   : > { %v2039_v4 = vpop.f32.mrf.mxu1 }
 0x21b   : > { %v1204_v50 = vadd.f32 %v2039_v4, %v3143_v7 }
 0x21c   : > { %v1195_v29 = vpop.f32.mrf.mxu1 }
 0x21d   : > { %v1196_v23 = vadd.f32 %v3143_v7, %v1195_v29 }
 0x21e   : > { %v2040_v54 = vpop.f32.mrf.mxu1 }
 0x21f   : > { %v1207_v38 = vadd.f32 %v2040_v54, %v3143_v7 }
 0x220   : > { %v1198_v15 = vpop.f32.mrf.mxu1 }
 0x221   : > { %v1400_v39 = vpack.c.bf16 %v1207_v38, %v1204_v50  ;;  %v1199_v52 = vadd.f32 %v3143_v7, %v1198_v15  ;;  %v2594_v38 = vmov 0   ;;  %v1450_v50 = vld [vmem:[#allocation3] sm:$0xff] }
 0x222   : > { %2251 = vset.pattern.permute.xlu1 %v2594_v38  ;;  %2252 = vset.pattern.permute.xlu0 %v2594_v38 }
 0x223   : > { %v1399_v26 = vpack.c.bf16 %v1199_v52, %v1196_v23 }
 0x22a   : > { %v2043_v40 = vpop.f32.mrf.mxu1 }
 0x22b   : > { %v1220_v61 = vadd.f32 %v2043_v40, %v3143_v7 }
 0x22c   : > { %v1211_v55 = vpop.f32.mrf.mxu1 }
 0x22d   : > { %v1212_v20 = vadd.f32 %v3143_v7, %v1211_v55 }
 0x22e   : > { %v2044_v60 = vpop.f32.mrf.mxu1 }
 0x22f   : > { %v1223_v62 = vadd.f32 %v2044_v60, %v3143_v7 }
 0x230   : > { %v751_v8 = vpop.f32.mrf.mxu0  ;;  %v1214_v18 = vpop.f32.mrf.mxu1 }
 0x231   : > { %v752_v9 = vadd.f32 %v1843_v56, %v751_v8  ;;  %v1402_v11 = vpack.c.bf16 %v1223_v62, %v1220_v61  ;;  %v1215_v1 = vadd.f32 %v3143_v7, %v1214_v18  ;;  %v1863_v7 = vld [vmem:[%s3285_s11] ss:$0 sm:$0xff]  ;;  %v1403_v18 = vlaneseq }
 0x232   : > { %v2011_v16 = vpop.f32.mrf.mxu0 }
 0x233   : > { %v757_v3 = vmul.f32 0.17677669, %v752_v9  ;;  %2078 = vmatpush3.bf16.xpose.msra.mxu1 %v1402_v11  ;;  %v1401_v22 = vpack.c.bf16 %v1215_v1, %v1212_v20 }
 0x234   : > { %v754_v0 = vpop.f32.mrf.mxu0  ;;  %2079 = vmatprep.subr.bf16.mxu1 %v2591_v51 }
 0x235   : > { %v758_v5 = vpack.c.bf16 %v757_v3, %v757_v3  ;;  %v1404_v3 = vand.u32 127, %v1403_v18 }
 0x236   : > { %v2012_v19 = vpop.f32.mrf.mxu0 }
 0x237   : > { %759 = vst [vmem:[#allocation2] sm:$0xf] %v758_v5  ;;  %vm1408_vm2 = vcmp.lt.s32.totalorder %v1404_v3, 16 }
 0x238   : > { %v1409_v0 = vsel %vm1408_vm2, 0.0, %v2593_v14 }
 0x23b   : > { %2080 = vmatpush3.bf16.xpose.msra.mxu1 %v1401_v22 }
 0x23c   : > { %2081 = vmatprep.subr.bf16.mxu1 %v2591_v51 }
 0x243   : > { %2082 = vmatpush3.bf16.xpose.msra.mxu1 %v1400_v39 }
 0x244   : > { %2083 = vmatprep.subr.bf16.mxu1 %v2591_v51 }
 0x24b   : > { %2084 = vmatpush3.bf16.xpose.msra.mxu1 %v1399_v26 }
 0x24c   : > { %2085 = vmatprep.subr.bf16.mxu1 %v2591_v51 }
 0x250   : > { %v2063_v12 = vpop.f32.mrf.mxu0 }
 0x251   : > { %v1340_v62 = vadd.f32 %v2063_v12, %v1863_v7 }
 0x252   : > { %v1331_v43 = vpop.f32.mrf.mxu0 }
 0x253   : > { %2086 = vmatpush3.bf16.xpose.msra.mxu1 %v1398_v13  ;;  %v1332_v11 = vadd.f32 %v1863_v7, %v1331_v43 }
 0x254   : > { %v2064_v58 = vpop.f32.mrf.mxu0  ;;  %2087 = vmatprep.subr.bf16.mxu1 %v2591_v51 }
 0x255   : > { %v1343_v60 = vadd.f32 %v2064_v58, %v1863_v7  ;;  %v2277_v58 = vld [vmem:[#allocation15 + $0x38] sm:$0xff]  }
 0x256   : > { %v1334_v45 = vpop.f32.mrf.mxu0 }
 0x257   : > { %v1481_v8 = vpack.c.bf16 %v1343_v60, %v1340_v62  ;;  %v1335_v9 = vadd.f32 %v1863_v7, %v1334_v45  ;;  %v2279_v45 = vld [vmem:[#allocation15 + $0x28] sm:$0xff]  }
 0x258   : > { %v2067_v27 = vpop.f32.mrf.mxu0 }
 0x259   : > { %v1356_v15 = vadd.f32 %v2067_v27, %v1863_v7  ;;  %v1480_v16 = vpack.c.bf16 %v1335_v9, %v1332_v11  ;;  %v2281_v27 = vld [vmem:[#allocation15 + $0x18] sm:$0xff]  }
 0x25a   : > { %v1347_v10 = vpop.f32.mrf.mxu0 }
 0x25b   : > { %2088 = vmatpush3.bf16.xpose.msra.mxu1 %v1397_v24  ;;  %v1348_v56 = vadd.f32 %v1863_v7, %v1347_v10  ;;  %v2282_v24 = vld [vmem:[#allocation15 + $0x10] sm:$0xff]   ;;  %v2283_v10 = vld [vmem:[#allocation15 + $0x8] sm:$0xff]  }
 0x25c   : > { %v2068_v25 = vpop.f32.mrf.mxu0  ;;  %2089 = vmatprep.subr.bf16.mxu1 %v2591_v51 }
 0x25e   : > { %v1350_v21 = vpop.f32.mrf.mxu0 }
 0x25f   : > { %v1351_v55 = vadd.f32 %v1863_v7, %v1350_v21 }
 0x260   : > { %v2071_v41 = vpop.f32.mrf.mxu0 }
 0x261   : > { %v1372_v4 = vadd.f32 %v2071_v41, %v1863_v7  ;;  %v1482_v61 = vpack.c.bf16 %v1351_v55, %v1348_v56 }
 0x262   : > { %v1363_v49 = vpop.f32.mrf.mxu0 }
 0x263   : > { %2090 = vmatpush3.bf16.xpose.msra.mxu1 %v1396_v34  ;;  %v1394_v34 = vld [vmem:[#allocation2] sm:$0xf]  ;;  %v1364_v35 = vadd.f32 %v1863_v7, %v1363_v49 }
 0x264   : > { %v2072_v30 = vpop.f32.mrf.mxu0  ;;  %2091 = vmatprep.subr.bf16.mxu1 %v2591_v51 }
 0x265   : > { %v1375_v53 = vadd.f32 %v2072_v30, %v1863_v7 }
 0x266   : > { %v1366_v31 = vpop.f32.mrf.mxu0 }
 0x267   : > { %v1485_v29 = vpack.c.bf16 %v1375_v53, %v1372_v4  ;;  %v1367_v33 = vadd.f32 %v1863_v7, %v1366_v31  ;;  %v2284_v31 = vld [vmem:[#allocation15] sm:$0xff]  }
 0x268   : > { %v2075_v2 = vpop.f32.mrf.mxu0 }
 0x269   : > { %v1388_v6 = vadd.f32 %v2075_v2, %v1863_v7  ;;  %v1484_v54 = vpack.c.bf16 %v1367_v33, %v1364_v35 }
 0x26a   : > { %v1379_v59 = vpop.f32.mrf.mxu0 }
 0x26b   : > { %2092 = vmatpush3.bf16.xpose.msra.mxu1 %v1395_v36  ;;  %v1380_v17 = vadd.f32 %v1863_v7, %v1379_v59  ;;  %v1359_v36 = vadd.f32 %v2068_v25, %v1863_v7  ;;  %v1465_v25 = vld [vmem:[#allocation4] sm:$0xff] }
 0x26c   : > { %v2076_v63 = vpop.f32.mrf.mxu0 }
 0x26d   : > { %v1391_v32 = vadd.f32 %v2076_v63, %v1863_v7  ;;  %v1483_v40 = vpack.c.bf16 %v1359_v36, %v1356_v15 }
 0x26e   : > { %v1382_v46 = vpop.f32.mrf.mxu0 }
 0x26f   : > { %v1487_v28 = vpack.c.bf16 %v1391_v32, %v1388_v6  ;;  %v1383_v47 = vadd.f32 %v1863_v7, %v1382_v46 }
 0x271   : > { %2098 = vmatpush3.bf16.msra.mxu0 %v1487_v28  ;;  %v1486_v37 = vpack.c.bf16 %v1383_v47, %v1380_v17 }
 0x272   : > { %2099 = vmatprep.subr.bf16.mxu0 %v2591_v51  ;;  %2094 = vmatmul.mubr.bf16.vlgmr.msra.gmra.mxu1 %v1394_v34  ;;  %v1872_v34 = vld [vmem:[%s3324_s25] ss:$0 sm:$0xff] }
 0x275   : > { %2100 = vmatpush3.bf16.msra.mxu0 %v1486_v37  ;;  %v1655_v37 = vld [vmem:[%s2841_s21] sm:$0xff]  ;;  %s1659_s21 = scalar_lea.sflag [#allocation8], %s2835_s23 }
 0x276   : > { %2101 = vmatprep.subr.bf16.mxu0 %v2591_v51 }
 0x279   : > { %2102 = vmatpush3.bf16.msra.mxu0 %v1485_v29 }
 0x27a   : > { %2103 = vmatprep.subr.bf16.mxu0 %v2591_v51 }
 0x27d   : > { %2104 = vmatpush3.bf16.msra.mxu0 %v1484_v54 }
 0x27e   : > { %2105 = vmatprep.subr.bf16.mxu0 %v2591_v51 }
 0x281   : > { %2106 = vmatpush3.bf16.msra.mxu0 %v1483_v40 }
 0x282   : > { %2107 = vmatprep.subr.bf16.mxu0 %v2591_v51 }
 0x285   : > { %2108 = vmatpush3.bf16.msra.mxu0 %v1482_v61 }
 0x286   : > { %2109 = vmatprep.subr.bf16.mxu0 %v2591_v51 }
 0x289   : > { %2110 = vmatpush3.bf16.msra.mxu0 %v1481_v8 }
 0x28a   : > { %2111 = vmatprep.subr.bf16.mxu0 %v2591_v51 }
 0x28d   : > { %2112 = vmatpush3.bf16.msra.mxu0 %v1480_v16 }
 0x28e   : > { %2117 = vmatprep.subr.bf16.mxu0 %v2591_v51 }
 0x332   : > { %v1444_v5 = vpop.f32.mrf.mxu1 }
 0x333   : > { %v1445_v1 = vadd.f32 %v1444_v5, %v1409_v0 }
 0x334   : > { %v2095_v19 = vpop.f32.mrf.mxu1 }
 0x335   : > { %1451 = vmax.xlane.f32.xlu0 %v1445_v1 }
 0x336   : > { %v1447_v20 = vpop.f32.mrf.mxu1 }
 0x338   : > { %v2096_v22 = vpop.f32.mrf.mxu1 }
 0x3be   : > { %v1452_v39 = vpop.xlane.xlu0 %1451 }
 0x3bf   : > { %v1453_v52 = vmax.f32 %v1450_v50, %v1452_v39 }
 0x3c1   : > { %v1454_v23 = vsub.f32 %v1450_v50, %v1453_v52  ;;  %1530 = vst.msk [vmem:[#allocation3] sm:$0xff] %vm760_vm1, %v1453_v52  ;;  %1459 = vperm.xlu1 %2251, %v1453_v52  }
 0x3c3   : > { %v1455_v13 = vmul.f32 1.442695, %v1454_v23 }
 0x43c   : > { %v1460_v26 = vpop.permute.xlu1 %1459 }
 0x43d   : > { %v1462_v42 = vsub.f32 %v1445_v1, %v1460_v26 }
 0x43f   : > { %v1463_v57 = vmul.f32 1.442695, %v1462_v42 }
 0x441   : > { %2319 = vpow2.f32 %v1463_v57 }
 0x442   : > { %2321 = vpow2.f32 %v1455_v13 }
 0x44e   : > { %v2320_v14 = vpop.eup %2319 }
 0x44f   : > { %1467 = vadd.xlane.f32.xlu0 %v2320_v14  ;;  %v1479_v12 = vpack.c.bf16 %v2320_v14, %v2320_v14  ;;  %v2322_v43 = vpop.eup %2321 }
 0x450   : > { %v1466_v21 = vmul.f32 %v2322_v43, %v1465_v25 }
 0x451   : > { %2114 = vmatmul.mubr.bf16.vlgmr.msra.gmra.mxu0 %v1479_v12 }
 0x452   : > { %2133 = vmatprep.mubr.msk.bf16.mxu0 %vm2592_vm0, %v2591_v51  ;;  %2118 = vmatpush3.bf16.msra.mxu0 %v2277_v58 }
 0x453   : > { %2119 = vmatprep.subr.bf16.mxu0 %v2591_v51 }
 0x456   : > { %2120 = vmatpush3.bf16.msra.mxu0 %v2278_v44 }
 0x457   : > { %2121 = vmatprep.subr.bf16.mxu0 %v2591_v51 }
 0x45a   : > { %2122 = vmatpush3.bf16.msra.mxu0 %v2279_v45 }
 0x45b   : > { %2123 = vmatprep.subr.bf16.mxu0 %v2591_v51 }
 0x45e   : > { %2124 = vmatpush3.bf16.msra.mxu0 %v2280_v48 }
 0x45f   : > { %2125 = vmatprep.subr.bf16.mxu0 %v2591_v51 }
 0x462   : > { %2126 = vmatpush3.bf16.msra.mxu0 %v2281_v27 }
 0x463   : > { %2127 = vmatprep.subr.bf16.mxu0 %v2591_v51 }
 0x465   : > { %1475 = vperm.xlu0 %2252, %v2322_v43  }
 0x466   : > { %2128 = vmatpush3.bf16.msra.mxu0 %v2282_v24 }
 0x467   : > { %2129 = vmatprep.subr.bf16.mxu0 %v2591_v51 }
 0x46a   : > { %2130 = vmatpush3.bf16.msra.mxu0 %v2283_v10 }
 0x46b   : > { %2131 = vmatprep.subr.bf16.mxu0 %v2591_v51 }
 0x46e   : > { %2132 = vmatpush3.bf16.msra.mxu0 %v2284_v31 }
 0x4d8   : > { %v1468_v41 = vpop.xlane.xlu0 %1467 }
 0x4d9   : > { %v1469_v49 = vadd.f32 %v1468_v41, %v1466_v21 }
 0x4db   : > { %1471 = vst.msk [vmem:[#allocation4] sm:$0xff] %vm760_vm1, %v1469_v49 }
 0x4e0   : > { %v1476_v51 = vpop.permute.xlu0 %1475 }
 0x4e1   : > { %v1478_v32 = vmul.f32 0.0, %v1476_v51 }
 0x4e2   : > { %v1535_v30 = vld [vmem:[#allocation4] sm:$0xff] }
 0x4e3   : > { %2323 = vrcp.f32 %v1535_v30 }
 0x4f0   : > { %v2324_v2 = vpop.eup %2323 }
 0x4f1   : > { %1539 = vperm.xlu1 %2251, %v2324_v2  }
 0x511   : > { %v1522_v59 = vpop.f32.mrf.mxu0 }
 0x512   : > { %v1528_v46 = vadd.f32 %v1522_v59, %v1478_v32 }
 0x513   : > { %v2115_v7 = vpop.f32.mrf.mxu0 }
 0x515   : > { %v1525_v63 = vpop.f32.mrf.mxu0 }
 0x517   : > { %v2116_v6 = vpop.f32.mrf.mxu0 }
 0x56c   : > { %v1540_v28 = vpop.permute.xlu1 %1539 }
 0x56d   : > { %v1542_v47 = vmul.f32 %v1540_v28, %v1528_v46 }
 0x56f   : > { %v1543_v17 = vpack.c.bf16 %v1542_v47, %v1542_v47 }
 0x571   : > { %2134 = vmatmul.mubr.bf16.vlgmr.msra.gmra.mxu0 %v1543_v17 }
 0x631   : > { %v1649_v53 = vpop.f32.mrf.mxu0 }
 0x632   : > { %v1650_v4 = vadd.f32 %v1872_v34, %v1649_v53 }
 0x633   : > { %v2135_v29 = vpop.f32.mrf.mxu0 }
 0x634   : > { %v1656_v33 = vadd.f32 %v1655_v37, %v1650_v4 }
 0x635   : > { %v1652_v35 = vpop.f32.mrf.mxu0 }
 0x636   : > { %1657 = vst [vmem:[%s608_s22] sm:$0xff] %v1656_v33 }
 0x637   : > { %v2136_v36 = vpop.f32.mrf.mxu0 }
 0x638   : > { %2498 = shalt.err (!%p2495_p5)
}
 0x639   : > { %s2499_s29 = scalar_lea.hbm %s3226_s10, 128  ;;  %s2503_s20 = scalar_lea.hbm %s3325_s12, 256 }
 0x63a   : > { %p2500_p6 = scmp.ne.s32.totalorder %s3226_s10, %s2499_s29  ;;  %p2504_p4 = scmp.lt.s32.totalorder %s3226_s10, %s3325_s12 }
 0x63b   : > { %p2505_p7 = scmp.lt.s32.totalorder %s2503_s20, %s2499_s29 }
 0x63c   : > { %p2501_p13 = pnand %p2500_p6, %p2789_p2 }
 0x63d   : > { %p2506_p1 = por %p2505_p7, %p2504_p4 }
 0x63e   : > { %p2502_p11 = pneg %p2501_p13 }
 0x640   : > { %p2507_p3 = pnand %p2506_p1, %p2502_p11 }
 0x642   : > { %2510 = shalt.err (!%p2507_p3)
}
 0x643   : > { %2157 = dma.vmem_to_hbm [thread:$0]  (%p2789_p2), %s3228_s6, 128, %s3226_s10, %s1659_s21  }
 0x644 PF: > { %s3326_s25 = sld [smem:[#allocation24_spill]]  ;;  %p3328_p0 = scmp.ge.s32.totalorder %s2581_s18, 2 }
 0x646   : > { %p2180_p9 = pnand %p3328_p0, %p2796_p8 }
 0x648   : > { %p2181_p10 = pneg %p2180_p9 }
 0x64a   : > { %s1685_s22 = sand.u32 1, %s3326_s25  }
 0x64b   : > { %s1686_s8 = scalar_lea.sflag [#allocation8], %s1685_s22 }
 0x64c   : > { %2556 = dma.done.wait (%p2181_p10), %s1686_s8, 128  }
 0x64d   : > { %2558 = vsyncadd (%p2181_p10), %s1686_s8, 4294967168  ;;  %s35_s18 = sadd.s32 1, %s2581_s18   ;;  %s3329_s26 = sld [smem:[#allocation25_spill]] }
 0x64e   : > { %p32_p12 = scmp.ge.s32.totalorder %s35_s18, 4   ;;  %s3330_s15 = sld [smem:[#allocation28_spill]] }
 0x64f   : > { %s3331_s6 = sld [smem:[#allocation27_spill]]  ;;  %s3332_s29 = smov %s2565_s30 }
 0x650   : > { %s3334_s16 = smov %s2577_s17 }
 0x651   :  { %34 = sbr.rel (!%p32_p12) target bundleno = 18 (0x12), region = 158 }
 0x653   : > { %s3333_s30 = smov %s3329_s26 }
 0x655   : > { %s3335_s17 = smov %s3331_s6 }
 0x656   :  { %1691 = vsyncpa [#allocation7], 1 }
 0x657   :  { %1693 = vsyncpa [#allocation7 + $0x1], 1 }
 0x658   :  { %1694 = vsyncpa [#allocation10], 1 }
 0x659   :  { %1696 = vsyncpa [#allocation10 + $0x1], 1 }
 0x65a   :  { %1697 = vsyncpa [#allocation13], 1 }
 0x65b   :  { %1698 = vsyncpa [#allocation16], 1 }
 0x65c   :  { %1699 = vsyncpa [#allocation8], 1 }
 0x65d   :  { %1701 = vsyncpa [#allocation8 + $0x1], 1 }

</bundles_post_ra>
